<compile_context>
chip_gen: v7x
topology: tpu7x:2x2x1
jax: 0.10.0
libtpu: 0.0.40
codegen_flags: <defaults>
</compile_context>

<pallas_src>
import functools

import jax
import jax.numpy as jnp
from jax.experimental import pallas as pl

# Module-fixed sizes (from IPSRNN.__init__).
N_CODES = 1104      # n_diagnosis_codes
INPUT_SIZE = 70
HIDDEN = 70
ATT_DIM = 64
N_LABELS = 3

# Small demo sequence sizes.
T = 8
B = 4

# Padded (lane/sublane aligned) sizes used inside the kernel.
HP = 128            # hidden / attention dim padded to one lane tile
BP = 8              # batch padded to one sublane tile
CP = 1152           # n_diagnosis_codes padded to a multiple of 128
NEG_INF = -1e30     # bias for padded label lanes -> exp() underflows to 0


# ----------------------------------------------------------------------------
# Fused kernel: embed-mean (as matmuls) -> LSTM -> self-attention -> fc+softmax
# ----------------------------------------------------------------------------
def _ipsrnn_kernel(x_ref, ep_ref, en_ref, wih_ref, whh_ref, b_ref,
                   w1_ref, b1_ref, w2_ref, wf_ref, bf_ref, o_ref,
                   *, n_steps, bp, hp, inv_c, n_real_b, n_labels):
    # ---- embed-mean as two MXU matmuls -----------------------------------
    # relu(x*E).mean over C == (relu(x) @ relu(E) + relu(-x) @ relu(-E)) / C
    x = x_ref[...]                                           # (T*BP, CP)
    xp = jnp.maximum(x, 0.0)
    xn = jnp.maximum(-x, 0.0)
    xe = (jnp.dot(xp, ep_ref[...], preferred_element_type=jnp.float32)
          + jnp.dot(xn, en_ref[...], preferred_element_type=jnp.float32)
          ) * jnp.float32(inv_c)                             # (T*BP, HP)

    # ---- LSTM input projection hoisted out of the serial loop ------------
    gx = (jnp.dot(xe, wih_ref[...], preferred_element_type=jnp.float32)
          + b_ref[...])                                      # (T*BP, 4*HP)
    gx = gx.reshape(n_steps, bp, 4 * hp)                     # tile-aligned split

    # ---- recurrent loop (statically unrolled, gate order i, f, g, o) ------
    whh = whh_ref[...]                                       # (HP, 4*HP)
    h = jnp.zeros((bp, hp), jnp.float32)
    c = jnp.zeros((bp, hp), jnp.float32)
    hs_list = []
    for t in range(n_steps):
        g = gx[t] + jnp.dot(h, whh, preferred_element_type=jnp.float32)
        i_g = jax.nn.sigmoid(g[:, 0 * hp:1 * hp])            # lane-aligned slices
        f_g = jax.nn.sigmoid(g[:, 1 * hp:2 * hp])
        g_g = jnp.tanh(g[:, 2 * hp:3 * hp])
        o_g = jax.nn.sigmoid(g[:, 3 * hp:4 * hp])
        c = f_g * c + i_g * g_g
        h = o_g * jnp.tanh(c)
        hs_list.append(h)
    hs = jnp.stack(hs_list, axis=0)                          # (T, BP, HP)

    # ---- self-attention over time -----------------------------------------
    hs2 = hs.reshape(n_steps * bp, hp)                       # (T*BP, HP)
    e = jnp.maximum(
        jnp.dot(hs2, w1_ref[...], preferred_element_type=jnp.float32)
        + b1_ref[...], 0.0)                                  # (T*BP, HP)
    # energy[t,b] = e[t,b,:] . w2   (Linear(64,1) bias cancels in softmax_T)
    energy = jnp.sum(e * w2_ref[...], axis=-1, keepdims=True)   # (T*BP, 1)
    energy = energy.reshape(n_steps, bp, 1)                  # (T, BP, 1)
    m = jnp.max(energy, axis=0, keepdims=True)
    ex = jnp.exp(energy - m)
    attn = ex / jnp.sum(ex, axis=0, keepdims=True)           # (T, BP, 1)
    ctx = jnp.sum(hs * attn, axis=0)                         # (BP, HP)

    # ---- fc + final softmax (padded label lanes have -1e30 bias -> 0) -----
    logit = (jnp.dot(ctx, wf_ref[...], preferred_element_type=jnp.float32)
             + bf_ref[...])                                  # (BP, HP)
    lm = jnp.max(logit, axis=-1, keepdims=True)
    le = jnp.exp(logit - lm)
    probs = le / jnp.sum(le, axis=-1, keepdims=True)
    o_ref[...] = probs[:n_real_b, :n_labels].astype(o_ref.dtype)


# ----------------------------------------------------------------------------
# Wrapper: pad/relayout weights to lane-aligned shapes, single pallas_call.
# ----------------------------------------------------------------------------
def _pad_to(a, shape, fill=0.0):
    pads = [(0, s - d) for d, s in zip(a.shape, shape)]
    return jnp.pad(a, pads, constant_values=fill)


def _pad_gates(w):
    # (in, 4*HIDDEN) with gate blocks of width HIDDEN -> (HP, 4*HP),
    # each gate zero-padded to its own full 128-lane block.
    w4 = w.reshape(w.shape[0], 4, HIDDEN)
    w4 = jnp.pad(w4, ((0, HP - w.shape[0]), (0, 0), (0, HP - HIDDEN)))
    return w4.reshape(HP, 4 * HP)


@jax.jit
def ipsrnn_forward(x, p):
    Tn, Bn, Cn = x.shape
    # Pad batch to one sublane tile, codes to a lane-tile multiple; flatten T*B.
    xf = jnp.pad(x, ((0, 0), (0, BP - Bn), (0, CP - Cn))).reshape(Tn * BP, CP)

    ep = _pad_to(jnp.maximum(p["w_emb"], 0.0), (CP, HP))      # relu(E)  padded
    en = _pad_to(jnp.maximum(-p["w_emb"], 0.0), (CP, HP))     # relu(-E) padded
    wih = _pad_gates(p["w_ih_t"])
    whh = _pad_gates(p["w_hh_t"])
    b4 = jnp.pad(p["b_lstm"].reshape(1, 4, HIDDEN),
                 ((0, 0), (0, 0), (0, HP - HIDDEN))).reshape(1, 4 * HP)
    w1 = _pad_to(p["w1"], (HP, HP))
    b1 = _pad_to(p["b1"], (1, HP))
    w2 = _pad_to(p["w2"].T, (1, HP))                          # (64,1) -> (1,HP)
    wf = _pad_to(p["wf"], (HP, HP))
    bf = _pad_to(p["bf"], (1, HP), fill=NEG_INF)              # mask padded labels

    full = lambda *shape: pl.BlockSpec(shape, lambda: tuple(0 for _ in shape))
    kernel = functools.partial(
        _ipsrnn_kernel, n_steps=Tn, bp=BP, hp=HP,
        inv_c=1.0 / Cn, n_real_b=Bn, n_labels=N_LABELS)
    return pl.pallas_call(
        kernel,
        out_shape=jax.ShapeDtypeStruct((Bn, N_LABELS), jnp.float32),
        in_specs=[
            full(Tn * BP, CP),
            full(CP, HP), full(CP, HP),
            full(HP, 4 * HP), full(HP, 4 * HP), full(1, 4 * HP),
            full(HP, HP), full(1, HP), full(1, HP),
            full(HP, HP), full(1, HP),
        ],
        out_specs=full(Bn, N_LABELS),
    )(xf, ep, en, wih, whh, b4, w1, b1, w2, wf, bf)


# ----------------------------------------------------------------------------
# Pure-JAX reference (mirrors the PyTorch forward) for correctness checking.
# ----------------------------------------------------------------------------
def ipsrnn_reference(x, p):
    xe = jnp.maximum(x[:, :, :, None] * p["w_emb"][None, None, :, :], 0.0).mean(axis=2)

    def step(carry, x_t):
        h, c = carry
        gates = x_t @ p["w_ih_t"] + h @ p["w_hh_t"] + p["b_lstm"][0]
        i = jax.nn.sigmoid(gates[:, :HIDDEN])
        f = jax.nn.sigmoid(gates[:, HIDDEN:2 * HIDDEN])
        g = jnp.tanh(gates[:, 2 * HIDDEN:3 * HIDDEN])
        o = jax.nn.sigmoid(gates[:, 3 * HIDDEN:])
        c = f * c + i * g
        h = o * jnp.tanh(c)
        return (h, c), h

    z = jnp.zeros((x.shape[1], HIDDEN), jnp.float32)
    _, hs = jax.lax.scan(step, (z, z), xe)

    e = jnp.maximum(hs @ p["w1"] + p["b1"][0], 0.0) @ p["w2"] + p["b2"][0]   # (T,B,1)
    attn = jax.nn.softmax(e[..., 0], axis=0)                                  # (T,B)
    ctx = jnp.sum(hs * attn[:, :, None], axis=0)                              # (B,H)
    logit = ctx @ p["wf"] + p["bf"][0]
    return jax.nn.softmax(logit, axis=1)


def make_params(key):
    ks = jax.random.split(key, 9)
    s = 0.1
    return {
        "w_emb":  jax.random.normal(ks[0], (N_CODES, INPUT_SIZE), jnp.float32) * s,
        "w_ih_t": jax.random.normal(ks[1], (INPUT_SIZE, 4 * HIDDEN), jnp.float32) * s,
        "w_hh_t": jax.random.normal(ks[2], (HIDDEN, 4 * HIDDEN), jnp.float32) * s,
        "b_lstm": jax.random.normal(ks[3], (1, 4 * HIDDEN), jnp.float32) * s,  # b_ih + b_hh
        "w1":     jax.random.normal(ks[4], (HIDDEN, ATT_DIM), jnp.float32) * s,
        "b1":     jax.random.normal(ks[5], (1, ATT_DIM), jnp.float32) * s,
        "w2":     jax.random.normal(ks[6], (ATT_DIM, 1), jnp.float32) * s,
        "b2":     jnp.zeros((1, 1), jnp.float32),
        "wf":     jax.random.normal(ks[7], (HIDDEN, N_LABELS), jnp.float32) * s,
        "bf":     jax.random.normal(ks[8], (1, N_LABELS), jnp.float32) * s,
    }


if __name__ == "__main__":
    key = jax.random.PRNGKey(0)
    k_x, k_p = jax.random.split(key)
    params = make_params(k_p)
    # x: (T, B, n_diagnosis_codes) float, time-major as used by batch_first=False LSTM.
    x = jax.random.uniform(k_x, (T, B, N_CODES), jnp.float32)

    out = jax.block_until_ready(ipsrnn_forward(x, params))
    ref = jax.block_until_ready(ipsrnn_reference(x, params))

    assert out.shape == (B, N_LABELS), out.shape
    assert bool(jnp.all(jnp.isfinite(out)))
    # Rows of the output are softmax distributions.
    assert bool(jnp.allclose(jnp.sum(out, axis=1), 1.0, atol=1e-4))
    assert float(jnp.max(jnp.abs(out - ref))) < 5e-3, (out, ref)

    print("KERNEL_OK")
</pallas_src>

<mosaic_0001>
module attributes {stable_mosaic.version = 11 : i64} {
  func.func @_ipsrnn_kernel(%arg0: memref<64x1152xf32, #tpu.memory_space<vmem>>, %arg1: memref<1152x128xf32, #tpu.memory_space<vmem>>, %arg2: memref<1152x128xf32, #tpu.memory_space<vmem>>, %arg3: memref<128x512xf32, #tpu.memory_space<vmem>>, %arg4: memref<128x512xf32, #tpu.memory_space<vmem>>, %arg5: memref<1x512xf32, #tpu.memory_space<vmem>>, %arg6: memref<128x128xf32, #tpu.memory_space<vmem>>, %arg7: memref<1x128xf32, #tpu.memory_space<vmem>>, %arg8: memref<1x128xf32, #tpu.memory_space<vmem>>, %arg9: memref<128x128xf32, #tpu.memory_space<vmem>>, %arg10: memref<1x128xf32, #tpu.memory_space<vmem>>, %arg11: memref<4x3xf32, #tpu.memory_space<vmem>>) attributes {dimension_semantics = [], scalar_prefetch = 0 : i64, scratch_operands = 0 : i64, tpu.core_type = #tpu.core_type<tc>} {
    %c0 = arith.constant 0 : index
    %c0_0 = arith.constant 0 : index
    %0 = vector.load %arg0[%c0, %c0_0] : memref<64x1152xf32, #tpu.memory_space<vmem>>, vector<64x1152xf32>
    %cst = arith.constant 0.000000e+00 : f32
    %1 = vector.broadcast %cst : f32 to vector<64x1152xf32>
    %2 = arith.maximumf %0, %1 : vector<64x1152xf32>
    %cst_1 = arith.constant 0.000000e+00 : f32
    %3 = vector.broadcast %cst_1 : f32 to vector<64x1152xf32>
    %4 = arith.subf %3, %0 : vector<64x1152xf32>
    %cst_2 = arith.constant 0.000000e+00 : f32
    %5 = vector.broadcast %cst_2 : f32 to vector<64x1152xf32>
    %6 = arith.maximumf %4, %5 : vector<64x1152xf32>
    %c0_3 = arith.constant 0 : index
    %c0_4 = arith.constant 0 : index
    %7 = vector.load %arg1[%c0_3, %c0_4] : memref<1152x128xf32, #tpu.memory_space<vmem>>, vector<1152x128xf32>
    %cst_5 = arith.constant dense<0.000000e+00> : vector<64x128xf32>
    %8 = tpu.matmul %2, %7, %cst_5 {dimension_numbers = #tpu.dot_dimension_numbers<[1], [0], [0], [1], [0, 0, 1, 1], [], []>} : vector<64x1152xf32>, vector<1152x128xf32>, vector<64x128xf32> -> vector<64x128xf32>
    %c0_6 = arith.constant 0 : index
    %c0_7 = arith.constant 0 : index
    %9 = vector.load %arg2[%c0_6, %c0_7] : memref<1152x128xf32, #tpu.memory_space<vmem>>, vector<1152x128xf32>
    %cst_8 = arith.constant dense<0.000000e+00> : vector<64x128xf32>
    %10 = tpu.matmul %6, %9, %cst_8 {dimension_numbers = #tpu.dot_dimension_numbers<[1], [0], [0], [1], [0, 0, 1, 1], [], []>} : vector<64x1152xf32>, vector<1152x128xf32>, vector<64x128xf32> -> vector<64x128xf32>
    %11 = arith.addf %8, %10 : vector<64x128xf32>
    %cst_9 = arith.constant 9.05797118E-4 : f32
    %12 = vector.broadcast %cst_9 : f32 to vector<64x128xf32>
    %13 = arith.mulf %11, %12 : vector<64x128xf32>
    %c0_10 = arith.constant 0 : index
    %c0_11 = arith.constant 0 : index
    %14 = vector.load %arg3[%c0_10, %c0_11] : memref<128x512xf32, #tpu.memory_space<vmem>>, vector<128x512xf32>
    %cst_12 = arith.constant dense<0.000000e+00> : vector<64x512xf32>
    %15 = tpu.matmul %13, %14, %cst_12 {dimension_numbers = #tpu.dot_dimension_numbers<[1], [0], [0], [1], [0, 0, 1, 1], [], []>} : vector<64x128xf32>, vector<128x512xf32>, vector<64x512xf32> -> vector<64x512xf32>
    %c0_13 = arith.constant 0 : index
    %c0_14 = arith.constant 0 : index
    %16 = vector.load %arg5[%c0_13, %c0_14] : memref<1x512xf32, #tpu.memory_space<vmem>>, vector<1x512xf32>
    %17 = vector.broadcast %16 : vector<1x512xf32> to vector<64x512xf32>
    %18 = arith.addf %15, %17 : vector<64x512xf32>
    %19 = vector.shape_cast %18 : vector<64x512xf32> to vector<8x8x512xf32>
    %c0_15 = arith.constant 0 : index
    %c0_16 = arith.constant 0 : index
    %20 = vector.load %arg4[%c0_15, %c0_16] : memref<128x512xf32, #tpu.memory_space<vmem>>, vector<128x512xf32>
    %cst_17 = arith.constant 0.000000e+00 : f32
    %21 = vector.broadcast %cst_17 : f32 to vector<8x128xf32>
    %cst_18 = arith.constant 0.000000e+00 : f32
    %22 = vector.broadcast %cst_18 : f32 to vector<8x128xf32>
    %23 = vector.extract_strided_slice %19 {offsets = [0, 0, 0], sizes = [1, 8, 512], strides = [1, 1, 1]} : vector<8x8x512xf32> to vector<1x8x512xf32>
    %24 = vector.shape_cast %23 : vector<1x8x512xf32> to vector<8x512xf32>
    %cst_19 = arith.constant dense<0.000000e+00> : vector<8x512xf32>
    %25 = tpu.matmul %21, %20, %cst_19 {dimension_numbers = #tpu.dot_dimension_numbers<[1], [0], [0], [1], [0, 0, 1, 1], [], []>} : vector<8x128xf32>, vector<128x512xf32>, vector<8x512xf32> -> vector<8x512xf32>
    %26 = arith.addf %24, %25 : vector<8x512xf32>
    %27 = vector.extract_strided_slice %26 {offsets = [0, 0], sizes = [8, 128], strides = [1, 1]} : vector<8x512xf32> to vector<8x128xf32>
    %28 = arith.negf %27 : vector<8x128xf32>
    %29 = math.exp %28 : vector<8x128xf32>
    %cst_20 = arith.constant 1.000000e+00 : f32
    %30 = vector.broadcast %cst_20 : f32 to vector<8x128xf32>
    %31 = arith.addf %30, %29 : vector<8x128xf32>
    %32 = arith.divf %30, %31 : vector<8x128xf32>
    %33 = vector.extract_strided_slice %26 {offsets = [0, 128], sizes = [8, 128], strides = [1, 1]} : vector<8x512xf32> to vector<8x128xf32>
    %34 = arith.negf %33 : vector<8x128xf32>
    %35 = math.exp %34 : vector<8x128xf32>
    %cst_21 = arith.constant 1.000000e+00 : f32
    %36 = vector.broadcast %cst_21 : f32 to vector<8x128xf32>
    %37 = arith.addf %36, %35 : vector<8x128xf32>
    %38 = arith.divf %36, %37 : vector<8x128xf32>
    %39 = vector.extract_strided_slice %26 {offsets = [0, 256], sizes = [8, 128], strides = [1, 1]} : vector<8x512xf32> to vector<8x128xf32>
    %40 = math.tanh %39 : vector<8x128xf32>
    %41 = vector.extract_strided_slice %26 {offsets = [0, 384], sizes = [8, 128], strides = [1, 1]} : vector<8x512xf32> to vector<8x128xf32>
    %42 = arith.negf %41 : vector<8x128xf32>
    %43 = math.exp %42 : vector<8x128xf32>
    %cst_22 = arith.constant 1.000000e+00 : f32
    %44 = vector.broadcast %cst_22 : f32 to vector<8x128xf32>
    %45 = arith.addf %44, %43 : vector<8x128xf32>
    %46 = arith.divf %44, %45 : vector<8x128xf32>
    %47 = arith.mulf %38, %22 : vector<8x128xf32>
    %48 = arith.mulf %32, %40 : vector<8x128xf32>
    %49 = arith.addf %47, %48 : vector<8x128xf32>
    %50 = math.tanh %49 : vector<8x128xf32>
    %51 = arith.mulf %46, %50 : vector<8x128xf32>
    %52 = vector.extract_strided_slice %19 {offsets = [1, 0, 0], sizes = [1, 8, 512], strides = [1, 1, 1]} : vector<8x8x512xf32> to vector<1x8x512xf32>
    %53 = vector.shape_cast %52 : vector<1x8x512xf32> to vector<8x512xf32>
    %cst_23 = arith.constant dense<0.000000e+00> : vector<8x512xf32>
    %54 = tpu.matmul %51, %20, %cst_23 {dimension_numbers = #tpu.dot_dimension_numbers<[1], [0], [0], [1], [0, 0, 1, 1], [], []>} : vector<8x128xf32>, vector<128x512xf32>, vector<8x512xf32> -> vector<8x512xf32>
    %55 = arith.addf %53, %54 : vector<8x512xf32>
    %56 = vector.extract_strided_slice %55 {offsets = [0, 0], sizes = [8, 128], strides = [1, 1]} : vector<8x512xf32> to vector<8x128xf32>
    %57 = arith.negf %56 : vector<8x128xf32>
    %58 = math.exp %57 : vector<8x128xf32>
    %cst_24 = arith.constant 1.000000e+00 : f32
    %59 = vector.broadcast %cst_24 : f32 to vector<8x128xf32>
    %60 = arith.addf %59, %58 : vector<8x128xf32>
    %61 = arith.divf %59, %60 : vector<8x128xf32>
    %62 = vector.extract_strided_slice %55 {offsets = [0, 128], sizes = [8, 128], strides = [1, 1]} : vector<8x512xf32> to vector<8x128xf32>
    %63 = arith.negf %62 : vector<8x128xf32>
    %64 = math.exp %63 : vector<8x128xf32>
    %cst_25 = arith.constant 1.000000e+00 : f32
    %65 = vector.broadcast %cst_25 : f32 to vector<8x128xf32>
    %66 = arith.addf %65, %64 : vector<8x128xf32>
    %67 = arith.divf %65, %66 : vector<8x128xf32>
    %68 = vector.extract_strided_slice %55 {offsets = [0, 256], sizes = [8, 128], strides = [1, 1]} : vector<8x512xf32> to vector<8x128xf32>
    %69 = math.tanh %68 : vector<8x128xf32>
    %70 = vector.extract_strided_slice %55 {offsets = [0, 384], sizes = [8, 128], strides = [1, 1]} : vector<8x512xf32> to vector<8x128xf32>
    %71 = arith.negf %70 : vector<8x128xf32>
    %72 = math.exp %71 : vector<8x128xf32>
    %cst_26 = arith.constant 1.000000e+00 : f32
    %73 = vector.broadcast %cst_26 : f32 to vector<8x128xf32>
    %74 = arith.addf %73, %72 : vector<8x128xf32>
    %75 = arith.divf %73, %74 : vector<8x128xf32>
    %76 = arith.mulf %67, %49 : vector<8x128xf32>
    %77 = arith.mulf %61, %69 : vector<8x128xf32>
    %78 = arith.addf %76, %77 : vector<8x128xf32>
    %79 = math.tanh %78 : vector<8x128xf32>
    %80 = arith.mulf %75, %79 : vector<8x128xf32>
    %81 = vector.extract_strided_slice %19 {offsets = [2, 0, 0], sizes = [1, 8, 512], strides = [1, 1, 1]} : vector<8x8x512xf32> to vector<1x8x512xf32>
    %82 = vector.shape_cast %81 : vector<1x8x512xf32> to vector<8x512xf32>
    %cst_27 = arith.constant dense<0.000000e+00> : vector<8x512xf32>
    %83 = tpu.matmul %80, %20, %cst_27 {dimension_numbers = #tpu.dot_dimension_numbers<[1], [0], [0], [1], [0, 0, 1, 1], [], []>} : vector<8x128xf32>, vector<128x512xf32>, vector<8x512xf32> -> vector<8x512xf32>
    %84 = arith.addf %82, %83 : vector<8x512xf32>
    %85 = vector.extract_strided_slice %84 {offsets = [0, 0], sizes = [8, 128], strides = [1, 1]} : vector<8x512xf32> to vector<8x128xf32>
    %86 = arith.negf %85 : vector<8x128xf32>
    %87 = math.exp %86 : vector<8x128xf32>
    %cst_28 = arith.constant 1.000000e+00 : f32
    %88 = vector.broadcast %cst_28 : f32 to vector<8x128xf32>
    %89 = arith.addf %88, %87 : vector<8x128xf32>
    %90 = arith.divf %88, %89 : vector<8x128xf32>
    %91 = vector.extract_strided_slice %84 {offsets = [0, 128], sizes = [8, 128], strides = [1, 1]} : vector<8x512xf32> to vector<8x128xf32>
    %92 = arith.negf %91 : vector<8x128xf32>
    %93 = math.exp %92 : vector<8x128xf32>
    %cst_29 = arith.constant 1.000000e+00 : f32
    %94 = vector.broadcast %cst_29 : f32 to vector<8x128xf32>
    %95 = arith.addf %94, %93 : vector<8x128xf32>
    %96 = arith.divf %94, %95 : vector<8x128xf32>
    %97 = vector.extract_strided_slice %84 {offsets = [0, 256], sizes = [8, 128], strides = [1, 1]} : vector<8x512xf32> to vector<8x128xf32>
    %98 = math.tanh %97 : vector<8x128xf32>
    %99 = vector.extract_strided_slice %84 {offsets = [0, 384], sizes = [8, 128], strides = [1, 1]} : vector<8x512xf32> to vector<8x128xf32>
    %100 = arith.negf %99 : vector<8x128xf32>
    %101 = math.exp %100 : vector<8x128xf32>
    %cst_30 = arith.constant 1.000000e+00 : f32
    %102 = vector.broadcast %cst_30 : f32 to vector<8x128xf32>
    %103 = arith.addf %102, %101 : vector<8x128xf32>
    %104 = arith.divf %102, %103 : vector<8x128xf32>
    %105 = arith.mulf %96, %78 : vector<8x128xf32>
    %106 = arith.mulf %90, %98 : vector<8x128xf32>
    %107 = arith.addf %105, %106 : vector<8x128xf32>
    %108 = math.tanh %107 : vector<8x128xf32>
    %109 = arith.mulf %104, %108 : vector<8x128xf32>
    %110 = vector.extract_strided_slice %19 {offsets = [3, 0, 0], sizes = [1, 8, 512], strides = [1, 1, 1]} : vector<8x8x512xf32> to vector<1x8x512xf32>
    %111 = vector.shape_cast %110 : vector<1x8x512xf32> to vector<8x512xf32>
    %cst_31 = arith.constant dense<0.000000e+00> : vector<8x512xf32>
    %112 = tpu.matmul %109, %20, %cst_31 {dimension_numbers = #tpu.dot_dimension_numbers<[1], [0], [0], [1], [0, 0, 1, 1], [], []>} : vector<8x128xf32>, vector<128x512xf32>, vector<8x512xf32> -> vector<8x512xf32>
    %113 = arith.addf %111, %112 : vector<8x512xf32>
    %114 = vector.extract_strided_slice %113 {offsets = [0, 0], sizes = [8, 128], strides = [1, 1]} : vector<8x512xf32> to vector<8x128xf32>
    %115 = arith.negf %114 : vector<8x128xf32>
    %116 = math.exp %115 : vector<8x128xf32>
    %cst_32 = arith.constant 1.000000e+00 : f32
    %117 = vector.broadcast %cst_32 : f32 to vector<8x128xf32>
    %118 = arith.addf %117, %116 : vector<8x128xf32>
    %119 = arith.divf %117, %118 : vector<8x128xf32>
    %120 = vector.extract_strided_slice %113 {offsets = [0, 128], sizes = [8, 128], strides = [1, 1]} : vector<8x512xf32> to vector<8x128xf32>
    %121 = arith.negf %120 : vector<8x128xf32>
    %122 = math.exp %121 : vector<8x128xf32>
    %cst_33 = arith.constant 1.000000e+00 : f32
    %123 = vector.broadcast %cst_33 : f32 to vector<8x128xf32>
    %124 = arith.addf %123, %122 : vector<8x128xf32>
    %125 = arith.divf %123, %124 : vector<8x128xf32>
    %126 = vector.extract_strided_slice %113 {offsets = [0, 256], sizes = [8, 128], strides = [1, 1]} : vector<8x512xf32> to vector<8x128xf32>
    %127 = math.tanh %126 : vector<8x128xf32>
    %128 = vector.extract_strided_slice %113 {offsets = [0, 384], sizes = [8, 128], strides = [1, 1]} : vector<8x512xf32> to vector<8x128xf32>
    %129 = arith.negf %128 : vector<8x128xf32>
    %130 = math.exp %129 : vector<8x128xf32>
    %cst_34 = arith.constant 1.000000e+00 : f32
    %131 = vector.broadcast %cst_34 : f32 to vector<8x128xf32>
    %132 = arith.addf %131, %130 : vector<8x128xf32>
    %133 = arith.divf %131, %132 : vector<8x128xf32>
    %134 = arith.mulf %125, %107 : vector<8x128xf32>
    %135 = arith.mulf %119, %127 : vector<8x128xf32>
    %136 = arith.addf %134, %135 : vector<8x128xf32>
    %137 = math.tanh %136 : vector<8x128xf32>
    %138 = arith.mulf %133, %137 : vector<8x128xf32>
    %139 = vector.extract_strided_slice %19 {offsets = [4, 0, 0], sizes = [1, 8, 512], strides = [1, 1, 1]} : vector<8x8x512xf32> to vector<1x8x512xf32>
    %140 = vector.shape_cast %139 : vector<1x8x512xf32> to vector<8x512xf32>
    %cst_35 = arith.constant dense<0.000000e+00> : vector<8x512xf32>
    %141 = tpu.matmul %138, %20, %cst_35 {dimension_numbers = #tpu.dot_dimension_numbers<[1], [0], [0], [1], [0, 0, 1, 1], [], []>} : vector<8x128xf32>, vector<128x512xf32>, vector<8x512xf32> -> vector<8x512xf32>
    %142 = arith.addf %140, %141 : vector<8x512xf32>
    %143 = vector.extract_strided_slice %142 {offsets = [0, 0], sizes = [8, 128], strides = [1, 1]} : vector<8x512xf32> to vector<8x128xf32>
    %144 = arith.negf %143 : vector<8x128xf32>
    %145 = math.exp %144 : vector<8x128xf32>
    %cst_36 = arith.constant 1.000000e+00 : f32
    %146 = vector.broadcast %cst_36 : f32 to vector<8x128xf32>
    %147 = arith.addf %146, %145 : vector<8x128xf32>
    %148 = arith.divf %146, %147 : vector<8x128xf32>
    %149 = vector.extract_strided_slice %142 {offsets = [0, 128], sizes = [8, 128], strides = [1, 1]} : vector<8x512xf32> to vector<8x128xf32>
    %150 = arith.negf %149 : vector<8x128xf32>
    %151 = math.exp %150 : vector<8x128xf32>
    %cst_37 = arith.constant 1.000000e+00 : f32
    %152 = vector.broadcast %cst_37 : f32 to vector<8x128xf32>
    %153 = arith.addf %152, %151 : vector<8x128xf32>
    %154 = arith.divf %152, %153 : vector<8x128xf32>
    %155 = vector.extract_strided_slice %142 {offsets = [0, 256], sizes = [8, 128], strides = [1, 1]} : vector<8x512xf32> to vector<8x128xf32>
    %156 = math.tanh %155 : vector<8x128xf32>
    %157 = vector.extract_strided_slice %142 {offsets = [0, 384], sizes = [8, 128], strides = [1, 1]} : vector<8x512xf32> to vector<8x128xf32>
    %158 = arith.negf %157 : vector<8x128xf32>
    %159 = math.exp %158 : vector<8x128xf32>
    %cst_38 = arith.constant 1.000000e+00 : f32
    %160 = vector.broadcast %cst_38 : f32 to vector<8x128xf32>
    %161 = arith.addf %160, %159 : vector<8x128xf32>
    %162 = arith.divf %160, %161 : vector<8x128xf32>
    %163 = arith.mulf %154, %136 : vector<8x128xf32>
    %164 = arith.mulf %148, %156 : vector<8x128xf32>
    %165 = arith.addf %163, %164 : vector<8x128xf32>
    %166 = math.tanh %165 : vector<8x128xf32>
    %167 = arith.mulf %162, %166 : vector<8x128xf32>
    %168 = vector.extract_strided_slice %19 {offsets = [5, 0, 0], sizes = [1, 8, 512], strides = [1, 1, 1]} : vector<8x8x512xf32> to vector<1x8x512xf32>
    %169 = vector.shape_cast %168 : vector<1x8x512xf32> to vector<8x512xf32>
    %cst_39 = arith.constant dense<0.000000e+00> : vector<8x512xf32>
    %170 = tpu.matmul %167, %20, %cst_39 {dimension_numbers = #tpu.dot_dimension_numbers<[1], [0], [0], [1], [0, 0, 1, 1], [], []>} : vector<8x128xf32>, vector<128x512xf32>, vector<8x512xf32> -> vector<8x512xf32>
    %171 = arith.addf %169, %170 : vector<8x512xf32>
    %172 = vector.extract_strided_slice %171 {offsets = [0, 0], sizes = [8, 128], strides = [1, 1]} : vector<8x512xf32> to vector<8x128xf32>
    %173 = arith.negf %172 : vector<8x128xf32>
    %174 = math.exp %173 : vector<8x128xf32>
    %cst_40 = arith.constant 1.000000e+00 : f32
    %175 = vector.broadcast %cst_40 : f32 to vector<8x128xf32>
    %176 = arith.addf %175, %174 : vector<8x128xf32>
    %177 = arith.divf %175, %176 : vector<8x128xf32>
    %178 = vector.extract_strided_slice %171 {offsets = [0, 128], sizes = [8, 128], strides = [1, 1]} : vector<8x512xf32> to vector<8x128xf32>
    %179 = arith.negf %178 : vector<8x128xf32>
    %180 = math.exp %179 : vector<8x128xf32>
    %cst_41 = arith.constant 1.000000e+00 : f32
    %181 = vector.broadcast %cst_41 : f32 to vector<8x128xf32>
    %182 = arith.addf %181, %180 : vector<8x128xf32>
    %183 = arith.divf %181, %182 : vector<8x128xf32>
    %184 = vector.extract_strided_slice %171 {offsets = [0, 256], sizes = [8, 128], strides = [1, 1]} : vector<8x512xf32> to vector<8x128xf32>
    %185 = math.tanh %184 : vector<8x128xf32>
    %186 = vector.extract_strided_slice %171 {offsets = [0, 384], sizes = [8, 128], strides = [1, 1]} : vector<8x512xf32> to vector<8x128xf32>
    %187 = arith.negf %186 : vector<8x128xf32>
    %188 = math.exp %187 : vector<8x128xf32>
    %cst_42 = arith.constant 1.000000e+00 : f32
    %189 = vector.broadcast %cst_42 : f32 to vector<8x128xf32>
    %190 = arith.addf %189, %188 : vector<8x128xf32>
    %191 = arith.divf %189, %190 : vector<8x128xf32>
    %192 = arith.mulf %183, %165 : vector<8x128xf32>
    %193 = arith.mulf %177, %185 : vector<8x128xf32>
    %194 = arith.addf %192, %193 : vector<8x128xf32>
    %195 = math.tanh %194 : vector<8x128xf32>
    %196 = arith.mulf %191, %195 : vector<8x128xf32>
    %197 = vector.extract_strided_slice %19 {offsets = [6, 0, 0], sizes = [1, 8, 512], strides = [1, 1, 1]} : vector<8x8x512xf32> to vector<1x8x512xf32>
    %198 = vector.shape_cast %197 : vector<1x8x512xf32> to vector<8x512xf32>
    %cst_43 = arith.constant dense<0.000000e+00> : vector<8x512xf32>
    %199 = tpu.matmul %196, %20, %cst_43 {dimension_numbers = #tpu.dot_dimension_numbers<[1], [0], [0], [1], [0, 0, 1, 1], [], []>} : vector<8x128xf32>, vector<128x512xf32>, vector<8x512xf32> -> vector<8x512xf32>
    %200 = arith.addf %198, %199 : vector<8x512xf32>
    %201 = vector.extract_strided_slice %200 {offsets = [0, 0], sizes = [8, 128], strides = [1, 1]} : vector<8x512xf32> to vector<8x128xf32>
    %202 = arith.negf %201 : vector<8x128xf32>
    %203 = math.exp %202 : vector<8x128xf32>
    %cst_44 = arith.constant 1.000000e+00 : f32
    %204 = vector.broadcast %cst_44 : f32 to vector<8x128xf32>
    %205 = arith.addf %204, %203 : vector<8x128xf32>
    %206 = arith.divf %204, %205 : vector<8x128xf32>
    %207 = vector.extract_strided_slice %200 {offsets = [0, 128], sizes = [8, 128], strides = [1, 1]} : vector<8x512xf32> to vector<8x128xf32>
    %208 = arith.negf %207 : vector<8x128xf32>
    %209 = math.exp %208 : vector<8x128xf32>
    %cst_45 = arith.constant 1.000000e+00 : f32
    %210 = vector.broadcast %cst_45 : f32 to vector<8x128xf32>
    %211 = arith.addf %210, %209 : vector<8x128xf32>
    %212 = arith.divf %210, %211 : vector<8x128xf32>
    %213 = vector.extract_strided_slice %200 {offsets = [0, 256], sizes = [8, 128], strides = [1, 1]} : vector<8x512xf32> to vector<8x128xf32>
    %214 = math.tanh %213 : vector<8x128xf32>
    %215 = vector.extract_strided_slice %200 {offsets = [0, 384], sizes = [8, 128], strides = [1, 1]} : vector<8x512xf32> to vector<8x128xf32>
    %216 = arith.negf %215 : vector<8x128xf32>
    %217 = math.exp %216 : vector<8x128xf32>
    %cst_46 = arith.constant 1.000000e+00 : f32
    %218 = vector.broadcast %cst_46 : f32 to vector<8x128xf32>
    %219 = arith.addf %218, %217 : vector<8x128xf32>
    %220 = arith.divf %218, %219 : vector<8x128xf32>
    %221 = arith.mulf %212, %194 : vector<8x128xf32>
    %222 = arith.mulf %206, %214 : vector<8x128xf32>
    %223 = arith.addf %221, %222 : vector<8x128xf32>
    %224 = math.tanh %223 : vector<8x128xf32>
    %225 = arith.mulf %220, %224 : vector<8x128xf32>
    %226 = vector.extract_strided_slice %19 {offsets = [7, 0, 0], sizes = [1, 8, 512], strides = [1, 1, 1]} : vector<8x8x512xf32> to vector<1x8x512xf32>
    %227 = vector.shape_cast %226 : vector<1x8x512xf32> to vector<8x512xf32>
    %cst_47 = arith.constant dense<0.000000e+00> : vector<8x512xf32>
    %228 = tpu.matmul %225, %20, %cst_47 {dimension_numbers = #tpu.dot_dimension_numbers<[1], [0], [0], [1], [0, 0, 1, 1], [], []>} : vector<8x128xf32>, vector<128x512xf32>, vector<8x512xf32> -> vector<8x512xf32>
    %229 = arith.addf %227, %228 : vector<8x512xf32>
    %230 = vector.extract_strided_slice %229 {offsets = [0, 0], sizes = [8, 128], strides = [1, 1]} : vector<8x512xf32> to vector<8x128xf32>
    %231 = arith.negf %230 : vector<8x128xf32>
    %232 = math.exp %231 : vector<8x128xf32>
    %cst_48 = arith.constant 1.000000e+00 : f32
    %233 = vector.broadcast %cst_48 : f32 to vector<8x128xf32>
    %234 = arith.addf %233, %232 : vector<8x128xf32>
    %235 = arith.divf %233, %234 : vector<8x128xf32>
    %236 = vector.extract_strided_slice %229 {offsets = [0, 128], sizes = [8, 128], strides = [1, 1]} : vector<8x512xf32> to vector<8x128xf32>
    %237 = arith.negf %236 : vector<8x128xf32>
    %238 = math.exp %237 : vector<8x128xf32>
    %cst_49 = arith.constant 1.000000e+00 : f32
    %239 = vector.broadcast %cst_49 : f32 to vector<8x128xf32>
    %240 = arith.addf %239, %238 : vector<8x128xf32>
    %241 = arith.divf %239, %240 : vector<8x128xf32>
    %242 = vector.extract_strided_slice %229 {offsets = [0, 256], sizes = [8, 128], strides = [1, 1]} : vector<8x512xf32> to vector<8x128xf32>
    %243 = math.tanh %242 : vector<8x128xf32>
    %244 = vector.extract_strided_slice %229 {offsets = [0, 384], sizes = [8, 128], strides = [1, 1]} : vector<8x512xf32> to vector<8x128xf32>
    %245 = arith.negf %244 : vector<8x128xf32>
    %246 = math.exp %245 : vector<8x128xf32>
    %cst_50 = arith.constant 1.000000e+00 : f32
    %247 = vector.broadcast %cst_50 : f32 to vector<8x128xf32>
    %248 = arith.addf %247, %246 : vector<8x128xf32>
    %249 = arith.divf %247, %248 : vector<8x128xf32>
    %250 = arith.mulf %241, %223 : vector<8x128xf32>
    %251 = arith.mulf %235, %243 : vector<8x128xf32>
    %252 = arith.addf %250, %251 : vector<8x128xf32>
    %253 = math.tanh %252 : vector<8x128xf32>
    %254 = arith.mulf %249, %253 : vector<8x128xf32>
    %255 = vector.shape_cast %51 : vector<8x128xf32> to vector<1x8x128xf32>
    %256 = vector.shape_cast %80 : vector<8x128xf32> to vector<1x8x128xf32>
    %257 = vector.shape_cast %109 : vector<8x128xf32> to vector<1x8x128xf32>
    %258 = vector.shape_cast %138 : vector<8x128xf32> to vector<1x8x128xf32>
    %259 = vector.shape_cast %167 : vector<8x128xf32> to vector<1x8x128xf32>
    %260 = vector.shape_cast %196 : vector<8x128xf32> to vector<1x8x128xf32>
    %261 = vector.shape_cast %225 : vector<8x128xf32> to vector<1x8x128xf32>
    %262 = vector.shape_cast %254 : vector<8x128xf32> to vector<1x8x128xf32>
    %263 = tpu.concatenate %255, %256, %257, %258, %259, %260, %261, %262 in 0 : vector<1x8x128xf32>, vector<1x8x128xf32>, vector<1x8x128xf32>, vector<1x8x128xf32>, vector<1x8x128xf32>, vector<1x8x128xf32>, vector<1x8x128xf32>, vector<1x8x128xf32> -> vector<8x8x128xf32>
    %264 = vector.shape_cast %263 : vector<8x8x128xf32> to vector<64x128xf32>
    %c0_51 = arith.constant 0 : index
    %c0_52 = arith.constant 0 : index
    %265 = vector.load %arg6[%c0_51, %c0_52] : memref<128x128xf32, #tpu.memory_space<vmem>>, vector<128x128xf32>
    %cst_53 = arith.constant dense<0.000000e+00> : vector<64x128xf32>
    %266 = tpu.matmul %264, %265, %cst_53 {dimension_numbers = #tpu.dot_dimension_numbers<[1], [0], [0], [1], [0, 0, 1, 1], [], []>} : vector<64x128xf32>, vector<128x128xf32>, vector<64x128xf32> -> vector<64x128xf32>
    %c0_54 = arith.constant 0 : index
    %c0_55 = arith.constant 0 : index
    %267 = vector.load %arg7[%c0_54, %c0_55] : memref<1x128xf32, #tpu.memory_space<vmem>>, vector<1x128xf32>
    %268 = vector.broadcast %267 : vector<1x128xf32> to vector<64x128xf32>
    %269 = arith.addf %266, %268 : vector<64x128xf32>
    %cst_56 = arith.constant 0.000000e+00 : f32
    %270 = vector.broadcast %cst_56 : f32 to vector<64x128xf32>
    %271 = arith.maximumf %269, %270 : vector<64x128xf32>
    %c0_57 = arith.constant 0 : index
    %c0_58 = arith.constant 0 : index
    %272 = vector.load %arg8[%c0_57, %c0_58] : memref<1x128xf32, #tpu.memory_space<vmem>>, vector<1x128xf32>
    %273 = vector.broadcast %272 : vector<1x128xf32> to vector<64x128xf32>
    %274 = arith.mulf %271, %273 : vector<64x128xf32>
    %cst_59 = arith.constant dense<0.000000e+00> : vector<64xf32>
    %275 = vector.multi_reduction <add>, %274, %cst_59 [1] : vector<64x128xf32> to vector<64xf32>
    %276 = vector.shape_cast %275 : vector<64xf32> to vector<64x1xf32>
    %277 = vector.shape_cast %276 : vector<64x1xf32> to vector<8x8x1xf32>
    %cst_60 = arith.constant dense<0xFF800000> : vector<8x1xf32>
    %278 = vector.multi_reduction <maximumf>, %277, %cst_60 [0] : vector<8x8x1xf32> to vector<8x1xf32>
    %279 = vector.shape_cast %278 : vector<8x1xf32> to vector<1x8x1xf32>
    %280 = vector.broadcast %279 : vector<1x8x1xf32> to vector<8x8x1xf32>
    %281 = arith.subf %277, %280 : vector<8x8x1xf32>
    %282 = math.exp %281 : vector<8x8x1xf32>
    %cst_61 = arith.constant dense<0.000000e+00> : vector<8x1xf32>
    %283 = vector.multi_reduction <add>, %282, %cst_61 [0] : vector<8x8x1xf32> to vector<8x1xf32>
    %284 = vector.shape_cast %283 : vector<8x1xf32> to vector<1x8x1xf32>
    %285 = vector.broadcast %284 : vector<1x8x1xf32> to vector<8x8x1xf32>
    %286 = arith.divf %282, %285 : vector<8x8x1xf32>
    %287 = vector.broadcast %286 : vector<8x8x1xf32> to vector<8x8x128xf32>
    %288 = arith.mulf %263, %287 : vector<8x8x128xf32>
    %cst_62 = arith.constant dense<0.000000e+00> : vector<8x128xf32>
    %289 = vector.multi_reduction <add>, %288, %cst_62 [0] : vector<8x8x128xf32> to vector<8x128xf32>
    %c0_63 = arith.constant 0 : index
    %c0_64 = arith.constant 0 : index
    %290 = vector.load %arg9[%c0_63, %c0_64] : memref<128x128xf32, #tpu.memory_space<vmem>>, vector<128x128xf32>
    %cst_65 = arith.constant dense<0.000000e+00> : vector<8x128xf32>
    %291 = tpu.matmul %289, %290, %cst_65 {dimension_numbers = #tpu.dot_dimension_numbers<[1], [0], [0], [1], [0, 0, 1, 1], [], []>} : vector<8x128xf32>, vector<128x128xf32>, vector<8x128xf32> -> vector<8x128xf32>
    %c0_66 = arith.constant 0 : index
    %c0_67 = arith.constant 0 : index
    %292 = vector.load %arg10[%c0_66, %c0_67] : memref<1x128xf32, #tpu.memory_space<vmem>>, vector<1x128xf32>
    %293 = vector.broadcast %292 : vector<1x128xf32> to vector<8x128xf32>
    %294 = arith.addf %291, %293 : vector<8x128xf32>
    %cst_68 = arith.constant dense<0xFF800000> : vector<8xf32>
    %295 = vector.multi_reduction <maximumf>, %294, %cst_68 [1] : vector<8x128xf32> to vector<8xf32>
    %296 = vector.shape_cast %295 : vector<8xf32> to vector<8x1xf32>
    %297 = vector.broadcast %296 : vector<8x1xf32> to vector<8x128xf32>
    %298 = arith.subf %294, %297 : vector<8x128xf32>
    %299 = math.exp %298 : vector<8x128xf32>
    %cst_69 = arith.constant dense<0.000000e+00> : vector<8xf32>
    %300 = vector.multi_reduction <add>, %299, %cst_69 [1] : vector<8x128xf32> to vector<8xf32>
    %301 = vector.shape_cast %300 : vector<8xf32> to vector<8x1xf32>
    %302 = vector.broadcast %301 : vector<8x1xf32> to vector<8x128xf32>
    %303 = arith.divf %299, %302 : vector<8x128xf32>
    %304 = vector.extract_strided_slice %303 {offsets = [0, 0], sizes = [4, 3], strides = [1, 1]} : vector<8x128xf32> to vector<4x3xf32>
    %c0_70 = arith.constant 0 : index
    %c0_71 = arith.constant 0 : index
    %305 = vector.load %arg11[%c0_70, %c0_71] : memref<4x3xf32, #tpu.memory_space<vmem>>, vector<4x3xf32>
    tpu.vector_store %arg11[%c0_70, %c0_71], %304 {strides = array<i32>} : memref<4x3xf32, #tpu.memory_space<vmem>>, vector<4x3xf32>,
    return
  }
}

</mosaic_0001>

<bundles_post_ra>
// kernel: ipsrnn_forward.1
= control target key start
LH: loop header
LB: loop body
LE: loop exit
PB: predicated region body
PF: predicated region fallthrough
CT: control target
= control target key end

     0   :  { %s8340_s0 = inlined_call_operand.vmem [shape: f32[64,1152], index: 0, kind: input, shape index: {}]   ;;  %s8341_s1 = inlined_call_operand.vmem [shape: f32[1152,128], index: 1, kind: input, shape index: {}]   ;;  %s8342_s2 = inlined_call_operand.vmem [shape: f32[1152,128], index: 2, kind: input, shape index: {}]   ;;  %s8343_s3 = inlined_call_operand.vmem [shape: f32[128,512], index: 3, kind: input, shape index: {}]   ;;  %s8344_s4 = inlined_call_operand.vmem [shape: f32[128,512], index: 4, kind: input, shape index: {}]   ;;  %s8345_s5 = inlined_call_operand.vmem [shape: f32[1,512], index: 5, kind: input, shape index: {}]   ;;  %s8346_s6 = inlined_call_operand.vmem [shape: f32[128,128], index: 6, kind: input, shape index: {}]   ;;  %s8347_s7 = inlined_call_operand.vmem [shape: f32[1,128], index: 7, kind: input, shape index: {}]   ;;  %s8348_s8 = inlined_call_operand.vmem [shape: f32[1,128], index: 8, kind: input, shape index: {}]   ;;  %s8349_s9 = inlined_call_operand.vmem [shape: f32[128,128], index: 9, kind: input, shape index: {}]   ;;  %s8350_s10 = inlined_call_operand.vmem [shape: f32[1,128], index: 10, kind: input, shape index: {}]   ;;  %s8351_s11 = inlined_call_operand.hbm [shape: f32[4,3], index: 11, kind: output, shape index: {}]  }
   0x1   :  { %v487_v0 = vld [vmem:[%s8342_s2 + $0x80] sm:$0xff]  ;;  %v488_v1 = vld [vmem:[%s8342_s2 + $0x88] sm:$0xff]  ;;  %v489_v5 = vld [vmem:[%s8342_s2 + $0x90] sm:$0xff] }
   0x2   :  { %v471_v2 = vld [vmem:[%s8342_s2] sm:$0xff]  ;;  %v4487_v3 = vpack.c.bf16 %v488_v1, %v487_v0  ;;  %v472_v4 = vld [vmem:[%s8342_s2 + $0x8] sm:$0xff]  ;;  %v490_v6 = vld [vmem:[%s8342_s2 + $0x98] sm:$0xff] }
   0x3   :  { %v4489_v7 = vpack.c.bf16 %v472_v4, %v471_v2  ;;  %v4491_v8 = vpack.c.bf16 %v490_v6, %v489_v5  ;;  %v473_v9 = vld [vmem:[%s8342_s2 + $0x10] sm:$0xff]  ;;  %v474_v10 = vld [vmem:[%s8342_s2 + $0x18] sm:$0xff]  ;;  %v491_v11 = vld [vmem:[%s8342_s2 + $0xa0] sm:$0xff] }
   0x4   :  { %4488 = vmatprep.subr.bf16.mxu0 %v4487_v3  ;;  %v492_v12 = vld [vmem:[%s8342_s2 + $0xa8] sm:$0xff]  ;;  %v4493_v13 = vpack.c.bf16 %v474_v10, %v473_v9  ;;  %v475_v15 = vld [vmem:[%s8342_s2 + $0x20] sm:$0xff]  ;;  %v493_v17 = vld [vmem:[%s8342_s2 + $0xb0] sm:$0xff] }
   0x5   :  { %4490 = vmatpush3.bf16.msra.mxu0 %v4489_v7  ;;  %v4495_v14 = vpack.c.bf16 %v492_v12, %v491_v11  ;;  %v476_v16 = vld [vmem:[%s8342_s2 + $0x28] sm:$0xff]  ;;  %v494_v18 = vld [vmem:[%s8342_s2 + $0xb8] sm:$0xff]  ;;  %v477_v21 = vld [vmem:[%s8342_s2 + $0x30] sm:$0xff] }
   0x6   :  { %4492 = vmatprep.subr.bf16.mxu0 %v4491_v8  ;;  %v4497_v19 = vpack.c.bf16 %v476_v16, %v475_v15  ;;  %v4499_v20 = vpack.c.bf16 %v494_v18, %v493_v17  ;;  %v478_v22 = vld [vmem:[%s8342_s2 + $0x38] sm:$0xff]  ;;  %v495_v23 = vld [vmem:[%s8342_s2 + $0xc0] sm:$0xff]  ;;  %v496_v24 = vld [vmem:[%s8342_s2 + $0xc8] sm:$0xff] }
   0x7   :  { %v40_v25 = vld [vmem:[%s8340_s0 + $0x8] sm:$0xff]  ;;  %v4501_v27 = vpack.c.bf16 %v478_v22, %v477_v21  ;;  %v4503_v28 = vpack.c.bf16 %v496_v24, %v495_v23  ;;  %v479_v29 = vld [vmem:[%s8342_s2 + $0x40] sm:$0xff]  ;;  %v497_v32 = vld [vmem:[%s8342_s2 + $0xd0] sm:$0xff] }
   0x8   :  { %v184_v26 = vsub.f32 0.0, %v40_v25  ;;  %v480_v30 = vld [vmem:[%s8342_s2 + $0x48] sm:$0xff]  ;;  %v498_v33 = vld [vmem:[%s8342_s2 + $0xd8] sm:$0xff]  ;;  %v481_v36 = vld [vmem:[%s8342_s2 + $0x50] sm:$0xff] }
   0x9   :  { %4494 = vmatpush3.bf16.msra.mxu0 %v4493_v13  ;;  %v4505_v34 = vpack.c.bf16 %v480_v30, %v479_v29  ;;  %v4507_v35 = vpack.c.bf16 %v498_v33, %v497_v32  ;;  %v482_v37 = vld [vmem:[%s8342_s2 + $0x58] sm:$0xff]  ;;  %v499_v38 = vld [vmem:[%s8342_s2 + $0xe0] sm:$0xff]  ;;  %v500_v39 = vld [vmem:[%s8342_s2 + $0xe8] sm:$0xff] }
   0xa   :  { %4496 = vmatprep.subr.bf16.mxu0 %v4495_v14  ;;  %v256_v31 = vmax.f32 %v184_v26, 0.0  ;;  %v4509_v40 = vpack.c.bf16 %v482_v37, %v481_v36  ;;  %v4511_v41 = vpack.c.bf16 %v500_v39, %v499_v38  ;;  %v483_v42 = vld [vmem:[%s8342_s2 + $0x60] sm:$0xff]  ;;  %v484_v43 = vld [vmem:[%s8342_s2 + $0x68] sm:$0xff]  ;;  %v501_v44 = vld [vmem:[%s8342_s2 + $0xf0] sm:$0xff] }
   0xb   :  { %v502_v45 = vld [vmem:[%s8342_s2 + $0xf8] sm:$0xff]  ;;  %v4513_v46 = vpack.c.bf16 %v484_v43, %v483_v42  ;;  %v39_v47 = vld [vmem:[%s8340_s0] sm:$0xff]  ;;  %v485_v49 = vld [vmem:[%s8342_s2 + $0x70] sm:$0xff] }
   0xc   :  { %679 = vmatprep.mubr.f32.mxu0 %v256_v31  ;;  %v4515_v48 = vpack.c.bf16 %v502_v45, %v501_v44  ;;  %v486_v50 = vld [vmem:[%s8342_s2 + $0x78] sm:$0xff]  ;;  %v49_v51 = vld [vmem:[%s8340_s0 + $0x50] sm:$0xff]  ;;  %v519_v52 = vld [vmem:[%s8342_s2 + $0x180] sm:$0xff]  ;;  %v183_v54 = vsub.f32 0.0, %v39_v47 }
   0xd   :  { %4498 = vmatpush3.bf16.msra.mxu0 %v4497_v19  ;;  %v520_v53 = vld [vmem:[%s8342_s2 + $0x188] sm:$0xff]  ;;  %v4517_v55 = vpack.c.bf16 %v486_v50, %v485_v49  ;;  %v193_v56 = vsub.f32 0.0, %v49_v51  ;;  %v503_v59 = vld [vmem:[%s8342_s2 + $0x100] sm:$0xff]  ;;  %v58_v61 = vld [vmem:[%s8340_s0 + $0x98] sm:$0xff] }
   0xe   :  { %4500 = vmatprep.subr.bf16.mxu0 %v4499_v20  ;;  %v48_v57 = vld [vmem:[%s8340_s0 + $0x48] sm:$0xff]  ;;  %v4519_v58 = vpack.c.bf16 %v520_v53, %v519_v52  ;;  %v521_v62 = vld [vmem:[%s8342_s2 + $0x190] sm:$0xff]  ;;  %v522_v63 = vld [vmem:[%s8342_s2 + $0x198] sm:$0xff]  ;;  %v255_v0 = vmax.f32 %v183_v54, 0.0  ;;  %v202_v4 = vsub.f32 0.0, %v58_v61 }
   0xf   :  { %v504_v60 = vld [vmem:[%s8342_s2 + $0x108] sm:$0xff]  ;;  %v192_v1 = vsub.f32 0.0, %v48_v57  ;;  %v265_v3 = vmax.f32 %v193_v56, 0.0  ;;  %v57_v5 = vld [vmem:[%s8340_s0 + $0x90] sm:$0xff]  ;;  %v4523_v6 = vpack.c.bf16 %v522_v63, %v521_v62  ;;  %v506_v8 = vld [vmem:[%s8342_s2 + $0x118] sm:$0xff] }
  0x10   :  { %v4521_v2 = vpack.c.bf16 %v504_v60, %v503_v59  ;;  %v505_v7 = vld [vmem:[%s8342_s2 + $0x110] sm:$0xff]  ;;  %v67_v9 = vld [vmem:[%s8340_s0 + $0xe0] sm:$0xff]  ;;  %v524_v11 = vld [vmem:[%s8342_s2 + $0x1a8] sm:$0xff]  ;;  %v201_v13 = vsub.f32 0.0, %v57_v5  ;;  %v274_v15 = vmax.f32 %v202_v4, 0.0 }
  0x11   :  { %4502 = vmatpush3.bf16.msra.mxu0 %v4501_v27  ;;  %v523_v10 = vld [vmem:[%s8342_s2 + $0x1a0] sm:$0xff]  ;;  %v264_v12 = vmax.f32 %v192_v1, 0.0  ;;  %v4525_v14 = vpack.c.bf16 %v506_v8, %v505_v7  ;;  %v211_v16 = vsub.f32 0.0, %v67_v9  ;;  %v66_v17 = vld [vmem:[%s8340_s0 + $0xd8] sm:$0xff]  ;;  %v508_v20 = vld [vmem:[%s8342_s2 + $0x128] sm:$0xff] }
  0x12   :  { %4504 = vmatprep.subr.bf16.mxu0 %v4503_v28  ;;  %v4527_v18 = vpack.c.bf16 %v524_v11, %v523_v10  ;;  %v507_v19 = vld [vmem:[%s8342_s2 + $0x120] sm:$0xff]  ;;  %v76_v21 = vld [vmem:[%s8340_s0 + $0x128] sm:$0xff]  ;;  %v525_v22 = vld [vmem:[%s8342_s2 + $0x1b0] sm:$0xff]  ;;  %v273_v24 = vmax.f32 %v201_v13, 0.0  ;;  %v210_v25 = vsub.f32 0.0, %v66_v17 }
  0x13   :  { %v526_v23 = vld [vmem:[%s8342_s2 + $0x1b8] sm:$0xff]  ;;  %v4529_v26 = vpack.c.bf16 %v508_v20, %v507_v19  ;;  %v283_v27 = vmax.f32 %v211_v16, 0.0  ;;  %v220_v28 = vsub.f32 0.0, %v76_v21  ;;  %v75_v29 = vld [vmem:[%s8340_s0 + $0x120] sm:$0xff]  ;;  %v509_v31 = vld [vmem:[%s8342_s2 + $0x130] sm:$0xff] }
  0x14   :  { %v4531_v30 = vpack.c.bf16 %v526_v23, %v525_v22  ;;  %v510_v32 = vld [vmem:[%s8342_s2 + $0x138] sm:$0xff]  ;;  %v85_v33 = vld [vmem:[%s8340_s0 + $0x170] sm:$0xff]  ;;  %v282_v36 = vmax.f32 %v210_v25, 0.0  ;;  %v219_v37 = vsub.f32 0.0, %v75_v29  ;;  %v511_v43 = vld [vmem:[%s8342_s2 + $0x140] sm:$0xff] }
  0x15   :  { %4506 = vmatpush3.bf16.msra.mxu0 %v4505_v34  ;;  %v527_v34 = vld [vmem:[%s8342_s2 + $0x1c0] sm:$0xff]  ;;  %v4533_v38 = vpack.c.bf16 %v510_v32, %v509_v31  ;;  %v292_v39 = vmax.f32 %v220_v28, 0.0  ;;  %v512_v44 = vld [vmem:[%s8342_s2 + $0x148] sm:$0xff]  ;;  %v94_v45 = vld [vmem:[%s8340_s0 + $0x1b8] sm:$0xff] }
  0x16   :  { %4508 = vmatprep.subr.bf16.mxu0 %v4507_v35  ;;  %v528_v35 = vld [vmem:[%s8342_s2 + $0x1c8] sm:$0xff]  ;;  %v530_v47 = vld [vmem:[%s8342_s2 + $0x1d8] sm:$0xff]  ;;  %v4537_v50 = vpack.c.bf16 %v512_v44, %v511_v43  ;;  %v238_v52 = vsub.f32 0.0, %v94_v45  ;;  %v93_v53 = vld [vmem:[%s8340_s0 + $0x1b0] sm:$0xff] }
  0x17   :  { %v4535_v42 = vpack.c.bf16 %v528_v35, %v527_v34  ;;  %v514_v56 = vld [vmem:[%s8342_s2 + $0x158] sm:$0xff]  ;;  %v103_v57 = vld [vmem:[%s8340_s0 + $0x200] sm:$0xff]  ;;  %v532_v59 = vld [vmem:[%s8342_s2 + $0x1e8] sm:$0xff]  ;;  %v237_v61 = vsub.f32 0.0, %v93_v53 }
  0x18   :  { %v310_v63 = vmax.f32 %v238_v52, 0.0  ;;  %v102_v1 = vld [vmem:[%s8340_s0 + $0x1f8] sm:$0xff]  ;;  %v516_v4 = vld [vmem:[%s8342_s2 + $0x168] sm:$0xff]  ;;  %v41_v13 = vld [vmem:[%s8340_s0 + $0x10] sm:$0xff] }
  0x19   :  { %4510 = vmatpush3.bf16.msra.mxu0 %v4509_v40  ;;  %v229_v40 = vsub.f32 0.0, %v85_v33  ;;  %v42_v5 = vld [vmem:[%s8340_s0 + $0x18] sm:$0xff]  ;;  %v309_v8 = vmax.f32 %v237_v61, 0.0  ;;  %v246_v9 = vsub.f32 0.0, %v102_v1  ;;  %v51_v17 = vld [vmem:[%s8340_s0 + $0x60] sm:$0xff]  ;;  %v552_v19 = vld [vmem:[%s8342_s2 + $0x288] sm:$0xff] }
  0x1a   :  { %4512 = vmatprep.subr.bf16.mxu0 %v4511_v41  ;;  %v84_v41 = vld [vmem:[%s8340_s0 + $0x168] sm:$0xff]  ;;  %v534_v7 = vld [vmem:[%s8342_s2 + $0x1f8] sm:$0xff]  ;;  %v185_v21 = vsub.f32 0.0, %v41_v13  ;;  %v77_v61 = vld [vmem:[%s8340_s0 + $0x130] sm:$0xff] }
  0x1b   :  { %v228_v49 = vsub.f32 0.0, %v84_v41  ;;  %v301_v51 = vmax.f32 %v229_v40, 0.0  ;;  %v518_v16 = vld [vmem:[%s8342_s2 + $0x178] sm:$0xff]  ;;  %v318_v20 = vmax.f32 %v246_v9, 0.0  ;;  %v536_v28 = vld [vmem:[%s8342_s2 + $0x208] sm:$0xff]  ;;  %v69_v41 = vld [vmem:[%s8340_s0 + $0xf0] sm:$0xff] }
  0x1c   :  { %v50_v25 = vld [vmem:[%s8340_s0 + $0x58] sm:$0xff]  ;;  %v60_v29 = vld [vmem:[%s8340_s0 + $0xa8] sm:$0xff]  ;;  %v257_v32 = vmax.f32 %v185_v21, 0.0  ;;  %v87_v1 = vld [vmem:[%s8340_s0 + $0x180] sm:$0xff] }
  0x1d   :  { %4514 = vmatpush3.bf16.msra.mxu0 %v4513_v46  ;;  %v529_v46 = vld [vmem:[%s8342_s2 + $0x1d0] sm:$0xff]  ;;  %v300_v60 = vmax.f32 %v228_v49, 0.0  ;;  %v554_v31 = vld [vmem:[%s8342_s2 + $0x298] sm:$0xff]  ;;  %v194_v33 = vsub.f32 0.0, %v50_v25  ;;  %v556_v43 = vld [vmem:[%s8342_s2 + $0x2a8] sm:$0xff] }
  0x1e   :  { %4516 = vmatprep.subr.bf16.mxu0 %v4515_v48  ;;  %v291_v48 = vmax.f32 %v219_v37, 0.0  ;;  %v4539_v54 = vpack.c.bf16 %v530_v47, %v529_v46  ;;  %v59_v37 = vld [vmem:[%s8340_s0 + $0xa0] sm:$0xff]  ;;  %v538_v40 = vld [vmem:[%s8342_s2 + $0x218] sm:$0xff]  ;;  %v68_v49 = vld [vmem:[%s8340_s0 + $0xe8] sm:$0xff] }
  0x1f   :  { %v266_v44 = vmax.f32 %v194_v33, 0.0  ;;  %v203_v45 = vsub.f32 0.0, %v59_v37  ;;  %v540_v52 = vld [vmem:[%s8342_s2 + $0x228] sm:$0xff]  ;;  %v78_v53 = vld [vmem:[%s8340_s0 + $0x138] sm:$0xff]  ;;  %v95_v21 = vld [vmem:[%s8340_s0 + $0x1c0] sm:$0xff] }
  0x20   :  { %v86_v9 = vld [vmem:[%s8340_s0 + $0x178] sm:$0xff]  ;;  %v96_v13 = vld [vmem:[%s8340_s0 + $0x1c8] sm:$0xff]  ;;  %v105_v25 = vld [vmem:[%s8340_s0 + $0x210] sm:$0xff] }
  0x21   :  { %4518 = vmatpush3.bf16.msra.mxu0 %v4517_v55  ;;  %v513_v55 = vld [vmem:[%s8342_s2 + $0x150] sm:$0xff]  ;;  %v104_v33 = vld [vmem:[%s8340_s0 + $0x208] sm:$0xff] }
  0x22   :  { %4520 = vmatprep.subr.bf16.mxu0 %v4519_v58  ;;  %v531_v58 = vld [vmem:[%s8342_s2 + $0x1e0] sm:$0xff]  ;;  %v4541_v62 = vpack.c.bf16 %v514_v56, %v513_v55  ;;  %v558_v55 = vld [vmem:[%s8342_s2 + $0x2b8] sm:$0xff]  ;;  %v275_v56 = vmax.f32 %v203_v45, 0.0  ;;  %v44_v37 = vld [vmem:[%s8340_s0 + $0x28] sm:$0xff] }
  0x23   :  { %v43_v45 = vld [vmem:[%s8340_s0 + $0x20] sm:$0xff] }
  0x24   :  { %680 = vmatmul.mubr.f32.vlgmr.msra.gmra.mrb[0].mxu0 %v255_v0  ;;  %v247_v0 = vsub.f32 0.0, %v103_v57  ;;  %v212_v57 = vsub.f32 0.0, %v68_v49  ;;  %v53_v49 = vld [vmem:[%s8340_s0 + $0x70] sm:$0xff] }
  0x25   :  { %4522 = vmatpush3.bf16.msra.mxu0 %v4521_v2  ;;  %684 = vmatprep.mubr.f32.mxu0 %v265_v3  ;;  %v4543_v2 = vpack.c.bf16 %v532_v59, %v531_v58  ;;  %v515_v3 = vld [vmem:[%s8342_s2 + $0x160] sm:$0xff] }
  0x26   :  { %4524 = vmatprep.subr.bf16.mxu0 %v4523_v6  ;;  %v533_v6 = vld [vmem:[%s8342_s2 + $0x1f0] sm:$0xff]  ;;  %v4545_v10 = vpack.c.bf16 %v516_v4, %v515_v3  ;;  %v319_v11 = vmax.f32 %v247_v0, 0.0  ;;  %v542_v0 = vld [vmem:[%s8342_s2 + $0x238] sm:$0xff]  ;;  %v560_v3 = vld [vmem:[%s8342_s2 + $0x2c8] sm:$0xff]  ;;  %v284_v4 = vmax.f32 %v212_v57, 0.0 }
  0x27   :  { %v52_v57 = vld [vmem:[%s8340_s0 + $0x68] sm:$0xff] }
  0x28   :  { %685 = vmatmul.mubr.f32.gmra.mrb[2].mxu0 %v264_v12  ;;  %v186_v12 = vsub.f32 0.0, %v42_v5  ;;  %v221_v5 = vsub.f32 0.0, %v77_v61 }
  0x29   :  { %4526 = vmatpush3.bf16.msra.mxu0 %v4525_v14  ;;  %689 = vmatprep.mubr.f32.mxu0 %v274_v15  ;;  %v4547_v14 = vpack.c.bf16 %v534_v7, %v533_v6  ;;  %v517_v15 = vld [vmem:[%s8342_s2 + $0x170] sm:$0xff] }
  0x2a   :  { %4528 = vmatprep.subr.bf16.mxu0 %v4527_v18  ;;  %v551_v18 = vld [vmem:[%s8342_s2 + $0x280] sm:$0xff]  ;;  %v4549_v22 = vpack.c.bf16 %v518_v16, %v517_v15  ;;  %v258_v23 = vmax.f32 %v186_v12, 0.0  ;;  %v544_v12 = vld [vmem:[%s8342_s2 + $0x248] sm:$0xff]  ;;  %v562_v15 = vld [vmem:[%s8342_s2 + $0x2d8] sm:$0xff]  ;;  %v293_v16 = vmax.f32 %v221_v5, 0.0 }
  0x2c   :  { %690 = vmatmul.mubr.f32.gmra.mrb[4].mxu0 %v273_v24  ;;  %v195_v24 = vsub.f32 0.0, %v51_v17  ;;  %v230_v17 = vsub.f32 0.0, %v86_v9 }
  0x2d   :  { %4530 = vmatpush3.bf16.msra.mxu0 %v4529_v26  ;;  %694 = vmatprep.mubr.f32.mxu0 %v283_v27  ;;  %v4551_v26 = vpack.c.bf16 %v552_v19, %v551_v18  ;;  %v535_v27 = vld [vmem:[%s8342_s2 + $0x200] sm:$0xff] }
  0x2e   :  { %4532 = vmatprep.subr.bf16.mxu0 %v4531_v30  ;;  %v553_v30 = vld [vmem:[%s8342_s2 + $0x290] sm:$0xff]  ;;  %v4553_v34 = vpack.c.bf16 %v536_v28, %v535_v27  ;;  %v267_v35 = vmax.f32 %v195_v24, 0.0  ;;  %v546_v24 = vld [vmem:[%s8342_s2 + $0x258] sm:$0xff]  ;;  %v564_v27 = vld [vmem:[%s8342_s2 + $0x2e8] sm:$0xff]  ;;  %v302_v28 = vmax.f32 %v230_v17, 0.0 }
  0x30   :  { %695 = vmatmul.mubr.f32.gmra.mrb[6].mxu0 %v282_v36  ;;  %v204_v36 = vsub.f32 0.0, %v60_v29  ;;  %v239_v29 = vsub.f32 0.0, %v95_v21 }
  0x31   :  { %4534 = vmatpush3.bf16.msra.mxu0 %v4533_v38  ;;  %699 = vmatprep.mubr.f32.mxu0 %v292_v39  ;;  %v4555_v38 = vpack.c.bf16 %v554_v31, %v553_v30  ;;  %v537_v39 = vld [vmem:[%s8342_s2 + $0x210] sm:$0xff] }
  0x32   :  { %4536 = vmatprep.subr.bf16.mxu0 %v4535_v42  ;;  %v555_v42 = vld [vmem:[%s8342_s2 + $0x2a0] sm:$0xff]  ;;  %v4557_v46 = vpack.c.bf16 %v538_v40, %v537_v39  ;;  %v276_v47 = vmax.f32 %v204_v36, 0.0  ;;  %v548_v36 = vld [vmem:[%s8342_s2 + $0x268] sm:$0xff]  ;;  %v566_v39 = vld [vmem:[%s8342_s2 + $0x2f8] sm:$0xff]  ;;  %v311_v40 = vmax.f32 %v239_v29, 0.0 }
  0x34   :  { %700 = vmatmul.mubr.f32.gmra.mrb[8].mxu0 %v291_v48  ;;  %v213_v48 = vsub.f32 0.0, %v69_v41  ;;  %v248_v41 = vsub.f32 0.0, %v104_v33 }
  0x35   :  { %4538 = vmatpush3.bf16.msra.mxu0 %v4537_v50  ;;  %704 = vmatprep.mubr.f32.mxu0 %v301_v51  ;;  %v4559_v50 = vpack.c.bf16 %v556_v43, %v555_v42  ;;  %v539_v51 = vld [vmem:[%s8342_s2 + $0x220] sm:$0xff] }
  0x36   :  { %4540 = vmatprep.subr.bf16.mxu0 %v4539_v54  ;;  %v557_v54 = vld [vmem:[%s8342_s2 + $0x2b0] sm:$0xff]  ;;  %v4561_v58 = vpack.c.bf16 %v540_v52, %v539_v51  ;;  %v285_v59 = vmax.f32 %v213_v48, 0.0  ;;  %v550_v48 = vld [vmem:[%s8342_s2 + $0x278] sm:$0xff]  ;;  %v584_v51 = vld [vmem:[%s8342_s2 + $0x388] sm:$0xff]  ;;  %v320_v52 = vmax.f32 %v248_v41, 0.0 }
  0x38   :  { %705 = vmatmul.mubr.f32.gmra.mrb[10].mxu0 %v300_v60  ;;  %v222_v60 = vsub.f32 0.0, %v78_v53  ;;  %v187_v53 = vsub.f32 0.0, %v43_v45 }
  0x39   :  { %4542 = vmatpush3.bf16.msra.mxu0 %v4541_v62  ;;  %709 = vmatprep.mubr.f32.mxu0 %v310_v63  ;;  %v4563_v62 = vpack.c.bf16 %v558_v55, %v557_v54  ;;  %v541_v63 = vld [vmem:[%s8342_s2 + $0x230] sm:$0xff] }
  0x3a   :  { %4544 = vmatprep.subr.bf16.mxu0 %v4543_v2  ;;  %v559_v2 = vld [vmem:[%s8342_s2 + $0x2c0] sm:$0xff]  ;;  %v4565_v6 = vpack.c.bf16 %v542_v0, %v541_v63  ;;  %v294_v7 = vmax.f32 %v222_v60, 0.0 }
  0x3c   :  { %710 = vmatmul.mubr.f32.gmra.mrb[12].mxu0 %v309_v8  ;;  %v231_v8 = vsub.f32 0.0, %v87_v1 }
  0x3d   :  { %4546 = vmatpush3.bf16.msra.mxu0 %v4545_v10  ;;  %714 = vmatprep.mubr.f32.mxu0 %v319_v11  ;;  %v4567_v10 = vpack.c.bf16 %v560_v3, %v559_v2  ;;  %v543_v11 = vld [vmem:[%s8342_s2 + $0x240] sm:$0xff] }
  0x3e   :  { %4548 = vmatprep.subr.bf16.mxu0 %v4547_v14  ;;  %v561_v14 = vld [vmem:[%s8342_s2 + $0x2d0] sm:$0xff]  ;;  %v4569_v18 = vpack.c.bf16 %v544_v12, %v543_v11  ;;  %v303_v19 = vmax.f32 %v231_v8, 0.0 }
  0x40   :  { %715 = vmatmul.mubr.f32.gmra.mrb[14].mxu0 %v318_v20  ;;  %v240_v20 = vsub.f32 0.0, %v96_v13 }
  0x41   :  { %4550 = vmatpush3.bf16.msra.mxu0 %v4549_v22  ;;  %784 = vmatprep.mubr.f32.mxu0 %v258_v23  ;;  %v4571_v22 = vpack.c.bf16 %v562_v15, %v561_v14  ;;  %v545_v23 = vld [vmem:[%s8342_s2 + $0x250] sm:$0xff] }
  0x42   :  { %4552 = vmatprep.subr.bf16.mxu0 %v4551_v26  ;;  %v563_v26 = vld [vmem:[%s8342_s2 + $0x2e0] sm:$0xff]  ;;  %v4573_v30 = vpack.c.bf16 %v546_v24, %v545_v23  ;;  %v312_v31 = vmax.f32 %v240_v20, 0.0 }
  0x44   :  { %785 = vmatmul.mubr.f32.vlgmr.msra.gmra.mrb[16].mxu0 %v257_v32  ;;  %v249_v32 = vsub.f32 0.0, %v105_v25 }
  0x45   :  { %4554 = vmatpush3.bf16.msra.mxu0 %v4553_v34  ;;  %789 = vmatprep.mubr.f32.mxu0 %v267_v35  ;;  %v4575_v34 = vpack.c.bf16 %v564_v27, %v563_v26  ;;  %v547_v35 = vld [vmem:[%s8342_s2 + $0x260] sm:$0xff] }
  0x46   :  { %4556 = vmatprep.subr.bf16.mxu0 %v4555_v38  ;;  %v565_v38 = vld [vmem:[%s8342_s2 + $0x2f0] sm:$0xff]  ;;  %v4577_v42 = vpack.c.bf16 %v548_v36, %v547_v35  ;;  %v321_v43 = vmax.f32 %v249_v32, 0.0 }
  0x48   :  { %790 = vmatmul.mubr.f32.gmra.mrb[18].mxu0 %v266_v44  ;;  %v188_v44 = vsub.f32 0.0, %v44_v37 }
  0x49   :  { %4558 = vmatpush3.bf16.msra.mxu0 %v4557_v46  ;;  %794 = vmatprep.mubr.f32.mxu0 %v276_v47  ;;  %v4579_v46 = vpack.c.bf16 %v566_v39, %v565_v38  ;;  %v549_v47 = vld [vmem:[%s8342_s2 + $0x270] sm:$0xff] }
  0x4a   :  { %4560 = vmatprep.subr.bf16.mxu0 %v4559_v50  ;;  %v583_v50 = vld [vmem:[%s8342_s2 + $0x380] sm:$0xff]  ;;  %v4581_v54 = vpack.c.bf16 %v550_v48, %v549_v47  ;;  %v260_v55 = vmax.f32 %v188_v44, 0.0 }
  0x4c   :  { %795 = vmatmul.mubr.f32.gmra.mrb[20].mxu0 %v275_v56  ;;  %v197_v56 = vsub.f32 0.0, %v53_v49 }
  0x4d   :  { %4562 = vmatpush3.bf16.msra.mxu0 %v4561_v58  ;;  %799 = vmatprep.mubr.f32.mxu0 %v285_v59 }
  0x4e   :  { %4564 = vmatprep.subr.bf16.mxu0 %v4563_v62 }
  0x50   :  { %800 = vmatmul.mubr.f32.gmra.mrb[22].mxu0 %v284_v4 }
  0x51   :  { %4566 = vmatpush3.bf16.msra.mxu0 %v4565_v6  ;;  %804 = vmatprep.mubr.f32.mxu0 %v294_v7 }
  0x52   :  { %4568 = vmatprep.subr.bf16.mxu0 %v4567_v10 }
  0x54   :  { %805 = vmatmul.mubr.f32.gmra.mrb[24].mxu0 %v293_v16 }
  0x55   :  { %4570 = vmatpush3.bf16.msra.mxu0 %v4569_v18  ;;  %809 = vmatprep.mubr.f32.mxu0 %v303_v19 }
  0x56   :  { %4572 = vmatprep.subr.bf16.mxu0 %v4571_v22 }
  0x58   :  { %810 = vmatmul.mubr.f32.gmra.mrb[26].mxu0 %v302_v28 }
  0x59   :  { %4574 = vmatpush3.bf16.msra.mxu0 %v4573_v30  ;;  %814 = vmatprep.mubr.f32.mxu0 %v312_v31 }
  0x5a   :  { %4576 = vmatprep.subr.bf16.mxu0 %v4575_v34 }
  0x5c   :  { %815 = vmatmul.mubr.f32.gmra.mrb[28].mxu0 %v311_v40 }
  0x5d   :  { %4578 = vmatpush3.bf16.msra.mxu0 %v4577_v42  ;;  %819 = vmatprep.mubr.f32.mxu0 %v321_v43 }
  0x5e   :  { %16 = vsyncpa [#allocation3], 0  ;;  %4580 = vmatprep.subr.bf16.mxu0 %v4579_v46  ;;  %v4583_v58 = vpack.c.bf16 %v584_v51, %v583_v50  ;;  %v567_v59 = vld [vmem:[%s8342_s2 + $0x300] sm:$0xff]  ;;  %v568_v60 = vld [vmem:[%s8342_s2 + $0x308] sm:$0xff]  ;;  %v259_v0 = vmax.f32 %v187_v53, 0.0  ;;  %v196_v1 = vsub.f32 0.0, %v52_v57 }
  0x5f   :  { %v62_v61 = vld [vmem:[%s8340_s0 + $0xb8] sm:$0xff]  ;;  %v585_v62 = vld [vmem:[%s8342_s2 + $0x390] sm:$0xff]  ;;  %v4585_v2 = vpack.c.bf16 %v568_v60, %v567_v59  ;;  %v269_v3 = vmax.f32 %v197_v56, 0.0  ;;  %v71_v9 = vld [vmem:[%s8340_s0 + $0x100] sm:$0xff]  ;;  %vm5802_vm0 = vmmov 0   ;;  %s5803_s20 = smov [#allocation2]  }
  0x60   :  { %v586_v63 = vld [vmem:[%s8342_s2 + $0x398] sm:$0xff]  ;;  %820 = vmatmul.mubr.f32.gmra.mrb[30].mxu0 %v320_v52  ;;  %v206_v4 = vsub.f32 0.0, %v62_v61  ;;  %v61_v5 = vld [vmem:[%s8340_s0 + $0xb0] sm:$0xff]  ;;  %v587_v10 = vld [vmem:[%s8342_s2 + $0x3a0] sm:$0xff]  ;;  %v268_v12 = vmax.f32 %v196_v1, 0.0  ;;  %v215_v16 = vsub.f32 0.0, %v71_v9 }
  0x61   :  { %4582 = vmatpush3.bf16.msra.mxu0 %v4581_v54  ;;  %889 = vmatprep.mubr.f32.mxu0 %v260_v55  ;;  %v4587_v6 = vpack.c.bf16 %v586_v63, %v585_v62  ;;  %v569_v7 = vld [vmem:[%s8342_s2 + $0x310] sm:$0xff]  ;;  %v570_v8 = vld [vmem:[%s8342_s2 + $0x318] sm:$0xff]  ;;  %v588_v11 = vld [vmem:[%s8342_s2 + $0x3a8] sm:$0xff]  ;;  %v205_v13 = vsub.f32 0.0, %v61_v5  ;;  %s3748_s21 = sshll.u32 %s5803_s20, 4  ;;  %vm3740_vm1 = vcmask 19456   ;;  %s3749_s21 = int_to_ptr.vmem [resolvable:$true] %s3748_s21 }
  0x62   :  { %4584 = vmatprep.subr.bf16.mxu0 %v4583_v58  ;;  %v4589_v14 = vpack.c.bf16 %v570_v8, %v569_v7  ;;  %v278_v15 = vmax.f32 %v206_v4, 0.0  ;;  %v70_v17 = vld [vmem:[%s8340_s0 + $0xf8] sm:$0xff]  ;;  %v4591_v18 = vpack.c.bf16 %v588_v11, %v587_v10  ;;  %v571_v19 = vld [vmem:[%s8342_s2 + $0x320] sm:$0xff]  ;;  %v572_v20 = vld [vmem:[%s8342_s2 + $0x328] sm:$0xff]  ;;  %v287_v27 = vmax.f32 %v215_v16, 0.0  ;;  %p5781_p1 = scmp.lt.s32.totalorder %s3749_s21, %s3749_s21 }
  0x63   :  { %v80_v21 = vld [vmem:[%s8340_s0 + $0x148] sm:$0xff]  ;;  %v589_v22 = vld [vmem:[%s8342_s2 + $0x3b0] sm:$0xff]  ;;  %v590_v23 = vld [vmem:[%s8342_s2 + $0x3b8] sm:$0xff]  ;;  %v277_v24 = vmax.f32 %v205_v13, 0.0  ;;  %v214_v25 = vsub.f32 0.0, %v70_v17  ;;  %v4593_v26 = vpack.c.bf16 %v572_v20, %v571_v19 }
  0x64   :  { %890 = vmatmul.mubr.f32.vlgmr.msra.gmra.mrb[32].mxu0 %v259_v0  ;;  %v224_v28 = vsub.f32 0.0, %v80_v21  ;;  %v79_v29 = vld [vmem:[%s8340_s0 + $0x140] sm:$0xff]  ;;  %v4595_v30 = vpack.c.bf16 %v590_v23, %v589_v22  ;;  %v573_v31 = vld [vmem:[%s8342_s2 + $0x330] sm:$0xff]  ;;  %v574_v32 = vld [vmem:[%s8342_s2 + $0x338] sm:$0xff] }
  0x65   :  { %4586 = vmatpush3.bf16.msra.mxu0 %v4585_v2  ;;  %894 = vmatprep.mubr.f32.mxu0 %v269_v3  ;;  %v89_v33 = vld [vmem:[%s8340_s0 + $0x190] sm:$0xff]  ;;  %v591_v34 = vld [vmem:[%s8342_s2 + $0x3c0] sm:$0xff]  ;;  %v592_v35 = vld [vmem:[%s8342_s2 + $0x3c8] sm:$0xff]  ;;  %v286_v36 = vmax.f32 %v214_v25, 0.0  ;;  %v223_v37 = vsub.f32 0.0, %v79_v29  ;;  %v4597_v38 = vpack.c.bf16 %v574_v32, %v573_v31 }
  0x66   :  { %4588 = vmatprep.subr.bf16.mxu0 %v4587_v6  ;;  %v296_v39 = vmax.f32 %v224_v28, 0.0  ;;  %v233_v40 = vsub.f32 0.0, %v89_v33  ;;  %v88_v41 = vld [vmem:[%s8340_s0 + $0x188] sm:$0xff]  ;;  %v4599_v42 = vpack.c.bf16 %v592_v35, %v591_v34  ;;  %v575_v43 = vld [vmem:[%s8342_s2 + $0x340] sm:$0xff]  ;;  %v98_v45 = vld [vmem:[%s8340_s0 + $0x1d8] sm:$0xff] }
  0x67   :  { %v576_v44 = vld [vmem:[%s8342_s2 + $0x348] sm:$0xff]  ;;  %v593_v46 = vld [vmem:[%s8342_s2 + $0x3d0] sm:$0xff]  ;;  %v594_v47 = vld [vmem:[%s8342_s2 + $0x3d8] sm:$0xff]  ;;  %v295_v48 = vmax.f32 %v223_v37, 0.0  ;;  %v232_v49 = vsub.f32 0.0, %v88_v41  ;;  %v242_v52 = vsub.f32 0.0, %v98_v45 }
  0x68   :  { %895 = vmatmul.mubr.f32.gmra.mrb[34].mxu0 %v268_v12  ;;  %v4601_v50 = vpack.c.bf16 %v576_v44, %v575_v43  ;;  %v305_v51 = vmax.f32 %v233_v40, 0.0  ;;  %v97_v53 = vld [vmem:[%s8340_s0 + $0x1d0] sm:$0xff]  ;;  %v4603_v54 = vpack.c.bf16 %v594_v47, %v593_v46  ;;  %v578_v56 = vld [vmem:[%s8342_s2 + $0x358] sm:$0xff]  ;;  %v107_v57 = vld [vmem:[%s8340_s0 + $0x220] sm:$0xff] }
  0x69   :  { %4590 = vmatpush3.bf16.msra.mxu0 %v4589_v14  ;;  %899 = vmatprep.mubr.f32.mxu0 %v278_v15  ;;  %v577_v55 = vld [vmem:[%s8342_s2 + $0x350] sm:$0xff]  ;;  %v595_v58 = vld [vmem:[%s8342_s2 + $0x3e0] sm:$0xff]  ;;  %v596_v59 = vld [vmem:[%s8342_s2 + $0x3e8] sm:$0xff]  ;;  %v304_v60 = vmax.f32 %v232_v49, 0.0  ;;  %v241_v61 = vsub.f32 0.0, %v97_v53  ;;  %v314_v63 = vmax.f32 %v242_v52, 0.0 }
  0x6a   :  { %4592 = vmatprep.subr.bf16.mxu0 %v4591_v18  ;;  %v4605_v62 = vpack.c.bf16 %v578_v56, %v577_v55  ;;  %v251_v0 = vsub.f32 0.0, %v107_v57  ;;  %v106_v1 = vld [vmem:[%s8340_s0 + $0x218] sm:$0xff]  ;;  %v4607_v2 = vpack.c.bf16 %v596_v59, %v595_v58  ;;  %v579_v3 = vld [vmem:[%s8342_s2 + $0x360] sm:$0xff]  ;;  %v580_v4 = vld [vmem:[%s8342_s2 + $0x368] sm:$0xff] }
  0x6b   :  { %v46_v5 = vld [vmem:[%s8340_s0 + $0x38] sm:$0xff]  ;;  %v597_v6 = vld [vmem:[%s8342_s2 + $0x3f0] sm:$0xff]  ;;  %v313_v8 = vmax.f32 %v241_v61, 0.0  ;;  %v250_v9 = vsub.f32 0.0, %v106_v1  ;;  %v4609_v10 = vpack.c.bf16 %v580_v4, %v579_v3  ;;  %v55_v17 = vld [vmem:[%s8340_s0 + $0x80] sm:$0xff] }
  0x6c   :  { %900 = vmatmul.mubr.f32.gmra.mrb[36].mxu0 %v277_v24  ;;  %v598_v7 = vld [vmem:[%s8342_s2 + $0x3f8] sm:$0xff]  ;;  %v323_v11 = vmax.f32 %v251_v0, 0.0  ;;  %v190_v12 = vsub.f32 0.0, %v46_v5  ;;  %v45_v13 = vld [vmem:[%s8340_s0 + $0x30] sm:$0xff]  ;;  %v599_v18 = vld [vmem:[%s8342_s2 + $0x400] sm:$0xff]  ;;  %v199_v24 = vsub.f32 0.0, %v55_v17 }
  0x6d   :  { %4594 = vmatpush3.bf16.msra.mxu0 %v4593_v26  ;;  %904 = vmatprep.mubr.f32.mxu0 %v287_v27  ;;  %v4611_v14 = vpack.c.bf16 %v598_v7, %v597_v6  ;;  %v581_v15 = vld [vmem:[%s8342_s2 + $0x370] sm:$0xff]  ;;  %v582_v16 = vld [vmem:[%s8342_s2 + $0x378] sm:$0xff]  ;;  %v600_v19 = vld [vmem:[%s8342_s2 + $0x408] sm:$0xff]  ;;  %v322_v20 = vmax.f32 %v250_v9, 0.0  ;;  %v189_v21 = vsub.f32 0.0, %v45_v13 }
  0x6e   :  { %4596 = vmatprep.subr.bf16.mxu0 %v4595_v30  ;;  %v4613_v22 = vpack.c.bf16 %v582_v16, %v581_v15  ;;  %v262_v23 = vmax.f32 %v190_v12, 0.0  ;;  %v54_v25 = vld [vmem:[%s8340_s0 + $0x78] sm:$0xff]  ;;  %v4615_v26 = vpack.c.bf16 %v600_v19, %v599_v18  ;;  %v64_v27 = vld [vmem:[%s8340_s0 + $0xc8] sm:$0xff]  ;;  %v601_v28 = vld [vmem:[%s8342_s2 + $0x410] sm:$0xff]  ;;  %v271_v32 = vmax.f32 %v199_v24, 0.0 }
  0x6f   :  { %v602_v29 = vld [vmem:[%s8342_s2 + $0x418] sm:$0xff]  ;;  %v261_v30 = vmax.f32 %v189_v21, 0.0  ;;  %v198_v31 = vsub.f32 0.0, %v54_v25  ;;  %v208_v33 = vsub.f32 0.0, %v64_v27  ;;  %v63_v34 = vld [vmem:[%s8340_s0 + $0xc0] sm:$0xff]  ;;  %v72_v43 = vld [vmem:[%s8340_s0 + $0x108] sm:$0xff] }
  0x70   :  { %905 = vmatmul.mubr.f32.gmra.mrb[38].mxu0 %v286_v36  ;;  %v4619_v35 = vpack.c.bf16 %v602_v29, %v601_v28  ;;  %v73_v36 = vld [vmem:[%s8340_s0 + $0x110] sm:$0xff]  ;;  %v603_v37 = vld [vmem:[%s8342_s2 + $0x420] sm:$0xff]  ;;  %v207_v40 = vsub.f32 0.0, %v63_v34  ;;  %v82_v45 = vld [vmem:[%s8340_s0 + $0x158] sm:$0xff]  ;;  %v216_v49 = vsub.f32 0.0, %v72_v43 }
  0x71   :  { %4598 = vmatpush3.bf16.msra.mxu0 %v4597_v38  ;;  %909 = vmatprep.mubr.f32.mxu0 %v296_v39  ;;  %v604_v38 = vld [vmem:[%s8342_s2 + $0x428] sm:$0xff]  ;;  %v270_v39 = vmax.f32 %v198_v31, 0.0  ;;  %v280_v41 = vmax.f32 %v208_v33, 0.0  ;;  %v605_v46 = vld [vmem:[%s8342_s2 + $0x430] sm:$0xff]  ;;  %v606_v47 = vld [vmem:[%s8342_s2 + $0x438] sm:$0xff] }
  0x72   :  { %4600 = vmatprep.subr.bf16.mxu0 %v4599_v42  ;;  %v217_v42 = vsub.f32 0.0, %v73_v36  ;;  %v4623_v44 = vpack.c.bf16 %v604_v38, %v603_v37  ;;  %v81_v52 = vld [vmem:[%s8340_s0 + $0x150] sm:$0xff]  ;;  %v4627_v53 = vpack.c.bf16 %v606_v47, %v605_v46  ;;  %v607_v55 = vld [vmem:[%s8342_s2 + $0x440] sm:$0xff]  ;;  %v608_v56 = vld [vmem:[%s8342_s2 + $0x448] sm:$0xff]  ;;  %v288_v57 = vmax.f32 %v216_v49, 0.0 }
  0x73   :  { %v225_v58 = vsub.f32 0.0, %v81_v52  ;;  %v90_v61 = vld [vmem:[%s8340_s0 + $0x198] sm:$0xff]  ;;  %v609_v0 = vld [vmem:[%s8342_s2 + $0x450] sm:$0xff]  ;;  %v99_v6 = vld [vmem:[%s8340_s0 + $0x1e0] sm:$0xff] }
  0x74   :  { %910 = vmatmul.mubr.f32.gmra.mrb[40].mxu0 %v295_v48  ;;  %v279_v48 = vmax.f32 %v207_v40, 0.0  ;;  %v610_v1 = vld [vmem:[%s8342_s2 + $0x458] sm:$0xff]  ;;  %v234_v3 = vsub.f32 0.0, %v90_v61  ;;  %v611_v9 = vld [vmem:[%s8342_s2 + $0x460] sm:$0xff]  ;;  %v243_v12 = vsub.f32 0.0, %v99_v6  ;;  %v108_v15 = vld [vmem:[%s8340_s0 + $0x228] sm:$0xff] }
  0x75   :  { %4602 = vmatpush3.bf16.msra.mxu0 %v4601_v50  ;;  %914 = vmatprep.mubr.f32.mxu0 %v305_v51  ;;  %v289_v50 = vmax.f32 %v217_v42, 0.0  ;;  %v226_v51 = vsub.f32 0.0, %v82_v45  ;;  %v4635_v7 = vpack.c.bf16 %v610_v1, %v609_v0  ;;  %v47_v17 = vld [vmem:[%s8340_s0 + $0x40] sm:$0xff]  ;;  %v613_v18 = vld [vmem:[%s8342_s2 + $0x470] sm:$0xff]  ;;  %v614_v19 = vld [vmem:[%s8342_s2 + $0x478] sm:$0xff]  ;;  %v252_v21 = vsub.f32 0.0, %v108_v15 }
  0x76   :  { %4604 = vmatprep.subr.bf16.mxu0 %v4603_v54  ;;  %v91_v54 = vld [vmem:[%s8340_s0 + $0x1a0] sm:$0xff]  ;;  %v56_v24 = vld [vmem:[%s8340_s0 + $0x88] sm:$0xff]  ;;  %v4643_v25 = vpack.c.bf16 %v614_v19, %v613_v18  ;;  %v74_v33 = vld [vmem:[%s8340_s0 + $0x118] sm:$0xff] }
  0x77   :  { %v298_v59 = vmax.f32 %v226_v51, 0.0  ;;  %v343_v27 = vld [vmem:[%s8341_s1 + $0x80] sm:$0xff]  ;;  %v344_v28 = vld [vmem:[%s8341_s1 + $0x88] sm:$0xff]  ;;  %v324_v29 = vmax.f32 %v252_v21, 0.0  ;;  %v345_v38 = vld [vmem:[%s8341_s1 + $0x90] sm:$0xff] }
  0x78   :  { %915 = vmatmul.mubr.f32.gmra.mrb[42].mxu0 %v304_v60  ;;  %v235_v60 = vsub.f32 0.0, %v91_v54  ;;  %v4647_v34 = vpack.c.bf16 %v344_v28, %v343_v27  ;;  %v328_v36 = vld [vmem:[%s8341_s1 + $0x8] sm:$0xff]  ;;  %v83_v37 = vld [vmem:[%s8340_s0 + $0x160] sm:$0xff]  ;;  %v329_v47 = vld [vmem:[%s8341_s1 + $0x10] sm:$0xff] }
  0x79   :  { %4606 = vmatpush3.bf16.msra.mxu0 %v4605_v62  ;;  %919 = vmatprep.mubr.f32.mxu0 %v314_v63  ;;  %v4631_v62 = vpack.c.bf16 %v608_v56, %v607_v55  ;;  %v100_v63 = vld [vmem:[%s8340_s0 + $0x1e8] sm:$0xff]  ;;  %v101_v49 = vld [vmem:[%s8340_s0 + $0x1f0] sm:$0xff]  ;;  %v351_v6 = vld [vmem:[%s8341_s1 + $0xc0] sm:$0xff] }
  0x7a   :  { %4608 = vmatprep.subr.bf16.mxu0 %v4607_v2  ;;  %v297_v2 = vmax.f32 %v225_v58, 0.0  ;;  %v307_v4 = vmax.f32 %v235_v60, 0.0  ;;  %v244_v5 = vsub.f32 0.0, %v100_v63  ;;  %v92_v45 = vld [vmem:[%s8340_s0 + $0x1a8] sm:$0xff]  ;;  %v245_v56 = vsub.f32 0.0, %v101_v49  ;;  %v349_v61 = vld [vmem:[%s8341_s1 + $0xb0] sm:$0xff] }
  0x7b   :  { %v348_v51 = vld [vmem:[%s8341_s1 + $0xa8] sm:$0xff]  ;;  %v353_v15 = vld [vmem:[%s8341_s1 + $0xd0] sm:$0xff]  ;;  %v355_v21 = vld [vmem:[%s8341_s1 + $0xe0] sm:$0xff] }
  0x7c   :  { %920 = vmatmul.mubr.f32.gmra.mrb[44].mxu0 %v313_v8  ;;  %v109_v8 = vld [vmem:[%s8340_s0 + $0x230] sm:$0xff]  ;;  %v316_v13 = vmax.f32 %v244_v5, 0.0  ;;  %v332_v60 = vld [vmem:[%s8341_s1 + $0x28] sm:$0xff]  ;;  %v334_v5 = vld [vmem:[%s8341_s1 + $0x38] sm:$0xff] }
  0x7d   :  { %4610 = vmatpush3.bf16.msra.mxu0 %v4609_v10  ;;  %924 = vmatprep.mubr.f32.mxu0 %v323_v11  ;;  %v612_v10 = vld [vmem:[%s8342_s2 + $0x468] sm:$0xff]  ;;  %v306_v11 = vmax.f32 %v234_v3, 0.0  ;;  %v337_v19 = vld [vmem:[%s8341_s1 + $0x50] sm:$0xff]  ;;  %v358_v28 = vld [vmem:[%s8341_s1 + $0xf8] sm:$0xff] }
  0x7e   :  { %4612 = vmatprep.subr.bf16.mxu0 %v4611_v14  ;;  %v253_v14 = vsub.f32 0.0, %v109_v8  ;;  %v4639_v16 = vpack.c.bf16 %v612_v10, %v611_v9  ;;  %v5705_v9 = vld [vmem:[%s8340_s0 + $0x8] sm:$0xff]  ;;  %v357_v27 = vld [vmem:[%s8341_s1 + $0xf0] sm:$0xff]  ;;  %v379_v49 = vld [vmem:[%s8341_s1 + $0x1a0] sm:$0xff] }
  0x7f   :  { %v112_v10 = vmax.f32 %v5705_v9, 0.0 }
  0x80   :  { %925 = vmatmul.mubr.f32.gmra.mrb[46].mxu0 %v322_v20  ;;  %v315_v20 = vmax.f32 %v243_v12, 0.0 }
  0x81   :  { %4614 = vmatpush3.bf16.msra.mxu0 %v4613_v22  ;;  %994 = vmatprep.mubr.f32.mxu0 %v262_v23  ;;  %v325_v22 = vmax.f32 %v253_v14, 0.0  ;;  %v191_v23 = vsub.f32 0.0, %v47_v17  ;;  %v336_v14 = vld [vmem:[%s8341_s1 + $0x48] sm:$0xff] }
  0x82   :  { %4616 = vmatprep.subr.bf16.mxu0 %v4615_v26 }
  0x83   :  { %v263_v31 = vmax.f32 %v191_v23, 0.0 }
  0x84   :  { %995 = vmatmul.mubr.f32.vlgmr.msra.gmra.mrb[48].mxu0 %v261_v30  ;;  %v200_v30 = vsub.f32 0.0, %v56_v24 }
  0x85   :  { %4618 = vmatpush3.bf16.msra.mxu0 %v4615_v26  ;;  %999 = vmatprep.mubr.f32.mxu0 %v271_v32  ;;  %v65_v26 = vld [vmem:[%s8340_s0 + $0xd0] sm:$0xff] }
  0x86   :  { %4620 = vmatprep.subr.bf16.mxu0 %v4619_v35  ;;  %v209_v32 = vsub.f32 0.0, %v65_v26  ;;  %v272_v40 = vmax.f32 %v200_v30, 0.0  ;;  %v340_v26 = vld [vmem:[%s8341_s1 + $0x68] sm:$0xff]  ;;  %v4675_v30 = vpack.c.bf16 %v358_v28, %v357_v27 }
  0x87   :  { %v388_v27 = vld [vmem:[%s8341_s1 + $0x1e8] sm:$0xff] }
  0x88   :  { %1000 = vmatmul.mubr.f32.gmra.mrb[50].mxu0 %v270_v39  ;;  %v346_v39 = vld [vmem:[%s8341_s1 + $0x98] sm:$0xff]  ;;  %v281_v43 = vmax.f32 %v209_v32, 0.0  ;;  %v5716_v28 = vld [vmem:[%s8340_s0 + $0x168] sm:$0xff] }
  0x89   :  { %4622 = vmatpush3.bf16.msra.mxu0 %v4619_v35  ;;  %1004 = vmatprep.mubr.f32.mxu0 %v280_v41  ;;  %v327_v35 = vld [vmem:[%s8341_s1] sm:$0xff]  ;;  %v218_v41 = vsub.f32 0.0, %v74_v33  ;;  %v4651_v46 = vpack.c.bf16 %v346_v39, %v345_v38  ;;  %v342_v32 = vld [vmem:[%s8341_s1 + $0x78] sm:$0xff]  ;;  %v360_v38 = vld [vmem:[%s8341_s1 + $0x108] sm:$0xff] }
  0x8a   :  { %4624 = vmatprep.subr.bf16.mxu0 %v4623_v44  ;;  %v4649_v42 = vpack.c.bf16 %v328_v36, %v327_v35  ;;  %v375_v33 = vld [vmem:[%s8341_s1 + $0x180] sm:$0xff]  ;;  %v377_v39 = vld [vmem:[%s8341_s1 + $0x190] sm:$0xff] }
  0x8b   :  { %v290_v52 = vmax.f32 %v218_v41, 0.0  ;;  %v5706_v41 = vld [vmem:[%s8340_s0] sm:$0xff] }
  0x8c   :  { %1005 = vmatmul.mubr.f32.gmra.mrb[52].mxu0 %v279_v48  ;;  %v330_v48 = vld [vmem:[%s8341_s1 + $0x18] sm:$0xff] }
  0x8d   :  { %4626 = vmatpush3.bf16.msra.mxu0 %v4623_v44  ;;  %1009 = vmatprep.mubr.f32.mxu0 %v289_v50  ;;  %v227_v44 = vsub.f32 0.0, %v83_v37  ;;  %v347_v50 = vld [vmem:[%s8341_s1 + $0xa0] sm:$0xff]  ;;  %v4653_v54 = vpack.c.bf16 %v330_v48, %v329_v47  ;;  %v361_v47 = vld [vmem:[%s8341_s1 + $0x110] sm:$0xff]  ;;  %v362_v48 = vld [vmem:[%s8341_s1 + $0x118] sm:$0xff] }
  0x8e   :  { %4628 = vmatprep.subr.bf16.mxu0 %v4627_v53  ;;  %v4655_v58 = vpack.c.bf16 %v348_v51, %v347_v50  ;;  %v359_v37 = vld [vmem:[%s8341_s1 + $0x100] sm:$0xff]  ;;  %v380_v50 = vld [vmem:[%s8341_s1 + $0x1a8] sm:$0xff] }
  0x8f   :  { %v299_v55 = vmax.f32 %v227_v44, 0.0  ;;  %v5707_v44 = vld [vmem:[%s8340_s0 + $0x50] sm:$0xff]  ;;  %v5708_v51 = vld [vmem:[%s8340_s0 + $0x48] sm:$0xff] }
  0x90   :  { %1010 = vmatmul.mubr.f32.gmra.mrb[54].mxu0 %v288_v57  ;;  %v6542_v57 = vld [vmem:[%s8340_s0 + $0x238] sm:$0xff] }
  0x91   :  { %4630 = vmatpush3.bf16.msra.mxu0 %v4627_v53  ;;  %1014 = vmatprep.mubr.f32.mxu0 %v298_v59  ;;  %v236_v53 = vsub.f32 0.0, %v92_v45  ;;  %v331_v59 = vld [vmem:[%s8341_s1 + $0x20] sm:$0xff]  ;;  %v254_v0 = vsub.f32 0.0, %v6542_v57  ;;  %v121_v45 = vmax.f32 %v5707_v44, 0.0  ;;  %v373_v44 = vld [vmem:[%s8341_s1 + $0x170] sm:$0xff] }
  0x92   :  { %4632 = vmatprep.subr.bf16.mxu0 %v4631_v62  ;;  %v4657_v1 = vpack.c.bf16 %v332_v60, %v331_v59  ;;  %v364_v59 = vld [vmem:[%s8341_s1 + $0x128] sm:$0xff]  ;;  %v381_v60 = vld [vmem:[%s8341_s1 + $0x1b0] sm:$0xff] }
  0x93   :  { %v308_v63 = vmax.f32 %v236_v53, 0.0  ;;  %v326_v8 = vmax.f32 %v254_v0, 0.0  ;;  %v4685_v53 = vpack.c.bf16 %v362_v48, %v361_v47  ;;  %v408_v47 = vld [vmem:[%s8341_s1 + $0x288] sm:$0xff]  ;;  %v5720_v48 = vld [vmem:[%s8340_s0 + $0x1f8] sm:$0xff] }
  0x94   :  { %1015 = vmatmul.mubr.f32.gmra.mrb[56].mxu0 %v297_v2  ;;  %v317_v2 = vmax.f32 %v245_v56, 0.0  ;;  %v4687_v56 = vpack.c.bf16 %v380_v50, %v379_v49  ;;  %v174_v49 = vmax.f32 %v5720_v48, 0.0  ;;  %v5733_v48 = vld [vmem:[%s8340_s0 + $0x1c8] sm:$0xff] }
  0x95   :  { %4634 = vmatpush3.bf16.msra.mxu0 %v4631_v62  ;;  %1019 = vmatprep.mubr.f32.mxu0 %v307_v4  ;;  %v350_v62 = vld [vmem:[%s8341_s1 + $0xb8] sm:$0xff]  ;;  %v333_v4 = vld [vmem:[%s8341_s1 + $0x30] sm:$0xff] }
  0x96   :  { %4636 = vmatprep.subr.bf16.mxu0 %v4635_v7  ;;  %v4659_v3 = vpack.c.bf16 %v350_v62, %v349_v61  ;;  %v382_v61 = vld [vmem:[%s8341_s1 + $0x1b8] sm:$0xff]  ;;  %v5710_v62 = vld [vmem:[%s8340_s0 + $0x90] sm:$0xff] }
  0x98   :  { %1020 = vmatmul.mubr.f32.gmra.mrb[58].mxu0 %v306_v11  ;;  %v4661_v11 = vpack.c.bf16 %v334_v5, %v333_v4  ;;  %v365_v4 = vld [vmem:[%s8341_s1 + $0x130] sm:$0xff]  ;;  %v366_v5 = vld [vmem:[%s8341_s1 + $0x138] sm:$0xff] }
  0x99   :  { %4638 = vmatpush3.bf16.msra.mxu0 %v4635_v7  ;;  %1024 = vmatprep.mubr.f32.mxu0 %v316_v13  ;;  %v352_v7 = vld [vmem:[%s8341_s1 + $0xc8] sm:$0xff]  ;;  %v335_v13 = vld [vmem:[%s8341_s1 + $0x40] sm:$0xff] }
  0x9a   :  { %4640 = vmatprep.subr.bf16.mxu0 %v4639_v16  ;;  %v4663_v12 = vpack.c.bf16 %v352_v7, %v351_v6  ;;  %v4665_v17 = vpack.c.bf16 %v336_v14, %v335_v13  ;;  %v383_v6 = vld [vmem:[%s8341_s1 + $0x1c0] sm:$0xff]  ;;  %v384_v7 = vld [vmem:[%s8341_s1 + $0x1c8] sm:$0xff] }
  0x9b   :  { %v4695_v13 = vpack.c.bf16 %v384_v7, %v383_v6  ;;  %v367_v14 = vld [vmem:[%s8341_s1 + $0x140] sm:$0xff] }
  0x9c   :  { %1025 = vmatmul.mubr.f32.gmra.mrb[60].mxu0 %v315_v20  ;;  %v338_v20 = vld [vmem:[%s8341_s1 + $0x58] sm:$0xff] }
  0x9d   :  { %4642 = vmatpush3.bf16.msra.mxu0 %v4639_v16  ;;  %1029 = vmatprep.mubr.f32.mxu0 %v325_v22  ;;  %v354_v16 = vld [vmem:[%s8341_s1 + $0xd8] sm:$0xff]  ;;  %v356_v22 = vld [vmem:[%s8341_s1 + $0xe8] sm:$0xff]  ;;  %v4669_v23 = vpack.c.bf16 %v338_v20, %v337_v19 }
  0x9e   :  { %4644 = vmatprep.subr.bf16.mxu0 %v4643_v25  ;;  %v4667_v18 = vpack.c.bf16 %v354_v16, %v353_v15  ;;  %v4671_v24 = vpack.c.bf16 %v356_v22, %v355_v21  ;;  %v368_v15 = vld [vmem:[%s8341_s1 + $0x148] sm:$0xff]  ;;  %v385_v16 = vld [vmem:[%s8341_s1 + $0x1d0] sm:$0xff] }
  0x9f   :  { %v4697_v20 = vpack.c.bf16 %v368_v15, %v367_v14  ;;  %v5715_v21 = vld [vmem:[%s8340_s0 + $0x170] sm:$0xff]  ;;  %v414_v14 = vld [vmem:[%s8341_s1 + $0x2b8] sm:$0xff]  ;;  %v5726_v15 = vld [vmem:[%s8340_s0 + $0xa0] sm:$0xff] }
  0xa0   :  { %1030 = vmatmul.mubr.f32.gmra.mrb[62].mxu0 %v324_v29  ;;  %v157_v22 = vmax.f32 %v5715_v21, 0.0  ;;  %v397_v21 = vld [vmem:[%s8341_s1 + $0x230] sm:$0xff] }
  0xa1   :  { %4646 = vmatpush3.bf16.msra.mxu0 %v4643_v25  ;;  %4352 = vmatprep.mubr.f32.mxu0 %v263_v31  ;;  %v339_v25 = vld [vmem:[%s8341_s1 + $0x60] sm:$0xff]  ;;  %v341_v31 = vld [vmem:[%s8341_s1 + $0x70] sm:$0xff] }
  0xa2   :  { %4648 = vmatprep.subr.bf16.mxu0 %v4647_v34  ;;  %v4673_v29 = vpack.c.bf16 %v340_v26, %v339_v25  ;;  %v376_v34 = vld [vmem:[%s8341_s1 + $0x188] sm:$0xff]  ;;  %v4677_v35 = vpack.c.bf16 %v342_v32, %v341_v31  ;;  %v370_v25 = vld [vmem:[%s8341_s1 + $0x158] sm:$0xff]  ;;  %v387_v26 = vld [vmem:[%s8341_s1 + $0x1e0] sm:$0xff] }
  0xa3   :  { %v4679_v36 = vpack.c.bf16 %v376_v34, %v375_v33  ;;  %v5717_v31 = vld [vmem:[%s8340_s0 + $0x1b8] sm:$0xff]  ;;  %v4703_v33 = vpack.c.bf16 %v388_v27, %v387_v26  ;;  %v371_v34 = vld [vmem:[%s8341_s1 + $0x160] sm:$0xff] }
  0xa4   :  { %4353 = vmatmul.mubr.f32.vlgmr.msra.gmra.mrb[64].mxu0 %v272_v40  ;;  %v378_v40 = vld [vmem:[%s8341_s1 + $0x198] sm:$0xff]  ;;  %v166_v32 = vmax.f32 %v5717_v31, 0.0  ;;  %v399_v31 = vld [vmem:[%s8341_s1 + $0x240] sm:$0xff] }
  0xa5   :  { %4650 = vmatpush3.bf16.msra.mxu0 %v4649_v42  ;;  %4355 = vmatprep.mubr.f32.mxu0 %v281_v43  ;;  %v111_v42 = vmax.f32 %v5706_v41, 0.0  ;;  %v4681_v43 = vpack.c.bf16 %v360_v38, %v359_v37  ;;  %v390_v37 = vld [vmem:[%s8341_s1 + $0x1f8] sm:$0xff]  ;;  %v5718_v38 = vld [vmem:[%s8340_s0 + $0x1b0] sm:$0xff]  ;;  %v5719_v41 = vld [vmem:[%s8340_s0 + $0x200] sm:$0xff] }
  0xa6   :  { %4652 = vmatprep.subr.bf16.mxu0 %v4651_v46  ;;  %v4683_v46 = vpack.c.bf16 %v378_v40, %v377_v39  ;;  %v165_v39 = vmax.f32 %v5718_v38, 0.0  ;;  %v5731_v38 = vld [vmem:[%s8340_s0 + $0x180] sm:$0xff] }
  0xa8   :  { %4356 = vmatmul.mubr.f32.gmra.mrb[66].mxu0 %v290_v52  ;;  %v120_v52 = vmax.f32 %v5708_v51, 0.0  ;;  %v5721_v51 = vld [vmem:[%s8340_s0 + $0x18] sm:$0xff] }
  0xa9   :  { %4654 = vmatpush3.bf16.msra.mxu0 %v4653_v54  ;;  %4358 = vmatprep.mubr.f32.mxu0 %v299_v55  ;;  %v5709_v54 = vld [vmem:[%s8340_s0 + $0x98] sm:$0xff] }
  0xaa   :  { %4656 = vmatprep.subr.bf16.mxu0 %v4655_v58  ;;  %v130_v55 = vmax.f32 %v5709_v54, 0.0  ;;  %v363_v58 = vld [vmem:[%s8341_s1 + $0x120] sm:$0xff] }
  0xab   :  { %v4689_v0 = vpack.c.bf16 %v364_v59, %v363_v58  ;;  %v391_v54 = vld [vmem:[%s8341_s1 + $0x200] sm:$0xff]  ;;  %v410_v58 = vld [vmem:[%s8341_s1 + $0x298] sm:$0xff]  ;;  %v5722_v59 = vld [vmem:[%s8340_s0 + $0x10] sm:$0xff] }
  0xac   :  { %4359 = vmatmul.mubr.f32.gmra.mrb[68].mxu0 %v308_v63  ;;  %v129_v63 = vmax.f32 %v5710_v62, 0.0  ;;  %v5723_v62 = vld [vmem:[%s8340_s0 + $0x60] sm:$0xff] }
  0xad   :  { %4658 = vmatpush3.bf16.msra.mxu0 %v4657_v1  ;;  %4361 = vmatprep.mubr.f32.mxu0 %v317_v2  ;;  %v5711_v1 = vld [vmem:[%s8340_s0 + $0xe0] sm:$0xff] }
  0xae   :  { %4660 = vmatprep.subr.bf16.mxu0 %v4659_v3  ;;  %v139_v2 = vmax.f32 %v5711_v1, 0.0  ;;  %v4691_v3 = vpack.c.bf16 %v382_v61, %v381_v60  ;;  %v113_v60 = vmax.f32 %v5722_v59, 0.0  ;;  %v393_v1 = vld [vmem:[%s8341_s1 + $0x210] sm:$0xff] }
  0xb0   :  { %4362 = vmatmul.mubr.f32.gmra.mrb[70].mxu0 %v326_v8  ;;  %v5712_v8 = vld [vmem:[%s8340_s0 + $0xd8] sm:$0xff] }
  0xb1   :  { %4662 = vmatpush3.bf16.msra.mxu0 %v4661_v11  ;;  %1204 = vmatprep.mubr.f32.mxu0 %v112_v10  ;;  %v138_v9 = vmax.f32 %v5712_v8, 0.0  ;;  %v4693_v10 = vpack.c.bf16 %v366_v5, %v365_v4  ;;  %v5713_v11 = vld [vmem:[%s8340_s0 + $0x128] sm:$0xff]  ;;  %v5724_v5 = vld [vmem:[%s8340_s0 + $0x58] sm:$0xff] }
  0xb2   :  { %4664 = vmatprep.subr.bf16.mxu0 %v4663_v12  ;;  %v148_v12 = vmax.f32 %v5713_v11, 0.0  ;;  %v412_v4 = vld [vmem:[%s8341_s1 + $0x2a8] sm:$0xff]  ;;  %v122_v6 = vmax.f32 %v5724_v5, 0.0  ;;  %v395_v11 = vld [vmem:[%s8341_s1 + $0x220] sm:$0xff] }
  0xb3   :  { %v5725_v8 = vld [vmem:[%s8340_s0 + $0xa8] sm:$0xff] }
  0xb4   :  { %v440_v5 = vld [vmem:[%s8341_s1 + $0x388] sm:$0xff] }
  0xb5   :  { %4666 = vmatpush3.bf16.msra.mxu0 %v4665_v17  ;;  %v386_v17 = vld [vmem:[%s8341_s1 + $0x1d8] sm:$0xff] }
  0xb6   :  { %4668 = vmatprep.subr.bf16.mxu0 %v4667_v18  ;;  %v5714_v18 = vld [vmem:[%s8340_s0 + $0x120] sm:$0xff] }
  0xb7   :  { %v147_v19 = vmax.f32 %v5714_v18, 0.0  ;;  %v5727_v18 = vld [vmem:[%s8340_s0 + $0xf0] sm:$0xff] }
  0xb9   :  { %4670 = vmatpush3.bf16.msra.mxu0 %v4669_v23  ;;  %v4699_v23 = vpack.c.bf16 %v386_v17, %v385_v16  ;;  %v131_v16 = vmax.f32 %v5726_v15, 0.0  ;;  %v424_v15 = vld [vmem:[%s8341_s1 + $0x308] sm:$0xff] }
  0xba   :  { %4672 = vmatprep.subr.bf16.mxu0 %v4671_v24  ;;  %v369_v24 = vld [vmem:[%s8341_s1 + $0x150] sm:$0xff] }
  0xbd   :  { %4674 = vmatpush3.bf16.msra.mxu0 %v4673_v29  ;;  %v156_v29 = vmax.f32 %v5716_v28, 0.0  ;;  %v5729_v28 = vld [vmem:[%s8340_s0 + $0x138] sm:$0xff] }
  0xbe   :  { %4676 = vmatprep.subr.bf16.mxu0 %v4675_v30  ;;  %v4701_v30 = vpack.c.bf16 %v370_v25, %v369_v24  ;;  %v416_v24 = vld [vmem:[%s8341_s1 + $0x2c8] sm:$0xff] }
  0xbf   :  { %v5728_v25 = vld [vmem:[%s8340_s0 + $0xe8] sm:$0xff] }
  0xc0   :  { %v140_v26 = vmax.f32 %v5728_v25, 0.0 }
  0xc1   :  { %4678 = vmatpush3.bf16.msra.mxu0 %v4677_v35  ;;  %v372_v35 = vld [vmem:[%s8341_s1 + $0x168] sm:$0xff] }
  0xc2   :  { %4680 = vmatprep.subr.bf16.mxu0 %v4679_v36  ;;  %v389_v36 = vld [vmem:[%s8341_s1 + $0x1f0] sm:$0xff]  ;;  %v4705_v40 = vpack.c.bf16 %v372_v35, %v371_v34  ;;  %v418_v34 = vld [vmem:[%s8341_s1 + $0x2d8] sm:$0xff] }
  0xc3   :  { %v5730_v35 = vld [vmem:[%s8340_s0 + $0x130] sm:$0xff] }
  0xc4   :  { %1205 = vmatmul.mubr.f32.vlgmr.msra.gmra.mrb[72].mxu0 %v111_v42  ;;  %v175_v42 = vmax.f32 %v5719_v41, 0.0  ;;  %v401_v41 = vld [vmem:[%s8341_s1 + $0x250] sm:$0xff] }
  0xc5   :  { %4682 = vmatpush3.bf16.msra.mxu0 %v4681_v43  ;;  %1209 = vmatprep.mubr.f32.mxu0 %v121_v45  ;;  %v4707_v43 = vpack.c.bf16 %v390_v37, %v389_v36  ;;  %v374_v45 = vld [vmem:[%s8341_s1 + $0x178] sm:$0xff]  ;;  %v149_v36 = vmax.f32 %v5730_v35, 0.0 }
  0xc6   :  { %4684 = vmatprep.subr.bf16.mxu0 %v4683_v46  ;;  %v407_v46 = vld [vmem:[%s8341_s1 + $0x280] sm:$0xff]  ;;  %v4709_v50 = vpack.c.bf16 %v374_v45, %v373_v44  ;;  %v420_v44 = vld [vmem:[%s8341_s1 + $0x2e8] sm:$0xff]  ;;  %v5732_v45 = vld [vmem:[%s8340_s0 + $0x178] sm:$0xff] }
  0xc8   :  { %1210 = vmatmul.mubr.f32.gmra.mrb[74].mxu0 %v120_v52  ;;  %v114_v52 = vmax.f32 %v5721_v51, 0.0  ;;  %v403_v51 = vld [vmem:[%s8341_s1 + $0x260] sm:$0xff] }
  0xc9   :  { %4686 = vmatpush3.bf16.msra.mxu0 %v4685_v53  ;;  %1214 = vmatprep.mubr.f32.mxu0 %v130_v55  ;;  %v4711_v53 = vpack.c.bf16 %v408_v47, %v407_v46  ;;  %v392_v55 = vld [vmem:[%s8341_s1 + $0x208] sm:$0xff]  ;;  %v158_v46 = vmax.f32 %v5732_v45, 0.0 }
  0xca   :  { %4688 = vmatprep.subr.bf16.mxu0 %v4687_v56  ;;  %v409_v56 = vld [vmem:[%s8341_s1 + $0x290] sm:$0xff]  ;;  %v4713_v61 = vpack.c.bf16 %v392_v55, %v391_v54  ;;  %v422_v55 = vld [vmem:[%s8341_s1 + $0x2f8] sm:$0xff] }
  0xcb   :  { %v421_v54 = vld [vmem:[%s8341_s1 + $0x2f0] sm:$0xff] }
  0xcc   :  { %1215 = vmatmul.mubr.f32.gmra.mrb[76].mxu0 %v129_v63  ;;  %v123_v63 = vmax.f32 %v5723_v62, 0.0  ;;  %v5735_v62 = vld [vmem:[%s8340_s0 + $0x210] sm:$0xff] }
  0xcd   :  { %4690 = vmatpush3.bf16.msra.mxu0 %v4689_v0  ;;  %1219 = vmatprep.mubr.f32.mxu0 %v139_v2  ;;  %v4715_v0 = vpack.c.bf16 %v410_v58, %v409_v56  ;;  %v394_v2 = vld [vmem:[%s8341_s1 + $0x218] sm:$0xff]  ;;  %v5734_v58 = vld [vmem:[%s8340_s0 + $0x1c0] sm:$0xff] }
  0xce   :  { %4692 = vmatprep.subr.bf16.mxu0 %v4691_v3  ;;  %v411_v3 = vld [vmem:[%s8341_s1 + $0x2a0] sm:$0xff]  ;;  %v4717_v7 = vpack.c.bf16 %v394_v2, %v393_v1  ;;  %v167_v59 = vmax.f32 %v5734_v58, 0.0  ;;  %v405_v1 = vld [vmem:[%s8341_s1 + $0x270] sm:$0xff]  ;;  %v406_v2 = vld [vmem:[%s8341_s1 + $0x278] sm:$0xff] }
  0xcf   :  { %v448_v58 = vld [vmem:[%s8341_s1 + $0x3c8] sm:$0xff] }
  0xd0   :  { %1220 = vmatmul.mubr.f32.gmra.mrb[78].mxu0 %v138_v9  ;;  %v132_v9 = vmax.f32 %v5725_v8, 0.0 }
  0xd1   :  { %4694 = vmatpush3.bf16.msra.mxu0 %v4693_v10  ;;  %1224 = vmatprep.mubr.f32.mxu0 %v148_v12  ;;  %v4719_v10 = vpack.c.bf16 %v412_v4, %v411_v3  ;;  %v396_v12 = vld [vmem:[%s8341_s1 + $0x228] sm:$0xff]  ;;  %v439_v4 = vld [vmem:[%s8341_s1 + $0x380] sm:$0xff] }
  0xd2   :  { %4696 = vmatprep.subr.bf16.mxu0 %v4695_v13  ;;  %v413_v13 = vld [vmem:[%s8341_s1 + $0x2b0] sm:$0xff]  ;;  %v4721_v17 = vpack.c.bf16 %v396_v12, %v395_v11  ;;  %v5737_v11 = vld [vmem:[%s8340_s0 + $0x28] sm:$0xff] }
  0xd3   :  { %v116_v12 = vmax.f32 %v5737_v11, 0.0  ;;  %v5746_v11 = vld [vmem:[%s8340_s0 + $0x140] sm:$0xff] }
  0xd4   :  { %1225 = vmatmul.mubr.f32.gmra.mrb[80].mxu0 %v147_v19  ;;  %v141_v19 = vmax.f32 %v5727_v18, 0.0  ;;  %v442_v18 = vld [vmem:[%s8341_s1 + $0x398] sm:$0xff] }
  0xd5   :  { %4698 = vmatpush3.bf16.msra.mxu0 %v4697_v20  ;;  %1229 = vmatprep.mubr.f32.mxu0 %v157_v22  ;;  %v4723_v20 = vpack.c.bf16 %v414_v14, %v413_v13  ;;  %v398_v22 = vld [vmem:[%s8341_s1 + $0x238] sm:$0xff]  ;;  %v4743_v13 = vpack.c.bf16 %v440_v5, %v439_v4  ;;  %v423_v14 = vld [vmem:[%s8341_s1 + $0x300] sm:$0xff]  ;;  %v432_v5 = vld [vmem:[%s8341_s1 + $0x348] sm:$0xff] }
  0xd6   :  { %4700 = vmatprep.subr.bf16.mxu0 %v4699_v23  ;;  %v415_v23 = vld [vmem:[%s8341_s1 + $0x2c0] sm:$0xff]  ;;  %v4725_v27 = vpack.c.bf16 %v398_v22, %v397_v21 }
  0xd7   :  { %v431_v4 = vld [vmem:[%s8341_s1 + $0x340] sm:$0xff] }
  0xd8   :  { %1230 = vmatmul.mubr.f32.gmra.mrb[82].mxu0 %v156_v29  ;;  %v150_v29 = vmax.f32 %v5729_v28, 0.0  ;;  %v426_v28 = vld [vmem:[%s8341_s1 + $0x318] sm:$0xff] }
  0xd9   :  { %4702 = vmatpush3.bf16.msra.mxu0 %v4701_v30  ;;  %1234 = vmatprep.mubr.f32.mxu0 %v166_v32  ;;  %v4727_v30 = vpack.c.bf16 %v416_v24, %v415_v23  ;;  %v400_v32 = vld [vmem:[%s8341_s1 + $0x248] sm:$0xff]  ;;  %v4745_v23 = vpack.c.bf16 %v424_v15, %v423_v14  ;;  %v5739_v24 = vld [vmem:[%s8340_s0 + $0x70] sm:$0xff]  ;;  %v4761_v14 = vpack.c.bf16 %v432_v5, %v431_v4 }
  0xda   :  { %4704 = vmatprep.subr.bf16.mxu0 %v4703_v33  ;;  %v417_v33 = vld [vmem:[%s8341_s1 + $0x2d0] sm:$0xff]  ;;  %v4729_v37 = vpack.c.bf16 %v400_v32, %v399_v31  ;;  %v125_v25 = vmax.f32 %v5739_v24, 0.0  ;;  %v444_v31 = vld [vmem:[%s8341_s1 + $0x3a8] sm:$0xff] }
  0xdb   :  { %v5747_v15 = vld [vmem:[%s8340_s0 + $0x190] sm:$0xff] }
  0xdc   :  { %1235 = vmatmul.mubr.f32.gmra.mrb[84].mxu0 %v165_v39  ;;  %v159_v39 = vmax.f32 %v5731_v38, 0.0  ;;  %v5754_v4 = vld [vmem:[%s8340_s0 + $0x30] sm:$0xff] }
  0xdd   :  { %4706 = vmatpush3.bf16.msra.mxu0 %v4705_v40  ;;  %1239 = vmatprep.mubr.f32.mxu0 %v175_v42  ;;  %v4731_v40 = vpack.c.bf16 %v418_v34, %v417_v33  ;;  %v402_v42 = vld [vmem:[%s8341_s1 + $0x258] sm:$0xff]  ;;  %v5740_v33 = vld [vmem:[%s8340_s0 + $0x68] sm:$0xff]  ;;  %v117_v5 = vmax.f32 %v5754_v4, 0.0 }
  0xde   :  { %4708 = vmatprep.subr.bf16.mxu0 %v4707_v43  ;;  %v419_v43 = vld [vmem:[%s8341_s1 + $0x2e0] sm:$0xff]  ;;  %v4733_v47 = vpack.c.bf16 %v402_v42, %v401_v41  ;;  %v124_v34 = vmax.f32 %v5740_v33, 0.0  ;;  %v428_v41 = vld [vmem:[%s8341_s1 + $0x328] sm:$0xff] }
  0xdf   :  { %v436_v33 = vld [vmem:[%s8341_s1 + $0x368] sm:$0xff] }
  0xe0   :  { %1240 = vmatmul.mubr.f32.gmra.mrb[86].mxu0 %v174_v49  ;;  %v168_v49 = vmax.f32 %v5733_v48, 0.0 }
  0xe1   :  { %4710 = vmatpush3.bf16.msra.mxu0 %v4709_v50  ;;  %1309 = vmatprep.mubr.f32.mxu0 %v114_v52  ;;  %v4735_v50 = vpack.c.bf16 %v420_v44, %v419_v43  ;;  %v404_v52 = vld [vmem:[%s8341_s1 + $0x268] sm:$0xff]  ;;  %v445_v43 = vld [vmem:[%s8341_s1 + $0x3b0] sm:$0xff]  ;;  %v446_v44 = vld [vmem:[%s8341_s1 + $0x3b8] sm:$0xff] }
  0xe2   :  { %4712 = vmatprep.subr.bf16.mxu0 %v4711_v53 }
  0xe4   :  { %1310 = vmatmul.mubr.f32.vlgmr.msra.gmra.mrb[88].mxu0 %v113_v60 }
  0xe5   :  { %4714 = vmatpush3.bf16.msra.mxu0 %v4713_v61  ;;  %1314 = vmatprep.mubr.f32.mxu0 %v123_v63  ;;  %v4737_v61 = vpack.c.bf16 %v404_v52, %v403_v51  ;;  %v177_v63 = vmax.f32 %v5735_v62, 0.0  ;;  %v4755_v52 = vpack.c.bf16 %v446_v44, %v445_v43  ;;  %v5751_v43 = vld [vmem:[%s8340_s0 + $0x220] sm:$0xff] }
  0xe6   :  { %4716 = vmatprep.subr.bf16.mxu0 %v4715_v0  ;;  %v4739_v0 = vpack.c.bf16 %v422_v55, %v421_v54  ;;  %v430_v54 = vld [vmem:[%s8341_s1 + $0x338] sm:$0xff]  ;;  %v179_v44 = vmax.f32 %v5751_v43, 0.0 }
  0xe8   :  { %1315 = vmatmul.mubr.f32.gmra.mrb[90].mxu0 %v122_v6 }
  0xe9   :  { %4718 = vmatpush3.bf16.msra.mxu0 %v4717_v7  ;;  %1319 = vmatprep.mubr.f32.mxu0 %v132_v9  ;;  %v5736_v7 = vld [vmem:[%s8340_s0 + $0x208] sm:$0xff] }
  0xea   :  { %4720 = vmatprep.subr.bf16.mxu0 %v4719_v10  ;;  %v176_v8 = vmax.f32 %v5736_v7, 0.0  ;;  %v4741_v10 = vpack.c.bf16 %v406_v2, %v405_v1  ;;  %v5745_v1 = vld [vmem:[%s8340_s0 + $0x148] sm:$0xff]  ;;  %v449_v7 = vld [vmem:[%s8341_s1 + $0x3d0] sm:$0xff] }
  0xeb   :  { %v152_v2 = vmax.f32 %v5745_v1, 0.0  ;;  %v457_v1 = vld [vmem:[%s8341_s1 + $0x410] sm:$0xff] }
  0xec   :  { %1320 = vmatmul.mubr.f32.gmra.mrb[92].mxu0 %v131_v16 }
  0xed   :  { %4722 = vmatpush3.bf16.msra.mxu0 %v4721_v17  ;;  %1324 = vmatprep.mubr.f32.mxu0 %v141_v19  ;;  %v441_v17 = vld [vmem:[%s8341_s1 + $0x390] sm:$0xff] }
  0xee   :  { %4724 = vmatprep.subr.bf16.mxu0 %v4723_v20  ;;  %v5738_v20 = vld [vmem:[%s8340_s0 + $0x20] sm:$0xff] }
  0xef   :  { %v115_v21 = vmax.f32 %v5738_v20, 0.0 }
  0xf0   :  { %1325 = vmatmul.mubr.f32.gmra.mrb[94].mxu0 %v140_v26  ;;  %v4747_v26 = vpack.c.bf16 %v442_v18, %v441_v17  ;;  %v433_v18 = vld [vmem:[%s8341_s1 + $0x350] sm:$0xff] }
  0xf1   :  { %4726 = vmatpush3.bf16.msra.mxu0 %v4725_v27  ;;  %1329 = vmatprep.mubr.f32.mxu0 %v150_v29  ;;  %v425_v27 = vld [vmem:[%s8341_s1 + $0x310] sm:$0xff] }
  0xf2   :  { %4728 = vmatprep.subr.bf16.mxu0 %v4727_v30  ;;  %v443_v30 = vld [vmem:[%s8341_s1 + $0x3a0] sm:$0xff] }
  0xf4   :  { %1330 = vmatmul.mubr.f32.gmra.mrb[96].mxu0 %v149_v36  ;;  %v4749_v36 = vpack.c.bf16 %v426_v28, %v425_v27 }
  0xf5   :  { %4730 = vmatpush3.bf16.msra.mxu0 %v4729_v37  ;;  %1334 = vmatprep.mubr.f32.mxu0 %v159_v39  ;;  %v5741_v37 = vld [vmem:[%s8340_s0 + $0xb8] sm:$0xff]  ;;  %v4751_v39 = vpack.c.bf16 %v444_v31, %v443_v30 }
  0xf6   :  { %4732 = vmatprep.subr.bf16.mxu0 %v4731_v40  ;;  %v134_v38 = vmax.f32 %v5741_v37, 0.0  ;;  %v427_v40 = vld [vmem:[%s8341_s1 + $0x320] sm:$0xff]  ;;  %v454_v37 = vld [vmem:[%s8341_s1 + $0x3f8] sm:$0xff] }
  0xf7   :  { %v3815_v53 = vpop.f32.mrb[0].mxu0 }
  0xf8   :  { %v3816_v56 = vpop.f32.mrb[1].mxu0  ;;  %1335 = vmatmul.mubr.f32.gmra.mrb[98].mxu0 %v158_v46  ;;  %v5742_v46 = vld [vmem:[%s8340_s0 + $0xb0] sm:$0xff] }
  0xf9   :  { %v6887_v60 = vadd.f32 %v3816_v56, %v3815_v53  ;;  %4734 = vmatpush3.bf16.msra.mxu0 %v4733_v47  ;;  %1339 = vmatprep.mubr.f32.mxu0 %v168_v49  ;;  %v133_v47 = vmax.f32 %v5742_v46, 0.0  ;;  %v4753_v49 = vpack.c.bf16 %v428_v41, %v427_v40  ;;  %v429_v53 = vld [vmem:[%s8341_s1 + $0x330] sm:$0xff]  ;;  %v447_v56 = vld [vmem:[%s8341_s1 + $0x3c0] sm:$0xff] }
  0xfa   :  { %4736 = vmatprep.subr.bf16.mxu0 %v4735_v50  ;;  %v5743_v50 = vld [vmem:[%s8340_s0 + $0x100] sm:$0xff]  ;;  %v437_v46 = vld [vmem:[%s8341_s1 + $0x370] sm:$0xff] }
  0xfb   :  { %v3818_v3 = vpop.f32.mrb[2].mxu0  ;;  %v143_v51 = vmax.f32 %v5743_v50, 0.0 }
  0xfc   :  { %v3819_v6 = vpop.f32.mrb[3].mxu0  ;;  %1340 = vmatmul.mubr.f32.gmra.mrb[100].mxu0 %v167_v59 }
  0xfd   :  { %v6907_v9 = vadd.f32 %v3819_v6, %v3818_v3  ;;  %4738 = vmatpush3.bf16.msra.mxu0 %v4737_v61  ;;  %1344 = vmatprep.mubr.f32.mxu0 %v177_v63  ;;  %v5744_v61 = vld [vmem:[%s8340_s0 + $0xf8] sm:$0xff]  ;;  %v4759_v3 = vpack.c.bf16 %v448_v58, %v447_v56 }
  0xfe   :  { %4740 = vmatprep.subr.bf16.mxu0 %v4739_v0  ;;  %v142_v62 = vmax.f32 %v5744_v61, 0.0  ;;  %v4757_v0 = vpack.c.bf16 %v430_v54, %v429_v53  ;;  %v5752_v54 = vld [vmem:[%s8340_s0 + $0x218] sm:$0xff] }
  0xff   :  { %v3821_v16 = vpop.f32.mrb[4].mxu0  ;;  %v5753_v58 = vld [vmem:[%s8340_s0 + $0x38] sm:$0xff] }
 0x100   :  { %v3822_v19 = vpop.f32.mrb[5].mxu0  ;;  %1345 = vmatmul.mubr.f32.gmra.mrb[102].mxu0 %v176_v8  ;;  %v450_v8 = vld [vmem:[%s8341_s1 + $0x3d8] sm:$0xff] }
 0x101   :  { %v6927_v22 = vadd.f32 %v3822_v19, %v3821_v16  ;;  %4742 = vmatpush3.bf16.msra.mxu0 %v4741_v10  ;;  %1414 = vmatprep.mubr.f32.mxu0 %v116_v12  ;;  %v151_v12 = vmax.f32 %v5746_v11, 0.0  ;;  %v161_v16 = vmax.f32 %v5747_v15, 0.0  ;;  %v4763_v17 = vpack.c.bf16 %v450_v8, %v449_v7  ;;  %v434_v19 = vld [vmem:[%s8341_s1 + $0x358] sm:$0xff] }
 0x102   :  { %4744 = vmatprep.subr.bf16.mxu0 %v4743_v13  ;;  %v4765_v28 = vpack.c.bf16 %v434_v19, %v433_v18 }
 0x103   :  { %v3824_v29 = vpop.f32.mrb[6].mxu0 }
 0x104   :  { %v3825_v32 = vpop.f32.mrb[7].mxu0  ;;  %1415 = vmatmul.mubr.f32.vlgmr.msra.gmra.mrb[104].mxu0 %v115_v21  ;;  %v451_v21 = vld [vmem:[%s8341_s1 + $0x3e0] sm:$0xff] }
 0x105   :  { %v6947_v35 = vadd.f32 %v3825_v32, %v3824_v29  ;;  %4746 = vmatpush3.bf16.msra.mxu0 %v4745_v23  ;;  %1419 = vmatprep.mubr.f32.mxu0 %v125_v25  ;;  %v452_v23 = vld [vmem:[%s8341_s1 + $0x3e8] sm:$0xff]  ;;  %v5749_v29 = vld [vmem:[%s8340_s0 + $0x1d8] sm:$0xff]  ;;  %v435_v32 = vld [vmem:[%s8341_s1 + $0x360] sm:$0xff] }
 0x106   :  { %4748 = vmatprep.subr.bf16.mxu0 %v4747_v26  ;;  %v5748_v25 = vld [vmem:[%s8340_s0 + $0x188] sm:$0xff]  ;;  %v170_v30 = vmax.f32 %v5749_v29, 0.0  ;;  %v4767_v31 = vpack.c.bf16 %v452_v23, %v451_v21 }
 0x107   :  { %v3827_v42 = vpop.f32.mrb[8].mxu0  ;;  %v160_v26 = vmax.f32 %v5748_v25, 0.0  ;;  %v462_v25 = vld [vmem:[%s8341_s1 + $0x438] sm:$0xff] }
 0x108   :  { %v3828_v45 = vpop.f32.mrb[9].mxu0  ;;  %1420 = vmatmul.mubr.f32.gmra.mrb[106].mxu0 %v124_v34 }
 0x109   :  { %v6967_v48 = vadd.f32 %v3828_v45, %v3827_v42  ;;  %4750 = vmatpush3.bf16.msra.mxu0 %v4749_v36  ;;  %1424 = vmatprep.mubr.f32.mxu0 %v134_v38  ;;  %v453_v36 = vld [vmem:[%s8341_s1 + $0x3f0] sm:$0xff]  ;;  %v4769_v42 = vpack.c.bf16 %v436_v33, %v435_v32 }
 0x10a   :  { %4752 = vmatprep.subr.bf16.mxu0 %v4751_v39  ;;  %v5750_v39 = vld [vmem:[%s8340_s0 + $0x1d0] sm:$0xff]  ;;  %v4771_v45 = vpack.c.bf16 %v454_v37, %v453_v36  ;;  %v463_v36 = vld [vmem:[%s8341_s1 + $0x440] sm:$0xff]  ;;  %v464_v37 = vld [vmem:[%s8341_s1 + $0x448] sm:$0xff] }
 0x10b   :  { %v3830_v55 = vpop.f32.mrb[10].mxu0  ;;  %v169_v40 = vmax.f32 %v5750_v39, 0.0  ;;  %v5760_v39 = vld [vmem:[%s8340_s0 + $0x108] sm:$0xff]  ;;  %v4791_v43 = vpack.c.bf16 %v464_v37, %v463_v36  ;;  %v5772_v37 = vld [vmem:[%s8340_s0 + $0x118] sm:$0xff] }
 0x10c   :  { %v3831_v59 = vpop.f32.mrb[11].mxu0  ;;  %1425 = vmatmul.mubr.f32.gmra.mrb[108].mxu0 %v133_v47  ;;  %v438_v47 = vld [vmem:[%s8341_s1 + $0x378] sm:$0xff] }
 0x10d   :  { %v6987_v63 = vadd.f32 %v3831_v59, %v3830_v55  ;;  %4754 = vmatpush3.bf16.msra.mxu0 %v4753_v49  ;;  %1429 = vmatprep.mubr.f32.mxu0 %v143_v51  ;;  %v455_v51 = vld [vmem:[%s8341_s1 + $0x400] sm:$0xff]  ;;  %v178_v55 = vmax.f32 %v5752_v54, 0.0  ;;  %v118_v59 = vmax.f32 %v5753_v58, 0.0 }
 0x10e   :  { %4756 = vmatprep.subr.bf16.mxu0 %v4755_v52  ;;  %v456_v52 = vld [vmem:[%s8341_s1 + $0x408] sm:$0xff]  ;;  %v467_v58 = vld [vmem:[%s8341_s1 + $0x460] sm:$0xff] }
 0x10f   :  { %v3833_v6 = vpop.f32.mrb[12].mxu0  ;;  %v4775_v61 = vpack.c.bf16 %v456_v52, %v455_v51  ;;  %v5762_v51 = vld [vmem:[%s8340_s0 + $0x150] sm:$0xff] }
 0x110   :  { %v3834_v10 = vpop.f32.mrb[13].mxu0  ;;  %1430 = vmatmul.mubr.f32.gmra.mrb[110].mxu0 %v142_v62  ;;  %v153_v52 = vmax.f32 %v5762_v51, 0.0 }
 0x111   :  { %v7007_v13 = vadd.f32 %v3834_v10, %v3833_v6  ;;  %4758 = vmatpush3.bf16.msra.mxu0 %v4757_v0  ;;  %1434 = vmatprep.mubr.f32.mxu0 %v152_v2  ;;  %v458_v2 = vld [vmem:[%s8341_s1 + $0x418] sm:$0xff] }
 0x112   :  { %4760 = vmatprep.subr.bf16.mxu0 %v4759_v3  ;;  %v4779_v8 = vpack.c.bf16 %v458_v2, %v457_v1 }
 0x113   :  { %v3836_v20 = vpop.f32.mrb[14].mxu0 }
 0x114   :  { %v3837_v24 = vpop.f32.mrb[15].mxu0  ;;  %1435 = vmatmul.mubr.f32.gmra.mrb[112].mxu0 %v151_v12  ;;  %v459_v12 = vld [vmem:[%s8341_s1 + $0x420] sm:$0xff] }
 0x115   :  { %v7027_v27 = vadd.f32 %v3837_v24, %v3836_v20  ;;  %4762 = vmatpush3.bf16.msra.mxu0 %v4761_v14  ;;  %1439 = vmatprep.mubr.f32.mxu0 %v161_v16  ;;  %v460_v14 = vld [vmem:[%s8341_s1 + $0x428] sm:$0xff]  ;;  %v5756_v16 = vld [vmem:[%s8340_s0 + $0x78] sm:$0xff]  ;;  %v461_v24 = vld [vmem:[%s8341_s1 + $0x430] sm:$0xff] }
 0x116   :  { %4764 = vmatprep.subr.bf16.mxu0 %v4763_v17  ;;  %v126_v17 = vmax.f32 %v5756_v16, 0.0  ;;  %v4783_v20 = vpack.c.bf16 %v460_v14, %v459_v12  ;;  %v4787_v32 = vpack.c.bf16 %v462_v25, %v461_v24  ;;  %v5769_v24 = vld [vmem:[%s8340_s0 + $0x40] sm:$0xff] }
 0x117   :  { %v3871_v34 = vpop.f32.mrb[16].mxu0  ;;  %v119_v25 = vmax.f32 %v5769_v24, 0.0 }
 0x118   :  { %v3872_v38 = vpop.f32.mrb[17].mxu0  ;;  %1440 = vmatmul.mubr.f32.gmra.mrb[114].mxu0 %v160_v26 }
 0x119   :  { %v3873_v41 = vadd.f32 %v3872_v38, %v3871_v34  ;;  %4766 = vmatpush3.bf16.msra.mxu0 %v4765_v28  ;;  %1444 = vmatprep.mubr.f32.mxu0 %v170_v30  ;;  %v5758_v28 = vld [vmem:[%s8340_s0 + $0xc0] sm:$0xff] }
 0x11a   :  { %4768 = vmatprep.subr.bf16.mxu0 %v4767_v31  ;;  %v135_v29 = vmax.f32 %v5758_v28, 0.0 }
 0x11b   :  { %v7057_v49 = vadd.f32 %v3873_v41, %v6887_v60  ;;  %v3874_v50 = vpop.f32.mrb[18].mxu0  ;;  %v4773_v60 = vpack.c.bf16 %v438_v47, %v437_v46  ;;  %v465_v46 = vld [vmem:[%s8341_s1 + $0x450] sm:$0xff]  ;;  %v466_v47 = vld [vmem:[%s8341_s1 + $0x458] sm:$0xff] }
 0x11c   :  { %v3875_v53 = vpop.f32.mrb[19].mxu0  ;;  %1445 = vmatmul.mubr.f32.gmra.mrb[116].mxu0 %v169_v40  ;;  %v144_v40 = vmax.f32 %v5760_v39, 0.0 }
 0x11d   :  { %v3876_v56 = vadd.f32 %v3875_v53, %v3874_v50  ;;  %4770 = vmatpush3.bf16.msra.mxu0 %v4769_v42  ;;  %1449 = vmatprep.mubr.f32.mxu0 %v179_v44 }
 0x11e   :  { %4772 = vmatprep.subr.bf16.mxu0 %v4771_v45 }
 0x11f   :  { %v7072_v62 = vadd.f32 %v3876_v56, %v6907_v9  ;;  %v3877_v0 = vpop.f32.mrb[20].mxu0  ;;  %v5755_v9 = vld [vmem:[%s8340_s0 + $0x80] sm:$0xff] }
 0x120   :  { %v3878_v3 = vpop.f32.mrb[21].mxu0  ;;  %1450 = vmatmul.mubr.f32.gmra.mrb[118].mxu0 %v178_v55  ;;  %v127_v7 = vmax.f32 %v5755_v9, 0.0  ;;  %v4795_v55 = vpack.c.bf16 %v466_v47, %v465_v46  ;;  %v469_v9 = vld [vmem:[%s8341_s1 + $0x470] sm:$0xff] }
 0x121   :  { %v3879_v6 = vadd.f32 %v3878_v3, %v3877_v0  ;;  %4774 = vmatpush3.bf16.msra.mxu0 %v4773_v60  ;;  %1519 = vmatprep.mubr.f32.mxu0 %v118_v59  ;;  %v468_v59 = vld [vmem:[%s8341_s1 + $0x468] sm:$0xff]  ;;  %v5764_v0 = vld [vmem:[%s8340_s0 + $0x198] sm:$0xff]  ;;  %v5775_v47 = vld [vmem:[%s8340_s0 + $0x1f0] sm:$0xff] }
 0x122   :  { %4776 = vmatprep.subr.bf16.mxu0 %v4775_v61  ;;  %v162_v1 = vmax.f32 %v5764_v0, 0.0  ;;  %v4799_v4 = vpack.c.bf16 %v468_v59, %v467_v58 }
 0x123   :  { %v7087_v10 = vadd.f32 %v3879_v6, %v6927_v22  ;;  %v3880_v11 = vpop.f32.mrb[22].mxu0  ;;  %v5757_v22 = vld [vmem:[%s8340_s0 + $0xc8] sm:$0xff] }
 0x124   :  { %v3881_v15 = vpop.f32.mrb[23].mxu0  ;;  %1520 = vmatmul.mubr.f32.vlgmr.msra.gmra.mrb[120].mxu0 %v117_v5  ;;  %v136_v19 = vmax.f32 %v5757_v22, 0.0 }
 0x125   :  { %v3882_v18 = vadd.f32 %v3881_v15, %v3880_v11  ;;  %4778 = vmatpush3.bf16.msra.mxu0 %v4775_v61  ;;  %1524 = vmatprep.mubr.f32.mxu0 %v127_v7  ;;  %v470_v7 = vld [vmem:[%s8341_s1 + $0x478] sm:$0xff]  ;;  %v5766_v11 = vld [vmem:[%s8340_s0 + $0x1e0] sm:$0xff] }
 0x126   :  { %4780 = vmatprep.subr.bf16.mxu0 %v4779_v8  ;;  %v171_v12 = vmax.f32 %v5766_v11, 0.0  ;;  %v4803_v16 = vpack.c.bf16 %v470_v7, %v469_v9 }
 0x127   :  { %v7102_v21 = vadd.f32 %v3882_v18, %v6947_v35  ;;  %v3883_v23 = vpop.f32.mrb[24].mxu0  ;;  %v5759_v35 = vld [vmem:[%s8340_s0 + $0x110] sm:$0xff] }
 0x128   :  { %v3884_v26 = vpop.f32.mrb[25].mxu0  ;;  %1525 = vmatmul.mubr.f32.gmra.mrb[122].mxu0 %v126_v17  ;;  %v145_v31 = vmax.f32 %v5759_v35, 0.0 }
 0x129   :  { %v3885_v30 = vadd.f32 %v3884_v26, %v3883_v23  ;;  %4782 = vmatpush3.bf16.msra.mxu0 %v4779_v8  ;;  %1529 = vmatprep.mubr.f32.mxu0 %v136_v19  ;;  %v5768_v19 = vld [vmem:[%s8340_s0 + $0x228] sm:$0xff] }
 0x12a   :  { %4784 = vmatprep.subr.bf16.mxu0 %v4783_v20 }
 0x12b   :  { %v7117_v33 = vadd.f32 %v3885_v30, %v6967_v48  ;;  %v3886_v34 = vpop.f32.mrb[26].mxu0  ;;  %v5761_v48 = vld [vmem:[%s8340_s0 + $0x158] sm:$0xff] }
 0x12c   :  { %v3887_v38 = vpop.f32.mrb[27].mxu0  ;;  %1530 = vmatmul.mubr.f32.gmra.mrb[124].mxu0 %v135_v29  ;;  %v154_v42 = vmax.f32 %v5761_v48, 0.0  ;;  %v5770_v29 = vld [vmem:[%s8340_s0 + $0x88] sm:$0xff] }
 0x12d   :  { %v3888_v41 = vadd.f32 %v3887_v38, %v3886_v34  ;;  %4786 = vmatpush3.bf16.msra.mxu0 %v4783_v20  ;;  %1534 = vmatprep.mubr.f32.mxu0 %v145_v31  ;;  %v180_v20 = vmax.f32 %v5768_v19, 0.0  ;;  %v128_v30 = vmax.f32 %v5770_v29, 0.0  ;;  %v5771_v31 = vld [vmem:[%s8340_s0 + $0xd0] sm:$0xff]  ;;  %v146_v38 = vmax.f32 %v5772_v37, 0.0 }
 0x12e   :  { %4788 = vmatprep.subr.bf16.mxu0 %v4787_v32 }
 0x12f   :  { %v7132_v44 = vadd.f32 %v3888_v41, %v6987_v63  ;;  %v3889_v45 = vpop.f32.mrb[28].mxu0  ;;  %v5763_v63 = vld [vmem:[%s8340_s0 + $0x1a0] sm:$0xff] }
 0x130   :  { %v3890_v50 = vpop.f32.mrb[29].mxu0  ;;  %1535 = vmatmul.mubr.f32.gmra.mrb[126].mxu0 %v144_v40  ;;  %v163_v54 = vmax.f32 %v5763_v63, 0.0  ;;  %v5773_v40 = vld [vmem:[%s8340_s0 + $0x160] sm:$0xff] }
 0x131   :  { %v3891_v53 = vadd.f32 %v3890_v50, %v3889_v45  ;;  %4790 = vmatpush3.bf16.msra.mxu0 %v4787_v32  ;;  %1539 = vmatprep.mubr.f32.mxu0 %v154_v42  ;;  %v137_v32 = vmax.f32 %v5771_v31, 0.0  ;;  %v155_v41 = vmax.f32 %v5773_v40, 0.0  ;;  %v173_v50 = vmax.f32 %v5775_v47, 0.0  ;;  %v1674_v31 = vld [vmem:[%s8343_s3 + $0x8] sm:$0xff]  ;;  %v1693_v47 = vld [vmem:[%s8343_s3 + $0xa0] sm:$0xff] }
 0x132   :  { %4792 = vmatprep.subr.bf16.mxu0 %v4791_v43 }
 0x133   :  { %v7147_v56 = vadd.f32 %v3891_v53, %v7007_v13  ;;  %v3892_v60 = vpop.f32.mrb[30].mxu0  ;;  %v5765_v13 = vld [vmem:[%s8340_s0 + $0x1e8] sm:$0xff] }
 0x134   :  { %v3893_v61 = vpop.f32.mrb[31].mxu0  ;;  %1540 = vmatmul.mubr.f32.gmra.mrb[128].mxu0 %v153_v52  ;;  %v172_v3 = vmax.f32 %v5765_v13, 0.0 }
 0x135   :  { %v3894_v2 = vadd.f32 %v3893_v61, %v3892_v60  ;;  %4794 = vmatpush3.bf16.msra.mxu0 %v4791_v43  ;;  %1544 = vmatprep.mubr.f32.mxu0 %v163_v54 }
 0x136   :  { %4796 = vmatprep.subr.bf16.mxu0 %v4795_v55 }
 0x137   :  { %v7162_v5 = vadd.f32 %v3894_v2, %v7027_v27  ;;  %v3927_v6 = vpop.f32.mrb[32].mxu0  ;;  %v5767_v27 = vld [vmem:[%s8340_s0 + $0x230] sm:$0xff] }
 0x138   :  { %v3928_v8 = vpop.f32.mrb[33].mxu0  ;;  %1545 = vmatmul.mubr.f32.gmra.mrb[130].mxu0 %v162_v1  ;;  %v181_v15 = vmax.f32 %v5767_v27, 0.0 }
 0x139   :  { %v3929_v14 = vadd.f32 %v3928_v8, %v3927_v6  ;;  %4798 = vmatpush3.bf16.msra.mxu0 %v4795_v55  ;;  %1549 = vmatprep.mubr.f32.mxu0 %v172_v3 }
 0x13a   :  { %4800 = vmatprep.subr.bf16.mxu0 %v4799_v4 }
 0x13b   :  { %v7177_v17 = vadd.f32 %v3929_v14, %v7057_v49  ;;  %v3930_v18 = vpop.f32.mrb[34].mxu0 }
 0x13c   :  { %v3931_v22 = vpop.f32.mrb[35].mxu0  ;;  %1550 = vmatmul.mubr.f32.gmra.mrb[132].mxu0 %v171_v12 }
 0x13d   :  { %v3932_v23 = vadd.f32 %v3931_v22, %v3930_v18  ;;  %4802 = vmatpush3.bf16.msra.mxu0 %v4799_v4  ;;  %1554 = vmatprep.mubr.f32.mxu0 %v181_v15 }
 0x13e   :  { %4804 = vmatprep.subr.bf16.mxu0 %v4803_v16 }
 0x13f   :  { %v897_v49 = vadd.f32 %v3932_v23, %v7072_v62  ;;  %v3933_v26 = vpop.f32.mrb[36].mxu0 }
 0x140   :  { %v3934_v28 = vpop.f32.mrb[37].mxu0  ;;  %1555 = vmatmul.mubr.f32.gmra.mrb[134].mxu0 %v180_v20 }
 0x141   :  { %v3935_v35 = vadd.f32 %v3934_v28, %v3933_v26  ;;  %4806 = vmatpush3.bf16.msra.mxu0 %v4803_v16  ;;  %4396 = vmatprep.mubr.f32.mxu0 %v119_v25 }
 0x143   :  { %v902_v34 = vadd.f32 %v3935_v35, %v7087_v10  ;;  %v3936_v36 = vpop.f32.mrb[38].mxu0  ;;  %v5774_v10 = vld [vmem:[%s8340_s0 + $0x1a8] sm:$0xff] }
 0x144   :  { %v3937_v62 = vpop.f32.mrb[39].mxu0  ;;  %4397 = vmatmul.mubr.f32.vlgmr.msra.gmra.mrb[64].mxu0 %v128_v30  ;;  %v164_v45 = vmax.f32 %v5774_v10, 0.0  ;;  %v1694_v10 = vld [vmem:[%s8343_s3 + $0xa8] sm:$0xff] }
 0x145   :  { %v3938_v39 = vadd.f32 %v3937_v62, %v3936_v36  ;;  %4399 = vmatprep.mubr.f32.mxu0 %v137_v32  ;;  %v1678_v32 = vld [vmem:[%s8343_s3 + $0x28] sm:$0xff]  ;;  %v1673_v36 = vld [vmem:[%s8343_s3] sm:$0xff] }
 0x146   :  { %v1677_v62 = vld [vmem:[%s8343_s3 + $0x20] sm:$0xff] }
 0x147   :  { %v907_v48 = vadd.f32 %v3938_v39, %v7102_v21  ;;  %v3939_v42 = vpop.f32.mrb[40].mxu0  ;;  %v182_v21 = vmax.f32 %v6542_v57, 0.0  ;;  %v4809_v37 = vpack.c.bf16 %v1677_v62, %v1673_v36  ;;  %v1686_v39 = vld [vmem:[%s8343_s3 + $0x68] sm:$0xff]  ;;  %v1992_v36 = vld [vmem:[%s8344_s4 + $0x38] sm:$0xff] }
 0x148   :  { %v3940_v43 = vpop.f32.mrb[41].mxu0  ;;  %4400 = vmatmul.mubr.f32.gmra.mrb[66].mxu0 %v146_v38  ;;  %v1682_v38 = vld [vmem:[%s8343_s3 + $0x48] sm:$0xff] }
 0x149   :  { %v3941_v46 = vadd.f32 %v3940_v43, %v3939_v42  ;;  %4402 = vmatprep.mubr.f32.mxu0 %v155_v41  ;;  %v4811_v40 = vpack.c.bf16 %v1686_v39, %v1682_v38  ;;  %v1681_v41 = vld [vmem:[%s8343_s3 + $0x40] sm:$0xff]  ;;  %v1690_v43 = vld [vmem:[%s8343_s3 + $0x88] sm:$0xff]  ;;  %v1991_v38 = vld [vmem:[%s8344_s4 + $0x30] sm:$0xff] }
 0x14b   :  { %v912_v51 = vadd.f32 %v3941_v46, %v7117_v33  ;;  %v3942_v52 = vpop.f32.mrb[42].mxu0  ;;  %v1689_v46 = vld [vmem:[%s8343_s3 + $0x80] sm:$0xff] }
 0x14c   :  { %v3943_v53 = vpop.f32.mrb[43].mxu0  ;;  %4403 = vmatmul.mubr.f32.gmra.mrb[68].mxu0 %v164_v45  ;;  %v4815_v45 = vpack.c.bf16 %v1694_v10, %v1690_v43  ;;  %v2000_v43 = vld [vmem:[%s8344_s4 + $0x78] sm:$0xff] }
 0x14d   :  { %v3944_v63 = vadd.f32 %v3943_v53, %v3942_v52  ;;  %4405 = vmatprep.mubr.f32.mxu0 %v173_v50  ;;  %v4817_v50 = vpack.c.bf16 %v1693_v47, %v1689_v46  ;;  %v1702_v52 = vld [vmem:[%s8343_s3 + $0xe8] sm:$0xff]  ;;  %v1999_v46 = vld [vmem:[%s8344_s4 + $0x70] sm:$0xff] }
 0x14f   :  { %v917_v54 = vadd.f32 %v3944_v63, %v7132_v44  ;;  %v3945_v55 = vpop.f32.mrb[44].mxu0  ;;  %v1701_v63 = vld [vmem:[%s8343_s3 + $0xe0] sm:$0xff] }
 0x150   :  { %v3946_v60 = vpop.f32.mrb[45].mxu0  ;;  %4406 = vmatmul.mubr.f32.gmra.mrb[70].mxu0 %v182_v21  ;;  %v1697_v21 = vld [vmem:[%s8343_s3 + $0xc0] sm:$0xff] }
 0x151   :  { %v3947_v58 = vadd.f32 %v3946_v60, %v3945_v55  ;;  %v1706_v55 = vld [vmem:[%s8343_s3 + $0x108] sm:$0xff] }
 0x152   :  { %v1710_v60 = vld [vmem:[%s8343_s3 + $0x128] sm:$0xff] }
 0x153   :  { %v922_v59 = vadd.f32 %v3947_v58, %v7147_v56  ;;  %v3948_v61 = vpop.f32.mrb[46].mxu0  ;;  %v4823_v58 = vpack.c.bf16 %v1710_v60, %v1706_v55  ;;  %v2007_v55 = vld [vmem:[%s8344_s4 + $0xb0] sm:$0xff] }
 0x154   :  { %v3949_v0 = vpop.f32.mrb[47].mxu0 }
 0x155   :  { %v3950_v1 = vadd.f32 %v3949_v0, %v3948_v61  ;;  %v1709_v61 = vld [vmem:[%s8343_s3 + $0x120] sm:$0xff] }
 0x157   :  { %v927_v33 = vadd.f32 %v3950_v1, %v7162_v5  ;;  %v3983_v2 = vpop.f32.mrb[48].mxu0  ;;  %v1714_v1 = vld [vmem:[%s8343_s3 + $0x148] sm:$0xff] }
 0x158   :  { %v3984_v13 = vpop.f32.mrb[49].mxu0 }
 0x159   :  { %v3985_v3 = vadd.f32 %v3984_v13, %v3983_v2  ;;  %v1713_v13 = vld [vmem:[%s8343_s3 + $0x140] sm:$0xff] }
 0x15b   :  { %v7212_v57 = vadd.f32 %v3985_v3, %v7177_v17  ;;  %v3986_v4 = vpop.f32.mrb[50].mxu0  ;;  %v1717_v3 = vld [vmem:[%s8343_s3 + $0x160] sm:$0xff] }
 0x15c   :  { %v3987_v6 = vpop.f32.mrb[51].mxu0 }
 0x15d   :  { %v3988_v44 = vadd.f32 %v3987_v6, %v3986_v4  ;;  %v4829_v4 = vpack.c.bf16 %v1717_v3, %v1713_v13  ;;  %v1722_v6 = vld [vmem:[%s8343_s3 + $0x188] sm:$0xff]  ;;  %v2015_v13 = vld [vmem:[%s8344_s4 + $0xf0] sm:$0xff] }
 0x15f   :  { %v7214_v9 = vadd.f32 %v3988_v44, %v897_v49  ;;  %v3989_v7 = vpop.f32.mrb[52].mxu0  ;;  %v1726_v44 = vld [vmem:[%s8343_s3 + $0x1a8] sm:$0xff] }
 0x160   :  { %v3990_v8 = vpop.f32.mrb[53].mxu0 }
 0x161   :  { %v3991_v11 = vadd.f32 %v3990_v8, %v3989_v7  ;;  %v4831_v7 = vpack.c.bf16 %v1726_v44, %v1722_v6  ;;  %v1721_v8 = vld [vmem:[%s8343_s3 + $0x180] sm:$0xff] }
 0x163   :  { %v7216_v56 = vadd.f32 %v3991_v11, %v902_v34  ;;  %v3992_v12 = vpop.f32.mrb[54].mxu0  ;;  %v4807_v34 = vpack.c.bf16 %v1678_v32, %v1674_v31  ;;  %v1725_v11 = vld [vmem:[%s8343_s3 + $0x1a0] sm:$0xff]  ;;  %v8352_v32 = vmov 0.0  }
 0x164   :  { %v3993_v14 = vpop.f32.mrb[55].mxu0  ;;  %1823 = vmatprep.mubr.f32.mxu0 %v8352_v32  ;;  %2184 = vmatprep.mubr.f32.mxu1 %v8352_v32 }
 0x165   :  { %v3994_v27 = vadd.f32 %v3993_v14, %v3992_v12  ;;  %4808 = vmatprep.subr.bf16.mxu0 %v4807_v34  ;;  %v4833_v12 = vpack.c.bf16 %v1725_v11, %v1721_v8  ;;  %v1730_v14 = vld [vmem:[%s8343_s3 + $0x1c8] sm:$0xff]  ;;  %v1988_v34 = vld [vmem:[%s8344_s4 + $0x18] sm:$0xff] }
 0x166   :  { %4810 = vmatpush1.bf16.msra.mxu0 %v4809_v37  ;;  %v1987_v37 = vld [vmem:[%s8344_s4 + $0x10] sm:$0xff]  ;;  %v2024_v8 = vld [vmem:[%s8344_s4 + $0x138] sm:$0xff] }
 0x167   :  { %v7218_v5 = vadd.f32 %v3994_v27, %v907_v48  ;;  %v3995_v15 = vpop.f32.mrb[56].mxu0  ;;  %v1685_v48 = vld [vmem:[%s8343_s3 + $0x60] sm:$0xff]  ;;  %4812 = vmatprep.subr.bf16.mxu0 %v4811_v40  ;;  %v1734_v27 = vld [vmem:[%s8343_s3 + $0x1e8] sm:$0xff]  ;;  %v7349_v39 = vpack.c.bf16 %v1991_v38, %v1987_v37  ;;  %v2039_v38 = vld [vmem:[%s8344_s4 + $0x1b0] sm:$0xff] }
 0x168   :  { %v3996_v16 = vpop.f32.mrb[57].mxu0  ;;  %v4813_v42 = vpack.c.bf16 %v1685_v48, %v1681_v41 }
 0x169   :  { %v3997_v18 = vadd.f32 %v3996_v16, %v3995_v15  ;;  %v4835_v16 = vpack.c.bf16 %v1734_v27, %v1730_v14  ;;  %v2023_v14 = vld [vmem:[%s8344_s4 + $0x130] sm:$0xff] }
 0x16a   :  { %4814 = vmatpush1.bf16.msra.mxu0 %v4813_v42  ;;  %v1996_v42 = vld [vmem:[%s8344_s4 + $0x58] sm:$0xff] }
 0x16b   :  { %v7220_v17 = vadd.f32 %v3997_v18, %v912_v51  ;;  %v3998_v22 = vpop.f32.mrb[58].mxu0  ;;  %4816 = vmatprep.subr.bf16.mxu0 %v4815_v45  ;;  %v1698_v51 = vld [vmem:[%s8343_s3 + $0xc8] sm:$0xff]  ;;  %v1729_v18 = vld [vmem:[%s8343_s3 + $0x1c0] sm:$0xff]  ;;  %v7362_v45 = vpack.c.bf16 %v2000_v43, %v1996_v42 }
 0x16c   :  { %v3999_v19 = vpop.f32.mrb[59].mxu0  ;;  %v4819_v53 = vpack.c.bf16 %v1702_v52, %v1698_v51 }
 0x16d   :  { %v4000_v20 = vadd.f32 %v3999_v19, %v3998_v22  ;;  %v1733_v22 = vld [vmem:[%s8343_s3 + $0x1e0] sm:$0xff] }
 0x16e   :  { %4818 = vmatpush1.bf16.msra.mxu0 %v4817_v50 }
 0x16f   :  { %v7222_v23 = vadd.f32 %v4000_v20, %v917_v54  ;;  %v4001_v24 = vpop.f32.mrb[60].mxu0  ;;  %v4821_v54 = vpack.c.bf16 %v1701_v63, %v1697_v21  ;;  %4820 = vmatprep.subr.bf16.mxu0 %v4819_v53  ;;  %v4837_v20 = vpack.c.bf16 %v1733_v22, %v1729_v18  ;;  %v2004_v53 = vld [vmem:[%s8344_s4 + $0x98] sm:$0xff] }
 0x170   :  { %v4002_v25 = vpop.f32.mrb[61].mxu0  ;;  %v2008_v21 = vld [vmem:[%s8344_s4 + $0xb8] sm:$0xff] }
 0x171   :  { %v4003_v49 = vadd.f32 %v4002_v25, %v4001_v24  ;;  %v1676_v25 = vld [vmem:[%s8343_s3 + $0x18] sm:$0xff] }
 0x172   :  { %4822 = vmatpush1.bf16.msra.mxu0 %v4821_v54  ;;  %v7383_v54 = vpack.c.bf16 %v2008_v21, %v2004_v53  ;;  %v2028_v22 = vld [vmem:[%s8344_s4 + $0x158] sm:$0xff]  ;;  %v1986_v21 = vld [vmem:[%s8344_s4 + $0x8] sm:$0xff] }
 0x173   :  { %v7224_v26 = vadd.f32 %v4003_v49, %v922_v59  ;;  %v4004_v28 = vpop.f32.mrb[62].mxu0  ;;  %v1705_v59 = vld [vmem:[%s8343_s3 + $0x100] sm:$0xff]  ;;  %4824 = vmatprep.subr.bf16.mxu0 %v4823_v58  ;;  %v1680_v49 = vld [vmem:[%s8343_s3 + $0x38] sm:$0xff] }
 0x174   :  { %v4005_v29 = vpop.f32.mrb[63].mxu0  ;;  %v4825_v0 = vpack.c.bf16 %v1709_v61, %v1705_v59 }
 0x175   :  { %v4006_v30 = vadd.f32 %v4005_v29, %v4004_v28 }
 0x176   :  { %4826 = vmatpush1.bf16.msra.mxu0 %v4825_v0  ;;  %v2012_v0 = vld [vmem:[%s8344_s4 + $0xd8] sm:$0xff] }
 0x177   :  { %v7226_v35 = vadd.f32 %v4006_v30, %v927_v33  ;;  %v1718_v33 = vld [vmem:[%s8343_s3 + $0x168] sm:$0xff]  ;;  %v4839_v30 = vpack.c.bf16 %v1680_v49, %v1676_v25  ;;  %v2031_v25 = vld [vmem:[%s8344_s4 + $0x170] sm:$0xff] }
 0x178   :  { %v4827_v2 = vpack.c.bf16 %v1718_v33, %v1714_v1  ;;  %v2016_v1 = vld [vmem:[%s8344_s4 + $0xf8] sm:$0xff] }
 0x17a   :  { %4828 = vmatprep.subr.bf16.mxu0 %v4827_v2  ;;  %v7404_v2 = vpack.c.bf16 %v2016_v1, %v2012_v0  ;;  %v1989_v0 = vld [vmem:[%s8344_s4 + $0x20] sm:$0xff] }
 0x17b   :  { %4830 = vmatpush1.bf16.msra.mxu0 %v4829_v4 }
 0x17c   :  { %4832 = vmatprep.subr.bf16.mxu0 %v4831_v7  ;;  %v2020_v7 = vld [vmem:[%s8344_s4 + $0x118] sm:$0xff] }
 0x17f   :  { %4834 = vmatpush1.bf16.msra.mxu0 %v4833_v12  ;;  %v7425_v12 = vpack.c.bf16 %v2024_v8, %v2020_v7  ;;  %v1993_v8 = vld [vmem:[%s8344_s4 + $0x40] sm:$0xff] }
 0x180   :  { %4836 = vmatprep.subr.bf16.mxu0 %v4835_v16 }
 0x183   :  { %4838 = vmatpush1.bf16.msra.mxu0 %v4837_v20 }
 0x184   :  { %4840 = vmatprep.subr.bf16.mxu0 %v4839_v30 }
 0x197   :  { %v4063_v15 = vpop.f32.mrb[72].mxu0 }
 0x198   :  { %v4064_v19 = vpop.f32.mrb[73].mxu0 }
 0x199   :  { %v4065_v24 = vadd.f32 %v4064_v19, %v4063_v15  ;;  %v2032_v19 = vld [vmem:[%s8344_s4 + $0x178] sm:$0xff] }
 0x19b   :  { %v7331_v28 = vadd.f32 %v4065_v24, %v7212_v57  ;;  %v4066_v29 = vpop.f32.mrb[74].mxu0  ;;  %v7341_v57 = vpack.c.bf16 %v1992_v36, %v1988_v34  ;;  %v7446_v24 = vpack.c.bf16 %v2032_v19, %v2028_v22  ;;  %v2036_v34 = vld [vmem:[%s8344_s4 + $0x198] sm:$0xff] }
 0x19c   :  { %v4067_v31 = vpop.f32.mrb[75].mxu0  ;;  %v2040_v36 = vld [vmem:[%s8344_s4 + $0x1b8] sm:$0xff] }
 0x19d   :  { %v4068_v62 = vadd.f32 %v4067_v31, %v4066_v29  ;;  %4904 = vmatprep.subr.bf16.mxu1 %v7341_v57  ;;  %v7467_v37 = vpack.c.bf16 %v2040_v36, %v2036_v34  ;;  %v2014_v36 = vld [vmem:[%s8344_s4 + $0xe8] sm:$0xff] }
 0x19e   :  { %4906 = vmatpush1.bf16.msra.mxu1 %v7349_v39 }
 0x19f   :  { %v7352_v40 = vadd.f32 %v4068_v62, %v7214_v9  ;;  %v4069_v41 = vpop.f32.mrb[76].mxu0  ;;  %v1995_v9 = vld [vmem:[%s8344_s4 + $0x50] sm:$0xff]  ;;  %4908 = vmatprep.subr.bf16.mxu1 %v7362_v45 }
 0x1a0   :  { %v4070_v48 = vpop.f32.mrb[77].mxu0  ;;  %v7370_v47 = vpack.c.bf16 %v1999_v46, %v1995_v9  ;;  %v2048_v9 = vld [vmem:[%s8344_s4 + $0x1f8] sm:$0xff] }
 0x1a1   :  { %v4071_v10 = vadd.f32 %v4070_v48, %v4069_v41 }
 0x1a2   :  { %4910 = vmatpush1.bf16.msra.mxu1 %v7370_v47 }
 0x1a3   :  { %v7373_v50 = vadd.f32 %v4071_v10, %v7216_v56  ;;  %v4072_v51 = vpop.f32.mrb[78].mxu0  ;;  %v2003_v56 = vld [vmem:[%s8344_s4 + $0x90] sm:$0xff]  ;;  %4912 = vmatprep.subr.bf16.mxu1 %v7383_v54  ;;  %v2044_v10 = vld [vmem:[%s8344_s4 + $0x1d8] sm:$0xff] }
 0x1a4   :  { %v4073_v52 = vpop.f32.mrb[79].mxu0  ;;  %v7391_v60 = vpack.c.bf16 %v2007_v55, %v2003_v56 }
 0x1a5   :  { %v4074_v63 = vadd.f32 %v4073_v52, %v4072_v51  ;;  %v7488_v51 = vpack.c.bf16 %v2048_v9, %v2044_v10  ;;  %v2047_v52 = vld [vmem:[%s8344_s4 + $0x1f0] sm:$0xff] }
 0x1a6   :  { %4914 = vmatpush1.bf16.msra.mxu1 %v7391_v60 }
 0x1a7   :  { %v7394_v58 = vadd.f32 %v4074_v63, %v7218_v5  ;;  %v4075_v59 = vpop.f32.mrb[80].mxu0  ;;  %v2011_v5 = vld [vmem:[%s8344_s4 + $0xd0] sm:$0xff]  ;;  %4916 = vmatprep.subr.bf16.mxu1 %v7404_v2  ;;  %v1990_v63 = vld [vmem:[%s8344_s4 + $0x28] sm:$0xff] }
 0x1a8   :  { %v4076_v61 = vpop.f32.mrb[81].mxu0  ;;  %v7412_v3 = vpack.c.bf16 %v2015_v13, %v2011_v5  ;;  %v1994_v5 = vld [vmem:[%s8344_s4 + $0x48] sm:$0xff] }
 0x1a9   :  { %v4077_v33 = vadd.f32 %v4076_v61, %v4075_v59  ;;  %v7508_v59 = vpack.c.bf16 %v1990_v63, %v1986_v21  ;;  %v1985_v61 = vld [vmem:[%s8344_s4] sm:$0xff]  ;;  %v1998_v13 = vld [vmem:[%s8344_s4 + $0x68] sm:$0xff] }
 0x1aa   :  { %4918 = vmatpush1.bf16.msra.mxu1 %v7412_v3  ;;  %v7530_v7 = vpack.c.bf16 %v1998_v13, %v1994_v5  ;;  %v2030_v5 = vld [vmem:[%s8344_s4 + $0x168] sm:$0xff] }
 0x1ab   :  { %v7415_v4 = vadd.f32 %v4077_v33, %v7220_v17  ;;  %v4078_v6 = vpop.f32.mrb[82].mxu0  ;;  %v2019_v17 = vld [vmem:[%s8344_s4 + $0x110] sm:$0xff]  ;;  %4920 = vmatprep.subr.bf16.mxu1 %v7425_v12 }
 0x1ac   :  { %v4079_v44 = vpop.f32.mrb[83].mxu0  ;;  %v7433_v27 = vpack.c.bf16 %v2023_v14, %v2019_v17 }
 0x1ad   :  { %v4080_v11 = vadd.f32 %v4079_v44, %v4078_v6 }
 0x1ae   :  { %4922 = vmatpush1.bf16.msra.mxu1 %v7433_v27 }
 0x1af   :  { %v7436_v15 = vadd.f32 %v4080_v11, %v7222_v23  ;;  %v4081_v16 = vpop.f32.mrb[84].mxu0  ;;  %v2027_v23 = vld [vmem:[%s8344_s4 + $0x150] sm:$0xff]  ;;  %4924 = vmatprep.subr.bf16.mxu1 %v7446_v24  ;;  %v1997_v11 = vld [vmem:[%s8344_s4 + $0x60] sm:$0xff] }
 0x1b0   :  { %v4082_v18 = vpop.f32.mrb[85].mxu0  ;;  %v7454_v49 = vpack.c.bf16 %v2031_v25, %v2027_v23  ;;  %v7541_v14 = vpack.c.bf16 %v1997_v11, %v1993_v8  ;;  %v2001_v23 = vld [vmem:[%s8344_s4 + $0x80] sm:$0xff] }
 0x1b1   :  { %v4083_v20 = vadd.f32 %v4082_v18, %v4081_v16  ;;  %v2002_v16 = vld [vmem:[%s8344_s4 + $0x88] sm:$0xff]  ;;  %v2005_v25 = vld [vmem:[%s8344_s4 + $0xa0] sm:$0xff] }
 0x1b2   :  { %4926 = vmatpush1.bf16.msra.mxu1 %v7454_v49  ;;  %v2006_v18 = vld [vmem:[%s8344_s4 + $0xa8] sm:$0xff]  ;;  %v7562_v34 = vpack.c.bf16 %v2005_v25, %v2001_v23  ;;  %v2025_v11 = vld [vmem:[%s8344_s4 + $0x140] sm:$0xff] }
 0x1b3   :  { %v7457_v29 = vadd.f32 %v4083_v20, %v7224_v26  ;;  %v4084_v30 = vpop.f32.mrb[86].mxu0  ;;  %v2035_v26 = vld [vmem:[%s8344_s4 + $0x190] sm:$0xff]  ;;  %4928 = vmatprep.subr.bf16.mxu1 %v7467_v37  ;;  %v7552_v20 = vpack.c.bf16 %v2006_v18, %v2002_v16 }
 0x1b4   :  { %v4085_v31 = vpop.f32.mrb[87].mxu0  ;;  %v7475_v41 = vpack.c.bf16 %v2039_v38, %v2035_v26 }
 0x1b5   :  { %v4086_v62 = vadd.f32 %v4085_v31, %v4084_v30 }
 0x1b6   :  { %4930 = vmatpush1.bf16.msra.mxu1 %v7475_v41 }
 0x1b7   :  { %v7478_v48 = vadd.f32 %v4086_v62, %v7226_v35  ;;  %v4119_v42 = vpop.f32.mrb[88].mxu0  ;;  %v2043_v35 = vld [vmem:[%s8344_s4 + $0x1d0] sm:$0xff]  ;;  %4932 = vmatprep.subr.bf16.mxu1 %v7488_v51 }
 0x1b8   :  { %v4120_v43 = vpop.f32.mrb[89].mxu0  ;;  %v7496_v53 = vpack.c.bf16 %v2047_v52, %v2043_v35  ;;  %v2022_v35 = vld [vmem:[%s8344_s4 + $0x128] sm:$0xff] }
 0x1b9   :  { %v4121_v46 = vadd.f32 %v4120_v43, %v4119_v42  ;;  %v2009_v42 = vld [vmem:[%s8344_s4 + $0xc0] sm:$0xff] }
 0x1ba   :  { %4934 = vmatpush1.bf16.msra.mxu1 %v7496_v53  ;;  %v2013_v43 = vld [vmem:[%s8344_s4 + $0xe0] sm:$0xff] }
 0x1bb   :  { %v7505_v56 = vadd.f32 %v7331_v28, %v4121_v46  ;;  %v4122_v55 = vpop.f32.mrb[90].mxu0  ;;  %4936 = vmatprep.subr.bf16.mxu1 %v7508_v59  ;;  %v7518_v28 = vpack.c.bf16 %v1989_v0, %v1985_v61  ;;  %v7583_v46 = vpack.c.bf16 %v2013_v43, %v2009_v42  ;;  %v2021_v61 = vld [vmem:[%s8344_s4 + $0x120] sm:$0xff]  ;;  %v2046_v43 = vld [vmem:[%s8344_s4 + $0x1e8] sm:$0xff] }
 0x1bc   :  { %v4123_v1 = vpop.f32.mrb[91].mxu0 }
 0x1bd   :  { %v4124_v33 = vadd.f32 %v4123_v1, %v4122_v55  ;;  %2185 = vmatmul.mubr.f32.vlgmr.msra.gmra.mrb[0].mxu1 %v8352_v32  ;;  %v2017_v55 = vld [vmem:[%s8344_s4 + $0x100] sm:$0xff] }
 0x1be   :  { %4938 = vmatpush1.bf16.msra.mxu1 %v7518_v28  ;;  %2283 = vmatprep.mubr.f32.mxu1 %v8352_v32 }
 0x1bf   :  { %v7527_v6 = vadd.f32 %v7352_v40, %v4124_v33  ;;  %v4125_v44 = vpop.f32.mrb[92].mxu0  ;;  %4940 = vmatprep.subr.bf16.mxu1 %v7530_v7  ;;  %v7604_v33 = vpack.c.bf16 %v2021_v61, %v2017_v55 }
 0x1c0   :  { %v4126_v17 = vpop.f32.mrb[93].mxu0 }
 0x1c1   :  { %v4127_v40 = vadd.f32 %v4126_v17, %v4125_v44  ;;  %v2029_v17 = vld [vmem:[%s8344_s4 + $0x160] sm:$0xff] }
 0x1c2   :  { %4942 = vmatpush1.bf16.msra.mxu1 %v7541_v14  ;;  %v7623_v18 = vpack.c.bf16 %v2029_v17, %v2025_v11 }
 0x1c3   :  { %v7550_v22 = vadd.f32 %v7373_v50, %v4127_v40  ;;  %v4128_v19 = vpop.f32.mrb[94].mxu0  ;;  %4944 = vmatprep.subr.bf16.mxu1 %v7552_v20  ;;  %v2010_v50 = vld [vmem:[%s8344_s4 + $0xc8] sm:$0xff] }
 0x1c4   :  { %v4129_v30 = vpop.f32.mrb[95].mxu0  ;;  %v7573_v38 = vpack.c.bf16 %v2014_v36, %v2010_v50  ;;  %v2037_v50 = vld [vmem:[%s8344_s4 + $0x1a0] sm:$0xff] }
 0x1c5   :  { %v4130_v31 = vadd.f32 %v4129_v30, %v4128_v19  ;;  %v2038_v19 = vld [vmem:[%s8344_s4 + $0x1a8] sm:$0xff] }
 0x1c6   :  { %4946 = vmatpush1.bf16.msra.mxu1 %v7562_v34 }
 0x1c7   :  { %v7571_v62 = vadd.f32 %v7394_v58, %v4130_v31  ;;  %v4131_v26 = vpop.f32.mrb[96].mxu0  ;;  %4948 = vmatprep.subr.bf16.mxu1 %v7573_v38  ;;  %v2018_v58 = vld [vmem:[%s8344_s4 + $0x108] sm:$0xff]  ;;  %v2033_v31 = vld [vmem:[%s8344_s4 + $0x180] sm:$0xff] }
 0x1c8   :  { %v4132_v10 = vpop.f32.mrb[97].mxu0  ;;  %v7594_v63 = vpack.c.bf16 %v2022_v35, %v2018_v58  ;;  %v7642_v42 = vpack.c.bf16 %v2037_v50, %v2033_v31  ;;  %v2041_v35 = vld [vmem:[%s8344_s4 + $0x1c0] sm:$0xff] }
 0x1c9   :  { %v4133_v9 = vadd.f32 %v4132_v10, %v4131_v26 }
 0x1ca   :  { %4950 = vmatpush1.bf16.msra.mxu1 %v7583_v46 }
 0x1cb   :  { %v7592_v52 = vadd.f32 %v7415_v4, %v4133_v9  ;;  %v4134_v21 = vpop.f32.mrb[98].mxu0  ;;  %4952 = vmatprep.subr.bf16.mxu1 %v7594_v63  ;;  %v2026_v4 = vld [vmem:[%s8344_s4 + $0x148] sm:$0xff] }
 0x1cc   :  { %v4135_v0 = vpop.f32.mrb[99].mxu0  ;;  %v7613_v8 = vpack.c.bf16 %v2030_v5, %v2026_v4 }
 0x1cd   :  { %v4136_v1 = vadd.f32 %v4135_v0, %v4134_v21  ;;  %v2045_v21 = vld [vmem:[%s8344_s4 + $0x1e0] sm:$0xff] }
 0x1ce   :  { %4954 = vmatpush1.bf16.msra.mxu1 %v7604_v33  ;;  %v7661_v0 = vpack.c.bf16 %v2045_v21, %v2041_v35 }
 0x1cf   :  { %v5460_v13 = vadd.f32 %v7436_v15, %v4136_v1  ;;  %v4137_v44 = vpop.f32.mrb[100].mxu0  ;;  %4956 = vmatprep.subr.bf16.mxu1 %v7613_v8  ;;  %v2034_v15 = vld [vmem:[%s8344_s4 + $0x188] sm:$0xff] }
 0x1d0   :  { %v4138_v40 = vpop.f32.mrb[101].mxu0  ;;  %v7632_v30 = vpack.c.bf16 %v2038_v19, %v2034_v15 }
 0x1d1   :  { %v4139_v16 = vadd.f32 %v4138_v40, %v4137_v44 }
 0x1d2   :  { %4958 = vmatpush1.bf16.msra.mxu1 %v7623_v18 }
 0x1d3   :  { %v5475_v23 = vadd.f32 %v7457_v29, %v4139_v16  ;;  %v4140_v25 = vpop.f32.mrb[102].mxu0  ;;  %4960 = vmatprep.subr.bf16.mxu1 %v7632_v30  ;;  %v2042_v29 = vld [vmem:[%s8344_s4 + $0x1c8] sm:$0xff] }
 0x1d4   :  { %v4141_v36 = vpop.f32.mrb[103].mxu0  ;;  %v7651_v58 = vpack.c.bf16 %v2046_v43, %v2042_v29 }
 0x1d5   :  { %v4142_v26 = vadd.f32 %v4141_v36, %v4140_v25 }
 0x1d6   :  { %4962 = vmatpush1.bf16.msra.mxu1 %v7642_v42 }
 0x1d7   :  { %v5470_v10 = vadd.f32 %v7478_v48, %v4142_v26  ;;  %v4175_v9 = vpop.f32.mrb[104].mxu0  ;;  %4964 = vmatprep.subr.bf16.mxu1 %v7651_v58 }
 0x1d8   :  { %v4176_v55 = vpop.f32.mrb[105].mxu0 }
 0x1d9   :  { %v4177_v61 = vadd.f32 %v4176_v55, %v4175_v9 }
 0x1da   :  { %4966 = vmatpush1.bf16.msra.mxu1 %v7661_v0 }
 0x1db   :  { %v5446_v48 = vadd.f32 %v7505_v56, %v4177_v61  ;;  %v4178_v1 = vpop.f32.mrb[106].mxu0  ;;  %4968 = vmatprep.subr.bf16.mxu1 %v7341_v57 }
 0x1dc   :  { %v4179_v4 = vpop.f32.mrb[107].mxu0 }
 0x1dd   :  { %v4180_v5 = vadd.f32 %v4179_v4, %v4178_v1 }
 0x1df   :  { %v5441_v44 = vadd.f32 %v7527_v6, %v4180_v5  ;;  %v4181_v11 = vpop.f32.mrb[108].mxu0 }
 0x1e0   :  { %v4182_v17 = vpop.f32.mrb[109].mxu0 }
 0x1e1   :  { %v4183_v40 = vadd.f32 %v4182_v17, %v4181_v11 }
 0x1e3   :  { %v5456_v16 = vadd.f32 %v7550_v22, %v4183_v40  ;;  %v4184_v15 = vpop.f32.mrb[110].mxu0 }
 0x1e4   :  { %v4185_v19 = vpop.f32.mrb[111].mxu0 }
 0x1e5   :  { %v4186_v25 = vadd.f32 %v4185_v19, %v4184_v15 }
 0x1e7   :  { %v5451_v31 = vadd.f32 %v7571_v62, %v4186_v25  ;;  %v4187_v56 = vpop.f32.mrb[112].mxu0 }
 0x1e8   :  { %v4188_v50 = vpop.f32.mrb[113].mxu0 }
 0x1e9   :  { %v4189_v36 = vadd.f32 %v4188_v50, %v4187_v56 }
 0x1eb   :  { %v5466_v26 = vadd.f32 %v7592_v52, %v4189_v36  ;;  %v4190_v29 = vpop.f32.mrb[114].mxu0 }
 0x1ec   :  { %v4191_v43 = vpop.f32.mrb[115].mxu0 }
 0x1ed   :  { %v4192_v9 = vadd.f32 %v4191_v43, %v4190_v29 }
 0x1ef   :  { %v5461_v35 = vadd.f32 %v5460_v13, %v4192_v9  ;;  %v4193_v6 = vpop.f32.mrb[116].mxu0 }
 0x1f0   :  { %v4194_v21 = vpop.f32.mrb[117].mxu0 }
 0x1f1   :  { %v4195_v55 = vadd.f32 %v4194_v21, %v4193_v6 }
 0x1f3   :  { %v5476_v61 = vadd.f32 %v5475_v23, %v4195_v55  ;;  %v4196_v1 = vpop.f32.mrb[118].mxu0 }
 0x1f4   :  { %v4197_v22 = vpop.f32.mrb[119].mxu0 }
 0x1f5   :  { %v4198_v4 = vadd.f32 %v4197_v22, %v4196_v1 }
 0x1f7   :  { %v5471_v5 = vadd.f32 %v5470_v10, %v4198_v4  ;;  %v4231_v11 = vpop.f32.mrb[120].mxu0 }
 0x1f8   :  { %v4232_v17 = vpop.f32.mrb[121].mxu0 }
 0x1f9   :  { %v4233_v62 = vadd.f32 %v4232_v17, %v4231_v11 }
 0x1fb   :  { %v4234_v40 = vpop.f32.mrb[122].mxu0  ;;  %v5447_v15 = vadd.f32 %v5446_v48, %v4233_v62 }
 0x1fc   :  { %v4235_v19 = vpop.f32.mrb[123].mxu0 }
 0x1fd   :  { %v4236_v25 = vadd.f32 %v4235_v19, %v4234_v40 }
 0x1ff   :  { %v4237_v52 = vpop.f32.mrb[124].mxu0  ;;  %v5442_v56 = vadd.f32 %v5441_v44, %v4236_v25 }
 0x200   :  { %v4238_v50 = vpop.f32.mrb[125].mxu0 }
 0x201   :  { %v4239_v36 = vadd.f32 %v4238_v50, %v4237_v52 }
 0x203   :  { %v4240_v13 = vpop.f32.mrb[126].mxu0  ;;  %v5457_v29 = vadd.f32 %v5456_v16, %v4239_v36  ;;  %v1675_v16 = vld [vmem:[%s8343_s3 + $0x10] sm:$0xff] }
 0x204   :  { %v4241_v43 = vpop.f32.mrb[127].mxu0 }
 0x205   :  { %v4242_v9 = vadd.f32 %v4241_v43, %v4240_v13 }
 0x207   :  { %v4243_v23 = vpop.f32.mrb[128].mxu0  ;;  %v5452_v6 = vadd.f32 %v5451_v31, %v4242_v9  ;;  %v1679_v31 = vld [vmem:[%s8343_s3 + $0x30] sm:$0xff] }
 0x208   :  { %v4244_v21 = vpop.f32.mrb[129].mxu0  ;;  %v4841_v43 = vpack.c.bf16 %v1679_v31, %v1675_v16  ;;  %v1704_v16 = vld [vmem:[%s8343_s3 + $0xf8] sm:$0xff] }
 0x209   :  { %v4245_v55 = vadd.f32 %v4244_v21, %v4243_v23 }
 0x20b   :  { %v4246_v10 = vpop.f32.mrb[130].mxu0  ;;  %v5467_v1 = vadd.f32 %v5466_v26, %v4245_v55 }
 0x20c   :  { %v4247_v22 = vpop.f32.mrb[131].mxu0 }
 0x20d   :  { %v4248_v4 = vadd.f32 %v4247_v22, %v4246_v10  ;;  %v1692_v22 = vld [vmem:[%s8343_s3 + $0x98] sm:$0xff] }
 0x20f   :  { %v4249_v11 = vpop.f32.mrb[132].mxu0  ;;  %v5462_v48 = vadd.f32 %v5461_v35, %v4248_v4  ;;  %v1684_v35 = vld [vmem:[%s8343_s3 + $0x58] sm:$0xff] }
 0x210   :  { %v4250_v17 = vpop.f32.mrb[133].mxu0 }
 0x211   :  { %v4251_v62 = vadd.f32 %v4250_v17, %v4249_v11 }
 0x213   :  { %v4252_v40 = vpop.f32.mrb[134].mxu0  ;;  %v5477_v44 = vadd.f32 %v5476_v61, %v4251_v62  ;;  %v1688_v61 = vld [vmem:[%s8343_s3 + $0x78] sm:$0xff] }
 0x214   :  { %v4253_v19 = vpop.f32.mrb[135].mxu0  ;;  %v4843_v21 = vpack.c.bf16 %v1688_v61, %v1684_v35  ;;  %v1699_v61 = vld [vmem:[%s8343_s3 + $0xd0] sm:$0xff] }
 0x215   :  { %v4254_v25 = vadd.f32 %v4253_v19, %v4252_v40  ;;  %v1691_v40 = vld [vmem:[%s8343_s3 + $0x90] sm:$0xff] }
 0x216   :  { %v1695_v19 = vld [vmem:[%s8343_s3 + $0xb0] sm:$0xff] }
 0x217   :  { %v4398_v52 = vpop.f32.mrb[64].mxu0  ;;  %v5472_v26 = vadd.f32 %v5471_v5, %v4254_v25  ;;  %v1683_v5 = vld [vmem:[%s8343_s3 + $0x50] sm:$0xff] }
 0x218   :  { %v5443_v50 = vadd.f32 %v5442_v56, %v4398_v52  ;;  %v1626_v36 = vpop.f32.mrb[65].mxu0  ;;  %v1687_v56 = vld [vmem:[%s8343_s3 + $0x70] sm:$0xff]  ;;  %v1700_v52 = vld [vmem:[%s8343_s3 + $0xd8] sm:$0xff] }
 0x219   :  { %v5448_v13 = vadd.f32 %v5447_v15, %v1626_v36  ;;  %v1696_v15 = vld [vmem:[%s8343_s3 + $0xb8] sm:$0xff]  ;;  %v4845_v11 = vpack.c.bf16 %v1687_v56, %v1683_v5 }
 0x21a   :  { %v7698_v17 = vmul.f32 0.0009057971, %v5443_v50  ;;  %v4849_v50 = vpack.c.bf16 %v1695_v19, %v1691_v40  ;;  %v1719_v40 = vld [vmem:[%s8343_s3 + $0x170] sm:$0xff]  ;;  %v1724_v19 = vld [vmem:[%s8343_s3 + $0x198] sm:$0xff] }
 0x21b   :  { %v7682_v9 = vmul.f32 0.0009057971, %v5448_v13  ;;  %v4401_v23 = vpop.f32.mrb[66].mxu0  ;;  %v1703_v13 = vld [vmem:[%s8343_s3 + $0xf0] sm:$0xff] }
 0x21c   :  { %v5453_v55 = vadd.f32 %v5452_v6, %v4401_v23  ;;  %v1636_v10 = vpop.f32.mrb[67].mxu0  ;;  %v4847_v6 = vpack.c.bf16 %v1696_v15, %v1692_v22  ;;  %v1708_v23 = vld [vmem:[%s8343_s3 + $0x118] sm:$0xff]  ;;  %v4853_v56 = vpack.c.bf16 %v1703_v13, %v1699_v61  ;;  %v1711_v15 = vld [vmem:[%s8343_s3 + $0x130] sm:$0xff] }
 0x21d   :  { %v5458_v4 = vadd.f32 %v5457_v29, %v1636_v10  ;;  %1824 = vmatmul.mubr.f32.vlgmr.msra.gmra.mrb[136].mxu0 %v7682_v9  ;;  %v1736_v61 = vld [vmem:[%s8343_s3 + $0x1f8] sm:$0xff] }
 0x21e   :  { %4842 = vmatpush1.bf16.msra.mxu0 %v4841_v43  ;;  %1829 = vmatprep.mubr.f32.mxu0 %v8352_v32  ;;  %v1668_v10 = vmul.f32 0.0009057971, %v5453_v55 }
 0x21f   :  { %v4404_v62 = vpop.f32.mrb[68].mxu0  ;;  %4844 = vmatprep.subr.bf16.mxu0 %v4843_v21  ;;  %v7714_v36 = vmul.f32 0.0009057971, %v5458_v4  ;;  %v1712_v21 = vld [vmem:[%s8343_s3 + $0x138] sm:$0xff] }
 0x220   :  { %v5463_v29 = vadd.f32 %v5462_v48, %v4404_v62  ;;  %v1646_v25 = vpop.f32.mrb[69].mxu0  ;;  %v4851_v48 = vpack.c.bf16 %v1704_v16, %v1700_v52  ;;  %v4855_v22 = vpack.c.bf16 %v1712_v21, %v1708_v23  ;;  %v1720_v4 = vld [vmem:[%s8343_s3 + $0x178] sm:$0xff]  ;;  %v1731_v23 = vld [vmem:[%s8343_s3 + $0x1d0] sm:$0xff] }
 0x221   :  { %v5468_v31 = vadd.f32 %v5467_v1, %v1646_v25  ;;  %1830 = vmatmul.mubr.f32.gmra.mrb[138].mxu0 %v7698_v17  ;;  %v1728_v25 = vld [vmem:[%s8343_s3 + $0x1b8] sm:$0xff]  ;;  %v1735_v21 = vld [vmem:[%s8343_s3 + $0x1f0] sm:$0xff] }
 0x222   :  { %4846 = vmatpush1.bf16.msra.mxu0 %v4845_v11  ;;  %1835 = vmatprep.mubr.f32.mxu0 %v8352_v32  ;;  %v1670_v16 = vmul.f32 0.0009057971, %v5463_v29 }
 0x223   :  { %v4407_v35 = vpop.f32.mrb[70].mxu0  ;;  %4848 = vmatprep.subr.bf16.mxu0 %v4847_v6  ;;  %v1669_v11 = vmul.f32 0.0009057971, %v5468_v31  ;;  %v1715_v6 = vld [vmem:[%s8343_s3 + $0x150] sm:$0xff]  ;;  %v4863_v31 = vpack.c.bf16 %v1728_v25, %v1724_v19 }
 0x224   :  { %v5473_v1 = vadd.f32 %v5472_v26, %v4407_v35  ;;  %v1656_v43 = vpop.f32.mrb[71].mxu0  ;;  %v1707_v26 = vld [vmem:[%s8343_s3 + $0x110] sm:$0xff]  ;;  %v4861_v52 = vpack.c.bf16 %v1719_v40, %v1715_v6 }
 0x225   :  { %v5478_v5 = vadd.f32 %v5477_v44, %v1656_v43  ;;  %1836 = vmatmul.mubr.f32.gmra.mrb[140].mxu0 %v7714_v36  ;;  %v1716_v44 = vld [vmem:[%s8343_s3 + $0x158] sm:$0xff]  ;;  %v4857_v55 = vpack.c.bf16 %v1711_v15, %v1707_v26  ;;  %v1727_v35 = vld [vmem:[%s8343_s3 + $0x1b0] sm:$0xff] }
 0x226   :  { %4850 = vmatpush1.bf16.msra.mxu0 %v4849_v50  ;;  %1841 = vmatprep.mubr.f32.mxu0 %v8352_v32  ;;  %v4859_v62 = vpack.c.bf16 %v1720_v4, %v1716_v44  ;;  %v1723_v50 = vld [vmem:[%s8343_s3 + $0x190] sm:$0xff] }
 0x227   :  { %4852 = vmatprep.subr.bf16.mxu0 %v4851_v48  ;;  %v1732_v48 = vld [vmem:[%s8343_s3 + $0x1d8] sm:$0xff]  ;;  %v4865_v29 = vpack.c.bf16 %v1727_v35, %v1723_v50  ;;  %v1671_v13 = vmul.f32 0.0009057971, %v5478_v5 }
 0x228   :  { %v4867_v43 = vpack.c.bf16 %v1736_v61, %v1732_v48 }
 0x229   :  { %1842 = vmatmul.mubr.f32.gmra.mrb[142].mxu0 %v1668_v10 }
 0x22a   :  { %4854 = vmatpush1.bf16.msra.mxu0 %v4853_v56  ;;  %1847 = vmatprep.mubr.f32.mxu0 %v8352_v32  ;;  %v4869_v56 = vpack.c.bf16 %v1735_v21, %v1731_v23 }
 0x22b   :  { %4856 = vmatprep.subr.bf16.mxu0 %v4855_v22  ;;  %v1672_v22 = vmul.f32 0.0009057971, %v5473_v1 }
 0x22d   :  { %1848 = vmatmul.mubr.f32.gmra.mrb[144].mxu0 %v1669_v11 }
 0x22e   :  { %4858 = vmatpush1.bf16.msra.mxu0 %v4857_v55  ;;  %1853 = vmatprep.mubr.f32.mxu0 %v8352_v32 }
 0x22f   :  { %4860 = vmatprep.subr.bf16.mxu0 %v4859_v62 }
 0x231   :  { %1854 = vmatmul.mubr.f32.gmra.mrb[146].mxu0 %v1670_v16 }
 0x232   :  { %4862 = vmatpush1.bf16.msra.mxu0 %v4861_v52  ;;  %1859 = vmatprep.mubr.f32.mxu0 %v8352_v32 }
 0x233   :  { %4864 = vmatprep.subr.bf16.mxu0 %v4863_v31 }
 0x235   :  { %1860 = vmatmul.mubr.f32.gmra.mrb[148].mxu0 %v1671_v13 }
 0x236   :  { %4866 = vmatpush1.bf16.msra.mxu0 %v4865_v29  ;;  %1865 = vmatprep.mubr.f32.mxu0 %v8352_v32 }
 0x237   :  { %4868 = vmatprep.subr.bf16.mxu0 %v4867_v43 }
 0x239   :  { %1866 = vmatmul.mubr.f32.gmra.mrb[150].mxu0 %v1672_v22 }
 0x23a   :  { %4870 = vmatpush1.bf16.msra.mxu0 %v4869_v56  ;;  %1936 = vmatprep.mubr.f32.mxu0 %v8352_v32 }
 0x23b   :  { %4872 = vmatprep.subr.bf16.mxu0 %v7508_v59 }
 0x23d   :  { %1937 = vmatmul.mubr.f32.vlgmr.msra.gmra.mrb[152].mxu0 %v7682_v9 }
 0x23e   :  { %4874 = vmatpush1.bf16.msra.mxu0 %v7518_v28  ;;  %1942 = vmatprep.mubr.f32.mxu0 %v8352_v32 }
 0x23f   :  { %4876 = vmatprep.subr.bf16.mxu0 %v7530_v7 }
 0x241   :  { %1943 = vmatmul.mubr.f32.gmra.mrb[154].mxu0 %v7698_v17 }
 0x242   :  { %4878 = vmatpush1.bf16.msra.mxu0 %v7541_v14  ;;  %1948 = vmatprep.mubr.f32.mxu0 %v8352_v32 }
 0x243   :  { %4880 = vmatprep.subr.bf16.mxu0 %v7552_v20 }
 0x245   :  { %1949 = vmatmul.mubr.f32.gmra.mrb[156].mxu0 %v7714_v36  ;;  %v1739_v36 = vlaneseq }
 0x246   :  { %4882 = vmatpush1.bf16.msra.mxu0 %v7562_v34  ;;  %1954 = vmatprep.mubr.f32.mxu0 %v8352_v32 }
 0x247   :  { %4884 = vmatprep.subr.bf16.mxu0 %v7573_v38  ;;  %v1740_v1 = vshrl.u32 %v1739_v36, 7 }
 0x249   :  { %1955 = vmatmul.mubr.f32.gmra.mrb[158].mxu0 %v1668_v10  ;;  %v1741_v5 = vsub.s32 0, %v1740_v1  ;;  %v1737_v10 = vld [vmem:[%s8345_s5] sm:$0xf]  ;;  %v1745_v26 = vsub.s32 1, %v1740_v1 }
 0x24a   :  { %4886 = vmatpush1.bf16.msra.mxu0 %v7583_v46  ;;  %1960 = vmatprep.mubr.f32.mxu0 %v8352_v32 }
 0x24b   :  { %4888 = vmatprep.subr.bf16.mxu0 %v7594_v63  ;;  %v7808_v15 = vrot.slane %v1737_v10, %v1741_v5  ;;  %v7810_v44 = vrot.slane %v1737_v10, %v1745_v26  ;;  %v1749_v5 = vsub.s32 2, %v1740_v1 }
 0x24d   :  { %1961 = vmatmul.mubr.f32.gmra.mrb[160].mxu0 %v1669_v11 }
 0x24e   :  { %4890 = vmatpush1.bf16.msra.mxu0 %v7604_v33  ;;  %1966 = vmatprep.mubr.f32.mxu0 %v8352_v32 }
 0x24f   :  { %4892 = vmatprep.subr.bf16.mxu0 %v7613_v8 }
 0x251   :  { %1967 = vmatmul.mubr.f32.gmra.mrb[162].mxu0 %v1670_v16 }
 0x252   :  { %4894 = vmatpush1.bf16.msra.mxu0 %v7623_v18  ;;  %1972 = vmatprep.mubr.f32.mxu0 %v8352_v32 }
 0x253   :  { %4896 = vmatprep.subr.bf16.mxu0 %v7632_v30 }
 0x255   :  { %1973 = vmatmul.mubr.f32.gmra.mrb[164].mxu0 %v1671_v13 }
 0x256   :  { %4898 = vmatpush1.bf16.msra.mxu0 %v7642_v42  ;;  %1978 = vmatprep.mubr.f32.mxu0 %v8352_v32 }
 0x257   :  { %4900 = vmatprep.subr.bf16.mxu0 %v7651_v58 }
 0x259   :  { %1979 = vmatmul.mubr.f32.gmra.mrb[166].mxu0 %v1672_v22 }
 0x25a   :  { %4902 = vmatpush1.bf16.msra.mxu0 %v7661_v0  ;;  %2113 = vmatprep.mubr.f32.mxu0 %v8352_v32 }
 0x25d   :  { %2114 = vmatmul.mubr.f32.vlgmr.msra.gmra.mrb[136].mxu0 %v8352_v32 }
 0x290   :  { %v2186_v9 = vpop.f32.mrb[0].mxu1 }
 0x291   :  { %v2188_v17 = vpop.f32.mrb[1].mxu1 }
 0x2f4   :  { %v1831_v4 = vpop.f32.mrb[138].mxu0 }
 0x2f5   :  { %v7813_v55 = vadd.f32 %v1831_v4, %v7808_v15  ;;  %v1833_v11 = vpop.f32.mrb[139].mxu0  ;;  %v1753_v4 = vsub.s32 3, %v1740_v1 }
 0x2f6   :  { %v7816_v62 = vadd.f32 %v1833_v11, %v7810_v44 }
 0x2f8   :  { %v1837_v6 = vpop.f32.mrb[140].mxu0 }
 0x2f9   :  { %v7819_v40 = vadd.f32 %v1837_v6, %v7808_v15  ;;  %v1839_v19 = vpop.f32.mrb[141].mxu0 }
 0x2fa   :  { %v7822_v25 = vadd.f32 %v1839_v19, %v7810_v44 }
 0x2fc   :  { %v1843_v52 = vpop.f32.mrb[142].mxu0 }
 0x2fd   :  { %v7825_v16 = vadd.f32 %v1843_v52, %v7808_v15  ;;  %v1845_v31 = vpop.f32.mrb[143].mxu0  ;;  %v1750_v52 = vrot.slane %v1737_v10, %v1749_v5 }
 0x2fe   :  { %v7828_v50 = vadd.f32 %v1845_v31, %v7810_v44 }
 0x300   :  { %v1849_v35 = vpop.f32.mrb[144].mxu0 }
 0x301   :  { %v7831_v48 = vadd.f32 %v1849_v35, %v7808_v15  ;;  %v1851_v61 = vpop.f32.mrb[145].mxu0  ;;  %v1754_v35 = vrot.slane %v1737_v10, %v1753_v4 }
 0x302   :  { %v7834_v29 = vadd.f32 %v1851_v61, %v7810_v44 }
 0x303   :  { %8354 = vst [vmem:[#allocation5_spill] sm:$0xff] %v7831_v48 }
 0x304   :  { %8355 = vst [vmem:[#allocation6_spill] sm:$0xff] %v7834_v29  ;;  %v1855_v13 = vpop.f32.mrb[146].mxu0 }
 0x305   :  { %v7837_v43 = vadd.f32 %v1855_v13, %v7808_v15  ;;  %v1857_v23 = vpop.f32.mrb[147].mxu0 }
 0x306   :  { %v7840_v21 = vadd.f32 %v1857_v23, %v7810_v44 }
 0x307   :  { %8356 = vst [vmem:[#allocation7_spill] sm:$0xff] %v7837_v43 }
 0x308   :  { %8357 = vst [vmem:[#allocation8_spill] sm:$0xff] %v7840_v21  ;;  %v1861_v56 = vpop.f32.mrb[148].mxu0 }
 0x309   :  { %v7843_v22 = vadd.f32 %v1861_v56, %v7808_v15  ;;  %v1863_v36 = vpop.f32.mrb[149].mxu0 }
 0x30a   :  { %v7846_v26 = vadd.f32 %v1863_v36, %v7810_v44 }
 0x30b   :  { %8358 = vst [vmem:[#allocation9_spill] sm:$0xff] %v7843_v22 }
 0x30c   :  { %8359 = vst [vmem:[#allocation10_spill] sm:$0xff] %v7846_v26  ;;  %v1867_v11 = vpop.f32.mrb[150].mxu0 }
 0x30d   :  { %v7849_v6 = vadd.f32 %v1867_v11, %v7808_v15  ;;  %v1869_v19 = vpop.f32.mrb[151].mxu0 }
 0x30e   :  { %v7852_v31 = vadd.f32 %v1869_v19, %v7810_v44 }
 0x30f   :  { %8360 = vst [vmem:[#allocation11_spill] sm:$0xff] %v7849_v6 }
 0x310   :  { %8361 = vst [vmem:[#allocation12_spill] sm:$0xff] %v7852_v31  ;;  %v1938_v61 = vpop.f32.mrb[152].mxu0 }
 0x311   :  { %v1939_v13 = vadd.f32 %v1938_v61, %v1750_v52  ;;  %v1940_v23 = vpop.f32.mrb[153].mxu0 }
 0x312   :  { %v1941_v56 = vadd.f32 %v1940_v23, %v1754_v35 }
 0x313   :  { %v2193_v32 = vadd.f32 %v2186_v9, %v1939_v13 }
 0x314   :  { %v2194_v22 = vadd.f32 %v2188_v17, %v1941_v56  ;;  %v1944_v21 = vpop.f32.mrb[154].mxu0 }
 0x315   :  { %v7854_v36 = vadd.f32 %v1944_v21, %v1750_v52  ;;  %v1946_v1 = vpop.f32.mrb[155].mxu0 }
 0x316   :  { %v7856_v26 = vadd.f32 %v1946_v1, %v1754_v35 }
 0x318   :  { %v1950_v11 = vpop.f32.mrb[156].mxu0 }
 0x319   :  { %v7858_v6 = vadd.f32 %v1950_v11, %v1750_v52  ;;  %v1952_v5 = vpop.f32.mrb[157].mxu0 }
 0x31a   :  { %v7860_v43 = vadd.f32 %v1952_v5, %v1754_v35 }
 0x31c   :  { %v1956_v19 = vpop.f32.mrb[158].mxu0 }
 0x31d   :  { %v7862_v10 = vadd.f32 %v1956_v19, %v1750_v52  ;;  %v1958_v4 = vpop.f32.mrb[159].mxu0 }
 0x31e   :  { %v7864_v61 = vadd.f32 %v1958_v4, %v1754_v35 }
 0x320   :  { %v1962_v9 = vpop.f32.mrb[160].mxu0 }
 0x321   :  { %v7866_v17 = vadd.f32 %v1962_v9, %v1750_v52  ;;  %v1964_v21 = vpop.f32.mrb[161].mxu0 }
 0x322   :  { %v7868_v13 = vadd.f32 %v1964_v21, %v1754_v35 }
 0x323   :  { %8362 = vst [vmem:[#allocation13_spill] sm:$0xff] %v7866_v17 }
 0x324   :  { %8363 = vst [vmem:[#allocation14_spill] sm:$0xff] %v7868_v13  ;;  %v1968_v23 = vpop.f32.mrb[162].mxu0 }
 0x325   :  { %v7870_v56 = vadd.f32 %v1968_v23, %v1750_v52  ;;  %v1970_v1 = vpop.f32.mrb[163].mxu0 }
 0x326   :  { %v7872_v11 = vadd.f32 %v1970_v1, %v1754_v35 }
 0x327   :  { %8364 = vst [vmem:[#allocation15_spill] sm:$0xff] %v7870_v56 }
 0x328   :  { %8365 = vst [vmem:[#allocation16_spill] sm:$0xff] %v7872_v11  ;;  %v1974_v5 = vpop.f32.mrb[164].mxu0 }
 0x329   :  { %v7874_v31 = vadd.f32 %v1974_v5, %v1750_v52  ;;  %v1976_v19 = vpop.f32.mrb[165].mxu0  ;;  %v3758_v5 = vmul.f32 -1.442695, %v2194_v22 }
 0x32a   :  { %v7876_v29 = vadd.f32 %v1976_v19, %v1754_v35 }
 0x32b   :  { %8366 = vst [vmem:[#allocation17_spill] sm:$0xff] %v7874_v31 }
 0x32c   :  { %8367 = vst [vmem:[#allocation18_spill] sm:$0xff] %v7876_v29  ;;  %v1980_v4 = vpop.f32.mrb[166].mxu0 }
 0x32d   :  { %v7878_v48 = vadd.f32 %v1980_v4, %v1750_v52  ;;  %v1982_v9 = vpop.f32.mrb[167].mxu0 }
 0x32e   :  { %v7880_v17 = vadd.f32 %v1982_v9, %v1754_v35 }
 0x330   :  { %8368 = vst [vmem:[#allocation19_spill] sm:$0xff] %v7880_v17  ;;  %v2115_v21 = vpop.f32.mrb[136].mxu0 }
 0x331   :  { %v5479_v13 = vadd.f32 %v2115_v21, %v7808_v15  ;;  %v2117_v23 = vpop.f32.mrb[137].mxu0 }
 0x332   :  { %v5480_v56 = vadd.f32 %v2117_v23, %v7810_v44  ;;  %v3411_v23 = vld [vmem:[%s8346_s6 + $0x10] sm:$0xff] }
 0x333   :  { %v3756_v1 = vmul.f32 -1.442695, %v5479_v13 }
 0x334   :  { %v3757_v11 = vmul.f32 -1.442695, %v5480_v56 }
 0x335   :  { %5555 = vpow2.f32 %v3756_v1  ;;  %v3412_v1 = vld [vmem:[%s8346_s6 + $0x18] sm:$0xff] }
 0x336   :  { %5557 = vpow2.f32 %v3757_v11 }
 0x337   :  { %5559 = vpow2.f32 %v3758_v5  ;;  %v5387_v5 = vpack.c.bf16 %v3412_v1, %v3411_v23  ;;  %v3422_v23 = vld [vmem:[%s8346_s6 + $0x68] sm:$0xff]  ;;  %v3423_v1 = vld [vmem:[%s8346_s6 + $0x70] sm:$0xff] }
 0x338   :  { %5561 = vtanh.f32 %v2193_v32  ;;  %v8369_v32 = vmov 0.0  }
 0x33f   :  { %v5556_v31 = vpop.eup %5555 }
 0x340   :  { %v5558_v19 = vpop.eup %5557  ;;  %v2198_v29 = vadd.f32 1.0, %v5556_v31  ;;  %v3410_v31 = vld [vmem:[%s8346_s6 + $0x8] sm:$0xff] }
 0x341   :  { %v2204_v52 = vadd.f32 1.0, %v5558_v19  ;;  %v5560_v35 = vpop.eup %5559  ;;  %v3413_v19 = vld [vmem:[%s8346_s6 + $0x20] sm:$0xff] }
 0x342   :  { %5563 = vrcp.f32 %v2198_v29  ;;  %v5562_v4 = vpop.eup %5561  ;;  %v2211_v21 = vadd.f32 1.0, %v5560_v35  ;;  %v3409_v29 = vld [vmem:[%s8346_s6] sm:$0xff] }
 0x343   :  { %5565 = vrcp.f32 %v2204_v52  ;;  %v3414_v52 = vld [vmem:[%s8346_s6 + $0x28] sm:$0xff] }
 0x344   :  { %5567 = vrcp.f32 %v2211_v21  ;;  %v5391_v35 = vpack.c.bf16 %v3414_v52, %v3413_v19  ;;  %v3417_v21 = vld [vmem:[%s8346_s6 + $0x40] sm:$0xff]  ;;  %v3424_v19 = vld [vmem:[%s8346_s6 + $0x78] sm:$0xff] }
 0x345   :  { %v5411_v52 = vpack.c.bf16 %v3424_v19, %v3423_v1 }
 0x34c   :  { %v5564_v9 = vpop.eup %5563 }
 0x34d   :  { %v5566_v15 = vpop.eup %5565  ;;  %v2215_v17 = vmul.f32 %v5564_v9, %v5562_v4  ;;  %v3415_v4 = vld [vmem:[%s8346_s6 + $0x30] sm:$0xff]  ;;  %v3416_v9 = vld [vmem:[%s8346_s6 + $0x38] sm:$0xff] }
 0x34e   :  { %v2214_v44 = vmul.f32 0.0, %v5566_v15  ;;  %v5568_v22 = vpop.eup %5567  ;;  %v5395_v15 = vpack.c.bf16 %v3416_v9, %v3415_v4 }
 0x350   :  { %v7884_v13 = vadd.f32 %v2215_v17, %v2214_v44  ;;  %v5383_v17 = vpack.c.bf16 %v3410_v31, %v3409_v29  ;;  %v3418_v44 = vld [vmem:[%s8346_s6 + $0x48] sm:$0xff]  ;;  %v3420_v29 = vld [vmem:[%s8346_s6 + $0x58] sm:$0xff] }
 0x352   :  { %5569 = vtanh.f32 %v7884_v13  ;;  %5384 = vmatprep.subr.bf16.mxu0 %v5383_v17 }
 0x353   :  { %5386 = vmatpush3.bf16.msra.mxu0 %v5383_v17  ;;  %v3421_v17 = vld [vmem:[%s8346_s6 + $0x60] sm:$0xff] }
 0x354   :  { %5388 = vmatprep.subr.bf16.mxu0 %v5387_v5 }
 0x357   :  { %5390 = vmatpush3.bf16.msra.mxu0 %v5387_v5  ;;  %v5407_v5 = vpack.c.bf16 %v3422_v23, %v3421_v17 }
 0x358   :  { %5392 = vmatprep.subr.bf16.mxu0 %v5391_v35 }
 0x35b   :  { %5394 = vmatpush3.bf16.msra.mxu0 %v5391_v35 }
 0x35c   :  { %v5570_v56 = vpop.eup %5569  ;;  %5396 = vmatprep.subr.bf16.mxu0 %v5395_v15 }
 0x35d   :  { %v7887_v11 = vmul.f32 %v5570_v56, %v5568_v22  ;;  %v5399_v22 = vpack.c.bf16 %v3418_v44, %v3417_v21  ;;  %v3419_v56 = vld [vmem:[%s8346_s6 + $0x50] sm:$0xff] }
 0x35e   :  { %v5403_v31 = vpack.c.bf16 %v3420_v29, %v3419_v56 }
 0x35f   :  { %2284 = vmatmul.mubr.f32.vlgmr.msra.gmra.mrb[2].mxu1 %v7887_v11  ;;  %4440 = vmatprep.mubr.f32.mxu0 %v7887_v11 }
 0x360   :  { %4970 = vmatpush1.bf16.msra.mxu1 %v7349_v39  ;;  %2354 = vmatprep.mubr.f32.mxu1 %v8369_v32 }
 0x361   :  { %4972 = vmatprep.subr.bf16.mxu1 %v7362_v45  ;;  %5398 = vmatpush3.bf16.msra.mxu0 %v5395_v15 }
 0x362   :  { %5400 = vmatprep.subr.bf16.mxu0 %v5399_v22 }
 0x364   :  { %4974 = vmatpush1.bf16.msra.mxu1 %v7370_v47 }
 0x365   :  { %4976 = vmatprep.subr.bf16.mxu1 %v7383_v54  ;;  %5402 = vmatpush3.bf16.msra.mxu0 %v5399_v22 }
 0x366   :  { %5404 = vmatprep.subr.bf16.mxu0 %v5403_v31 }
 0x368   :  { %4978 = vmatpush1.bf16.msra.mxu1 %v7391_v60 }
 0x369   :  { %4980 = vmatprep.subr.bf16.mxu1 %v7404_v2  ;;  %5406 = vmatpush3.bf16.msra.mxu0 %v5403_v31 }
 0x36a   :  { %5408 = vmatprep.subr.bf16.mxu0 %v5407_v5 }
 0x36c   :  { %4982 = vmatpush1.bf16.msra.mxu1 %v7412_v3 }
 0x36d   :  { %4984 = vmatprep.subr.bf16.mxu1 %v7425_v12  ;;  %5410 = vmatpush3.bf16.msra.mxu0 %v5407_v5 }
 0x36e   :  { %5412 = vmatprep.subr.bf16.mxu0 %v5411_v52 }
 0x370   :  { %4986 = vmatpush1.bf16.msra.mxu1 %v7433_v27 }
 0x371   :  { %4988 = vmatprep.subr.bf16.mxu1 %v7446_v24  ;;  %5414 = vmatpush3.bf16.msra.mxu0 %v5411_v52 }
 0x374   :  { %4990 = vmatpush1.bf16.msra.mxu1 %v7454_v49 }
 0x375   :  { %4992 = vmatprep.subr.bf16.mxu1 %v7467_v37 }
 0x378   :  { %4994 = vmatpush1.bf16.msra.mxu1 %v7475_v41 }
 0x379   :  { %4996 = vmatprep.subr.bf16.mxu1 %v7488_v51 }
 0x37c   :  { %4998 = vmatpush1.bf16.msra.mxu1 %v7496_v53 }
 0x37d   :  { %5000 = vmatprep.subr.bf16.mxu1 %v7508_v59 }
 0x37f   :  { %2355 = vmatmul.mubr.f32.vlgmr.msra.gmra.mrb[4].mxu1 %v7887_v11 }
 0x380   :  { %5002 = vmatpush1.bf16.msra.mxu1 %v7518_v28  ;;  %2453 = vmatprep.mubr.f32.mxu1 %v8369_v32 }
 0x381   :  { %5004 = vmatprep.subr.bf16.mxu1 %v7530_v7 }
 0x384   :  { %5006 = vmatpush1.bf16.msra.mxu1 %v7541_v14 }
 0x385   :  { %5008 = vmatprep.subr.bf16.mxu1 %v7552_v20 }
 0x388   :  { %5010 = vmatpush1.bf16.msra.mxu1 %v7562_v34 }
 0x389   :  { %5012 = vmatprep.subr.bf16.mxu1 %v7573_v38 }
 0x38c   :  { %5014 = vmatpush1.bf16.msra.mxu1 %v7583_v46 }
 0x38d   :  { %5016 = vmatprep.subr.bf16.mxu1 %v7594_v63 }
 0x390   :  { %5018 = vmatpush1.bf16.msra.mxu1 %v7604_v33 }
 0x391   :  { %5020 = vmatprep.subr.bf16.mxu1 %v7613_v8 }
 0x394   :  { %5022 = vmatpush1.bf16.msra.mxu1 %v7623_v18 }
 0x395   :  { %5024 = vmatprep.subr.bf16.mxu1 %v7632_v30 }
 0x398   :  { %5026 = vmatpush1.bf16.msra.mxu1 %v7642_v42 }
 0x399   :  { %5028 = vmatprep.subr.bf16.mxu1 %v7651_v58 }
 0x39c   :  { %5030 = vmatpush1.bf16.msra.mxu1 %v7661_v0 }
 0x39d   :  { %5032 = vmatprep.subr.bf16.mxu1 %v7341_v57 }
 0x432   :  { %v2285_v35 = vpop.f32.mrb[2].mxu1 }
 0x433   :  { %v2361_v4 = vadd.f32 %v2285_v35, %v7813_v55  ;;  %v2287_v9 = vpop.f32.mrb[3].mxu1 }
 0x434   :  { %v2362_v15 = vadd.f32 %v2287_v9, %v7816_v62 }
 0x435   :  { %v3759_v44 = vmul.f32 -1.442695, %v2361_v4 }
 0x436   :  { %v3760_v21 = vmul.f32 -1.442695, %v2362_v15 }
 0x438   :  { %5571 = vpow2.f32 %v3760_v21 }
 0x439   :  { %5573 = vpow2.f32 %v3759_v44 }
 0x442   :  { %v5572_v22 = vpop.eup %5571 }
 0x443   :  { %v5574_v56 = vpop.eup %5573  ;;  %v2374_v29 = vadd.f32 1.0, %v5572_v22 }
 0x444   :  { %v2368_v17 = vadd.f32 1.0, %v5574_v56 }
 0x445   :  { %5575 = vrcp.f32 %v2374_v29 }
 0x446   :  { %5577 = vrcp.f32 %v2368_v17 }
 0x44f   :  { %v5576_v62 = vpop.eup %5575 }
 0x450   :  { %v5578_v19 = vpop.eup %5577  ;;  %v2384_v35 = vmul.f32 %v5576_v62, %v7884_v13 }
 0x452   :  { %v2356_v31 = vpop.f32.mrb[4].mxu1 }
 0x453   :  { %v2363_v23 = vadd.f32 %v2356_v31, %v7854_v36  ;;  %v2358_v1 = vpop.f32.mrb[5].mxu1 }
 0x454   :  { %v2364_v5 = vadd.f32 %v2358_v1, %v7856_v26  ;;  %v8024_v26 = vld [vmem:[%s8347_s7] ss:$0 sm:$0xff] }
 0x455   :  { %5579 = vtanh.f32 %v2363_v23 }
 0x456   :  { %v3761_v55 = vmul.f32 -1.442695, %v2364_v5 }
 0x458   :  { %5581 = vpow2.f32 %v3761_v55  ;;  %v8033_v55 = vld [vmem:[%s8348_s8] ss:$0 sm:$0xff] }
 0x45f   :  { %v5580_v52 = vpop.eup %5579 }
 0x460   :  { %v2385_v4 = vmul.f32 %v5580_v52, %v5578_v19 }
 0x462   :  { %v5582_v9 = vpop.eup %5581  ;;  %v7979_v15 = vadd.f32 %v2385_v4, %v2384_v35 }
 0x463   :  { %v2381_v21 = vadd.f32 1.0, %v5582_v9 }
 0x464   :  { %5583 = vtanh.f32 %v7979_v15 }
 0x465   :  { %5585 = vrcp.f32 %v2381_v21 }
 0x46e   :  { %v5584_v36 = vpop.eup %5583 }
 0x46f   :  { %v5586_v44 = vpop.eup %5585 }
 0x470   :  { %v7982_v22 = vmul.f32 %v5586_v44, %v5584_v36 }
 0x472   :  { %2454 = vmatmul.mubr.f32.vlgmr.msra.gmra.mrb[6].mxu1 %v7982_v22  ;;  %4441 = vmatmul.mubr.f32.vlgmr.msra.gmra.mrb[168].mxu0 %v7982_v22 }
 0x473   :  { %5034 = vmatpush1.bf16.msra.mxu1 %v7349_v39  ;;  %2524 = vmatprep.mubr.f32.mxu1 %v8369_v32 }
 0x474   :  { %5036 = vmatprep.subr.bf16.mxu1 %v7362_v45 }
 0x477   :  { %5038 = vmatpush1.bf16.msra.mxu1 %v7370_v47 }
 0x478   :  { %5040 = vmatprep.subr.bf16.mxu1 %v7383_v54 }
 0x47b   :  { %5042 = vmatpush1.bf16.msra.mxu1 %v7391_v60 }
 0x47c   :  { %5044 = vmatprep.subr.bf16.mxu1 %v7404_v2 }
 0x47f   :  { %5046 = vmatpush1.bf16.msra.mxu1 %v7412_v3 }
 0x480   :  { %5048 = vmatprep.subr.bf16.mxu1 %v7425_v12 }
 0x483   :  { %5050 = vmatpush1.bf16.msra.mxu1 %v7433_v27 }
 0x484   :  { %5052 = vmatprep.subr.bf16.mxu1 %v7446_v24 }
 0x487   :  { %5054 = vmatpush1.bf16.msra.mxu1 %v7454_v49 }
 0x488   :  { %5056 = vmatprep.subr.bf16.mxu1 %v7467_v37 }
 0x48b   :  { %5058 = vmatpush1.bf16.msra.mxu1 %v7475_v41 }
 0x48c   :  { %5060 = vmatprep.subr.bf16.mxu1 %v7488_v51 }
 0x48f   :  { %5062 = vmatpush1.bf16.msra.mxu1 %v7496_v53 }
 0x490   :  { %5064 = vmatprep.subr.bf16.mxu1 %v7508_v59 }
 0x492   :  { %2525 = vmatmul.mubr.f32.vlgmr.msra.gmra.mrb[8].mxu1 %v7982_v22 }
 0x493   :  { %5066 = vmatpush1.bf16.msra.mxu1 %v7518_v28  ;;  %2623 = vmatprep.mubr.f32.mxu1 %v8369_v32 }
 0x494   :  { %5068 = vmatprep.subr.bf16.mxu1 %v7530_v7 }
 0x497   :  { %5070 = vmatpush1.bf16.msra.mxu1 %v7541_v14 }
 0x498   :  { %5072 = vmatprep.subr.bf16.mxu1 %v7552_v20 }
 0x49b   :  { %5074 = vmatpush1.bf16.msra.mxu1 %v7562_v34 }
 0x49c   :  { %5076 = vmatprep.subr.bf16.mxu1 %v7573_v38 }
 0x49f   :  { %5078 = vmatpush1.bf16.msra.mxu1 %v7583_v46 }
 0x4a0   :  { %5080 = vmatprep.subr.bf16.mxu1 %v7594_v63 }
 0x4a3   :  { %5082 = vmatpush1.bf16.msra.mxu1 %v7604_v33 }
 0x4a4   :  { %5084 = vmatprep.subr.bf16.mxu1 %v7613_v8 }
 0x4a7   :  { %5086 = vmatpush1.bf16.msra.mxu1 %v7623_v18 }
 0x4a8   :  { %5088 = vmatprep.subr.bf16.mxu1 %v7632_v30 }
 0x4ab   :  { %5090 = vmatpush1.bf16.msra.mxu1 %v7642_v42 }
 0x4ac   :  { %5092 = vmatprep.subr.bf16.mxu1 %v7651_v58 }
 0x4af   :  { %5094 = vmatpush1.bf16.msra.mxu1 %v7661_v0 }
 0x4b0   :  { %5096 = vmatprep.subr.bf16.mxu1 %v7341_v57 }
 0x545   :  { %v2455_v13 = vpop.f32.mrb[6].mxu1  ;;  %v4442_v56 = vpop.f32.mrb[168].mxu0 }
 0x546   :  { %v2531_v29 = vadd.f32 %v2455_v13, %v7819_v40  ;;  %v3504_v17 = vadd.f32 %v4442_v56, %v8024_v26  ;;  %v2457_v31 = vpop.f32.mrb[7].mxu1  ;;  %v3498_v23 = vpop.f32.mrb[169].mxu0 }
 0x547   :  { %v2532_v1 = vadd.f32 %v2457_v31, %v7822_v25  ;;  %v3499_v5 = vadd.f32 %v8024_v26, %v3498_v23 }
 0x548   :  { %v3538_v62 = vmax.f32 %v3504_v17, 0.0  ;;  %v3762_v4 = vmul.f32 -1.442695, %v2531_v29 }
 0x549   :  { %v3537_v19 = vmax.f32 %v3499_v5, 0.0  ;;  %v3763_v35 = vmul.f32 -1.442695, %v2532_v1 }
 0x54a   :  { %v3553_v52 = vmul.f32 %v8033_v55, %v3538_v62 }
 0x54b   :  { %v3552_v40 = vmul.f32 %v8033_v55, %v3537_v19  ;;  %5587 = vpow2.f32 %v3763_v35 }
 0x54c   :  { %3562 = vadd.xlane.f32.xlu0 %v3553_v52  ;;  %5589 = vpow2.f32 %v3762_v4 }
 0x550   :  { %3560 = vadd.xlane.f32.xlu0 %v3552_v40 }
 0x555   :  { %v5588_v25 = vpop.eup %5587 }
 0x556   :  { %v5590_v9 = vpop.eup %5589  ;;  %v2544_v21 = vadd.f32 1.0, %v5588_v25 }
 0x557   :  { %v2538_v36 = vadd.f32 1.0, %v5590_v9 }
 0x558   :  { %5591 = vrcp.f32 %v2544_v21 }
 0x559   :  { %5593 = vrcp.f32 %v2538_v36 }
 0x562   :  { %v5592_v23 = vpop.eup %5591 }
 0x563   :  { %v5594_v1 = vpop.eup %5593  ;;  %v2554_v5 = vmul.f32 %v5592_v23, %v7979_v15 }
 0x565   :  { %v2526_v44 = vpop.f32.mrb[8].mxu1 }
 0x566   :  { %v2533_v13 = vadd.f32 %v2526_v44, %v7858_v6  ;;  %v2528_v56 = vpop.f32.mrb[9].mxu1 }
 0x567   :  { %v2534_v17 = vadd.f32 %v2528_v56, %v7860_v43 }
 0x568   :  { %5595 = vtanh.f32 %v2533_v13 }
 0x569   :  { %v3764_v31 = vmul.f32 -1.442695, %v2534_v17 }
 0x56b   :  { %5597 = vpow2.f32 %v3764_v31 }
 0x572   :  { %v5596_v29 = vpop.eup %5595 }
 0x573   :  { %v2555_v62 = vmul.f32 %v5596_v29, %v5594_v1 }
 0x575   :  { %v5598_v19 = vpop.eup %5597  ;;  %v8040_v52 = vadd.f32 %v2555_v62, %v2554_v5 }
 0x576   :  { %v2551_v40 = vadd.f32 1.0, %v5598_v19 }
 0x577   :  { %5599 = vtanh.f32 %v8040_v52 }
 0x578   :  { %5601 = vrcp.f32 %v2551_v40 }
 0x581   :  { %v5600_v6 = vpop.eup %5599 }
 0x582   :  { %v5602_v35 = vpop.eup %5601 }
 0x583   :  { %v8043_v4 = vmul.f32 %v5602_v35, %v5600_v6 }
 0x585   :  { %2624 = vmatmul.mubr.f32.vlgmr.msra.gmra.mrb[10].mxu1 %v8043_v4  ;;  %4443 = vmatprep.mubr.f32.mxu0 %v8043_v4 }
 0x586   :  { %5098 = vmatpush1.bf16.msra.mxu1 %v7349_v39  ;;  %2694 = vmatprep.mubr.f32.mxu1 %v8369_v32 }
 0x587   :  { %5100 = vmatprep.subr.bf16.mxu1 %v7362_v45 }
 0x58a   :  { %5102 = vmatpush1.bf16.msra.mxu1 %v7370_v47 }
 0x58b   :  { %5104 = vmatprep.subr.bf16.mxu1 %v7383_v54 }
 0x58e   :  { %5106 = vmatpush1.bf16.msra.mxu1 %v7391_v60 }
 0x58f   :  { %5108 = vmatprep.subr.bf16.mxu1 %v7404_v2 }
 0x592   :  { %5110 = vmatpush1.bf16.msra.mxu1 %v7412_v3 }
 0x593   :  { %5112 = vmatprep.subr.bf16.mxu1 %v7425_v12 }
 0x596   :  { %5114 = vmatpush1.bf16.msra.mxu1 %v7433_v27 }
 0x597   :  { %5116 = vmatprep.subr.bf16.mxu1 %v7446_v24 }
 0x59a   :  { %5118 = vmatpush1.bf16.msra.mxu1 %v7454_v49 }
 0x59b   :  { %5120 = vmatprep.subr.bf16.mxu1 %v7467_v37 }
 0x59e   :  { %5122 = vmatpush1.bf16.msra.mxu1 %v7475_v41 }
 0x59f   :  { %5124 = vmatprep.subr.bf16.mxu1 %v7488_v51 }
 0x5a2   :  { %5126 = vmatpush1.bf16.msra.mxu1 %v7496_v53 }
 0x5a3   :  { %5128 = vmatprep.subr.bf16.mxu1 %v7508_v59 }
 0x5a5   :  { %2695 = vmatmul.mubr.f32.vlgmr.msra.gmra.mrb[12].mxu1 %v8043_v4 }
 0x5a6   :  { %5130 = vmatpush1.bf16.msra.mxu1 %v7518_v28  ;;  %2793 = vmatprep.mubr.f32.mxu1 %v8369_v32 }
 0x5a7   :  { %5132 = vmatprep.subr.bf16.mxu1 %v7530_v7 }
 0x5aa   :  { %5134 = vmatpush1.bf16.msra.mxu1 %v7541_v14 }
 0x5ab   :  { %5136 = vmatprep.subr.bf16.mxu1 %v7552_v20 }
 0x5ae   :  { %5138 = vmatpush1.bf16.msra.mxu1 %v7562_v34 }
 0x5af   :  { %5140 = vmatprep.subr.bf16.mxu1 %v7573_v38 }
 0x5b2   :  { %5142 = vmatpush1.bf16.msra.mxu1 %v7583_v46 }
 0x5b3   :  { %5144 = vmatprep.subr.bf16.mxu1 %v7594_v63 }
 0x5b6   :  { %5146 = vmatpush1.bf16.msra.mxu1 %v7604_v33 }
 0x5b7   :  { %5148 = vmatprep.subr.bf16.mxu1 %v7613_v8 }
 0x5ba   :  { %5150 = vmatpush1.bf16.msra.mxu1 %v7623_v18 }
 0x5bb   :  { %5152 = vmatprep.subr.bf16.mxu1 %v7632_v30 }
 0x5be   :  { %5154 = vmatpush1.bf16.msra.mxu1 %v7642_v42 }
 0x5bf   :  { %5156 = vmatprep.subr.bf16.mxu1 %v7651_v58 }
 0x5c2   :  { %5158 = vmatpush1.bf16.msra.mxu1 %v7661_v0 }
 0x5c3   :  { %5160 = vmatprep.subr.bf16.mxu1 %v7341_v57 }
 0x658   :  { %v2625_v43 = vpop.f32.mrb[10].mxu1 }
 0x659   :  { %v2701_v15 = vadd.f32 %v2625_v43, %v7825_v16  ;;  %v2627_v25 = vpop.f32.mrb[11].mxu1 }
 0x65a   :  { %v2702_v9 = vadd.f32 %v2627_v25, %v7828_v50 }
 0x65b   :  { %v3765_v36 = vmul.f32 -1.442695, %v2701_v15 }
 0x65c   :  { %v3766_v21 = vmul.f32 -1.442695, %v2702_v9  ;;  %v8370_v9 = vld [vmem:[#allocation5_spill] sm:$0xff] }
 0x65e   :  { %5603 = vpow2.f32 %v3766_v21 }
 0x65f   :  { %5605 = vpow2.f32 %v3765_v36 }
 0x668   :  { %v5604_v44 = vpop.eup %5603 }
 0x669   :  { %v5606_v13 = vpop.eup %5605  ;;  %v2714_v56 = vadd.f32 1.0, %v5604_v44 }
 0x66a   :  { %v2708_v17 = vadd.f32 1.0, %v5606_v13 }
 0x66b   :  { %5607 = vrcp.f32 %v2714_v56  ;;  %v8371_v56 = vld [vmem:[#allocation6_spill] sm:$0xff] }
 0x66c   :  { %5609 = vrcp.f32 %v2708_v17 }
 0x675   :  { %v5608_v50 = vpop.eup %5607 }
 0x676   :  { %v5610_v5 = vpop.eup %5609  ;;  %v2724_v19 = vmul.f32 %v5608_v50, %v8040_v52 }
 0x678   :  { %v2696_v31 = vpop.f32.mrb[12].mxu1 }
 0x679   :  { %v2703_v23 = vadd.f32 %v2696_v31, %v7862_v10  ;;  %v2698_v1 = vpop.f32.mrb[13].mxu1 }
 0x67a   :  { %v2704_v29 = vadd.f32 %v2698_v1, %v7864_v61 }
 0x67b   :  { %5611 = vtanh.f32 %v2703_v23 }
 0x67c   :  { %v3767_v16 = vmul.f32 -1.442695, %v2704_v29 }
 0x67e   :  { %5613 = vpow2.f32 %v3767_v16 }
 0x685   :  { %v5612_v62 = vpop.eup %5611 }
 0x686   :  { %v2725_v40 = vmul.f32 %v5612_v62, %v5610_v5 }
 0x688   :  { %v5614_v6 = vpop.eup %5613  ;;  %v8087_v35 = vadd.f32 %v2725_v40, %v2724_v19 }
 0x689   :  { %v2721_v43 = vadd.f32 1.0, %v5614_v6 }
 0x68a   :  { %5615 = vtanh.f32 %v8087_v35 }
 0x68b   :  { %5617 = vrcp.f32 %v2721_v43 }
 0x694   :  { %v5616_v10 = vpop.eup %5615 }
 0x695   :  { %v5618_v15 = vpop.eup %5617 }
 0x696   :  { %v8090_v25 = vmul.f32 %v5618_v15, %v5616_v10  ;;  %v8372_v10 = vld [vmem:[#allocation13_spill] sm:$0xff] }
 0x698   :  { %2794 = vmatmul.mubr.f32.vlgmr.msra.gmra.mrb[14].mxu1 %v8090_v25  ;;  %4444 = vmatmul.mubr.f32.gmra.mrb[170].mxu0 %v8090_v25 }
 0x699   :  { %5162 = vmatpush1.bf16.msra.mxu1 %v7349_v39  ;;  %2864 = vmatprep.mubr.f32.mxu1 %v8369_v32 }
 0x69a   :  { %5164 = vmatprep.subr.bf16.mxu1 %v7362_v45 }
 0x69d   :  { %5166 = vmatpush1.bf16.msra.mxu1 %v7370_v47 }
 0x69e   :  { %5168 = vmatprep.subr.bf16.mxu1 %v7383_v54 }
 0x6a1   :  { %5170 = vmatpush1.bf16.msra.mxu1 %v7391_v60 }
 0x6a2   :  { %5172 = vmatprep.subr.bf16.mxu1 %v7404_v2 }
 0x6a5   :  { %5174 = vmatpush1.bf16.msra.mxu1 %v7412_v3 }
 0x6a6   :  { %5176 = vmatprep.subr.bf16.mxu1 %v7425_v12 }
 0x6a9   :  { %5178 = vmatpush1.bf16.msra.mxu1 %v7433_v27 }
 0x6aa   :  { %5180 = vmatprep.subr.bf16.mxu1 %v7446_v24 }
 0x6ad   :  { %5182 = vmatpush1.bf16.msra.mxu1 %v7454_v49 }
 0x6ae   :  { %5184 = vmatprep.subr.bf16.mxu1 %v7467_v37 }
 0x6b1   :  { %5186 = vmatpush1.bf16.msra.mxu1 %v7475_v41 }
 0x6b2   :  { %5188 = vmatprep.subr.bf16.mxu1 %v7488_v51 }
 0x6b5   :  { %5190 = vmatpush1.bf16.msra.mxu1 %v7496_v53 }
 0x6b6   :  { %5192 = vmatprep.subr.bf16.mxu1 %v7508_v59 }
 0x6b8   :  { %2865 = vmatmul.mubr.f32.vlgmr.msra.gmra.mrb[16].mxu1 %v8090_v25 }
 0x6b9   :  { %5194 = vmatpush1.bf16.msra.mxu1 %v7518_v28  ;;  %2963 = vmatprep.mubr.f32.mxu1 %v8369_v32 }
 0x6ba   :  { %5196 = vmatprep.subr.bf16.mxu1 %v7530_v7 }
 0x6bd   :  { %5198 = vmatpush1.bf16.msra.mxu1 %v7541_v14 }
 0x6be   :  { %5200 = vmatprep.subr.bf16.mxu1 %v7552_v20 }
 0x6c1   :  { %5202 = vmatpush1.bf16.msra.mxu1 %v7562_v34 }
 0x6c2   :  { %5204 = vmatprep.subr.bf16.mxu1 %v7573_v38 }
 0x6c5   :  { %5206 = vmatpush1.bf16.msra.mxu1 %v7583_v46 }
 0x6c6   :  { %5208 = vmatprep.subr.bf16.mxu1 %v7594_v63 }
 0x6c9   :  { %5210 = vmatpush1.bf16.msra.mxu1 %v7604_v33 }
 0x6ca   :  { %5212 = vmatprep.subr.bf16.mxu1 %v7613_v8 }
 0x6cd   :  { %5214 = vmatpush1.bf16.msra.mxu1 %v7623_v18 }
 0x6ce   :  { %5216 = vmatprep.subr.bf16.mxu1 %v7632_v30 }
 0x6d1   :  { %5218 = vmatpush1.bf16.msra.mxu1 %v7642_v42 }
 0x6d2   :  { %5220 = vmatprep.subr.bf16.mxu1 %v7651_v58 }
 0x6d5   :  { %5222 = vmatpush1.bf16.msra.mxu1 %v7661_v0 }
 0x6d6   :  { %5224 = vmatprep.subr.bf16.mxu1 %v7341_v57 }
 0x76b   :  { %v2795_v61 = vpop.f32.mrb[14].mxu1  ;;  %v4445_v52 = vpop.f32.mrb[170].mxu0 }
 0x76c   :  { %v2871_v21 = vadd.f32 %v2795_v61, %v8370_v9  ;;  %v3514_v36 = vadd.f32 %v4445_v52, %v8024_v26  ;;  %v2797_v44 = vpop.f32.mrb[15].mxu1  ;;  %v3508_v13 = vpop.f32.mrb[171].mxu0  ;;  %v8373_v52 = vld [vmem:[#allocation14_spill] sm:$0xff] }
 0x76d   :  { %v2872_v17 = vadd.f32 %v2797_v44, %v8371_v56  ;;  %v3509_v31 = vadd.f32 %v8024_v26, %v3508_v13 }
 0x76e   :  { %v3540_v23 = vmax.f32 %v3514_v36, 0.0  ;;  %v3768_v5 = vmul.f32 -1.442695, %v2871_v21 }
 0x76f   :  { %v3539_v1 = vmax.f32 %v3509_v31, 0.0  ;;  %v3769_v50 = vmul.f32 -1.442695, %v2872_v17 }
 0x770   :  { %v3555_v29 = vmul.f32 %v8033_v55, %v3540_v23 }
 0x771   :  { %v3554_v16 = vmul.f32 %v8033_v55, %v3539_v1  ;;  %5619 = vpow2.f32 %v3769_v50 }
 0x772   :  { %3566 = vadd.xlane.f32.xlu1 %v3555_v29  ;;  %5621 = vpow2.f32 %v3768_v5  ;;  %v8374_v5 = vld [vmem:[#allocation7_spill] sm:$0xff] }
 0x776   :  { %3564 = vadd.xlane.f32.xlu1 %v3554_v16 }
 0x77b   :  { %v5620_v62 = vpop.eup %5619 }
 0x77c   :  { %v5622_v19 = vpop.eup %5621  ;;  %v2884_v40 = vadd.f32 1.0, %v5620_v62 }
 0x77d   :  { %v2878_v6 = vadd.f32 1.0, %v5622_v19 }
 0x77e   :  { %5623 = vrcp.f32 %v2884_v40  ;;  %v8375_v40 = vld [vmem:[#allocation8_spill] sm:$0xff] }
 0x77f   :  { %5625 = vrcp.f32 %v2878_v6 }
 0x788   :  { %v5624_v44 = vpop.eup %5623 }
 0x789   :  { %v5626_v13 = vpop.eup %5625  ;;  %v2894_v56 = vmul.f32 %v5624_v44, %v8087_v35  ;;  %v8376_v44 = vld [vmem:[#allocation15_spill] sm:$0xff] }
 0x78b   :  { %v2866_v43 = vpop.f32.mrb[16].mxu1 }
 0x78c   :  { %v2873_v15 = vadd.f32 %v2866_v43, %v8372_v10  ;;  %v2868_v61 = vpop.f32.mrb[17].mxu1 }
 0x78d   :  { %v2874_v9 = vadd.f32 %v2868_v61, %v8373_v52 }
 0x78e   :  { %5627 = vtanh.f32 %v2873_v15 }
 0x78f   :  { %v3770_v36 = vmul.f32 -1.442695, %v2874_v9 }
 0x791   :  { %5629 = vpow2.f32 %v3770_v36 }
 0x798   :  { %v5628_v21 = vpop.eup %5627 }
 0x799   :  { %v2895_v17 = vmul.f32 %v5628_v21, %v5626_v13 }
 0x79b   :  { %v5630_v31 = vpop.eup %5629  ;;  %v8138_v23 = vadd.f32 %v2895_v17, %v2894_v56  ;;  %v8377_v56 = vld [vmem:[#allocation16_spill] sm:$0xff] }
 0x79c   :  { %v2891_v1 = vadd.f32 1.0, %v5630_v31 }
 0x79d   :  { %5631 = vtanh.f32 %v8138_v23 }
 0x79e   :  { %5633 = vrcp.f32 %v2891_v1 }
 0x7a7   :  { %v5632_v29 = vpop.eup %5631 }
 0x7a8   :  { %v5634_v16 = vpop.eup %5633 }
 0x7a9   :  { %v8141_v50 = vmul.f32 %v5634_v16, %v5632_v29 }
 0x7ab   :  { %2964 = vmatmul.mubr.f32.vlgmr.msra.gmra.mrb[18].mxu1 %v8141_v50  ;;  %4446 = vmatprep.mubr.f32.mxu0 %v8141_v50 }
 0x7ac   :  { %5226 = vmatpush1.bf16.msra.mxu1 %v7349_v39  ;;  %3034 = vmatprep.mubr.f32.mxu1 %v8369_v32 }
 0x7ad   :  { %5228 = vmatprep.subr.bf16.mxu1 %v7362_v45 }
 0x7b0   :  { %5230 = vmatpush1.bf16.msra.mxu1 %v7370_v47 }
 0x7b1   :  { %5232 = vmatprep.subr.bf16.mxu1 %v7383_v54 }
 0x7b4   :  { %5234 = vmatpush1.bf16.msra.mxu1 %v7391_v60 }
 0x7b5   :  { %5236 = vmatprep.subr.bf16.mxu1 %v7404_v2 }
 0x7b8   :  { %5238 = vmatpush1.bf16.msra.mxu1 %v7412_v3 }
 0x7b9   :  { %5240 = vmatprep.subr.bf16.mxu1 %v7425_v12 }
 0x7bc   :  { %5242 = vmatpush1.bf16.msra.mxu1 %v7433_v27 }
 0x7bd   :  { %5244 = vmatprep.subr.bf16.mxu1 %v7446_v24 }
 0x7c0   :  { %5246 = vmatpush1.bf16.msra.mxu1 %v7454_v49 }
 0x7c1   :  { %5248 = vmatprep.subr.bf16.mxu1 %v7467_v37 }
 0x7c4   :  { %5250 = vmatpush1.bf16.msra.mxu1 %v7475_v41 }
 0x7c5   :  { %5252 = vmatprep.subr.bf16.mxu1 %v7488_v51 }
 0x7c8   :  { %5254 = vmatpush1.bf16.msra.mxu1 %v7496_v53 }
 0x7c9   :  { %5256 = vmatprep.subr.bf16.mxu1 %v7508_v59 }
 0x7cb   :  { %3035 = vmatmul.mubr.f32.vlgmr.msra.gmra.mrb[20].mxu1 %v8141_v50 }
 0x7cc   :  { %5258 = vmatpush1.bf16.msra.mxu1 %v7518_v28  ;;  %3133 = vmatprep.mubr.f32.mxu1 %v8369_v32 }
 0x7cd   :  { %5260 = vmatprep.subr.bf16.mxu1 %v7530_v7 }
 0x7d0   :  { %5262 = vmatpush1.bf16.msra.mxu1 %v7541_v14 }
 0x7d1   :  { %5264 = vmatprep.subr.bf16.mxu1 %v7552_v20 }
 0x7d4   :  { %5266 = vmatpush1.bf16.msra.mxu1 %v7562_v34 }
 0x7d5   :  { %5268 = vmatprep.subr.bf16.mxu1 %v7573_v38 }
 0x7d8   :  { %5270 = vmatpush1.bf16.msra.mxu1 %v7583_v46 }
 0x7d9   :  { %5272 = vmatprep.subr.bf16.mxu1 %v7594_v63 }
 0x7dc   :  { %5274 = vmatpush1.bf16.msra.mxu1 %v7604_v33 }
 0x7dd   :  { %5276 = vmatprep.subr.bf16.mxu1 %v7613_v8 }
 0x7e0   :  { %5278 = vmatpush1.bf16.msra.mxu1 %v7623_v18 }
 0x7e1   :  { %5280 = vmatprep.subr.bf16.mxu1 %v7632_v30 }
 0x7e4   :  { %5282 = vmatpush1.bf16.msra.mxu1 %v7642_v42 }
 0x7e5   :  { %5284 = vmatprep.subr.bf16.mxu1 %v7651_v58 }
 0x7e8   :  { %5286 = vmatpush1.bf16.msra.mxu1 %v7661_v0 }
 0x7e9   :  { %5288 = vmatprep.subr.bf16.mxu1 %v7341_v57 }
 0x87e   :  { %v2965_v35 = vpop.f32.mrb[18].mxu1 }
 0x87f   :  { %v3041_v62 = vadd.f32 %v2965_v35, %v8374_v5  ;;  %v2967_v19 = vpop.f32.mrb[19].mxu1 }
 0x880   :  { %v3042_v6 = vadd.f32 %v2967_v19, %v8375_v40 }
 0x881   :  { %v3771_v10 = vmul.f32 -1.442695, %v3041_v62 }
 0x882   :  { %v3772_v43 = vmul.f32 -1.442695, %v3042_v6 }
 0x884   :  { %5635 = vpow2.f32 %v3772_v43 }
 0x885   :  { %5637 = vpow2.f32 %v3771_v10 }
 0x88e   :  { %v5636_v15 = vpop.eup %5635 }
 0x88f   :  { %v5638_v61 = vpop.eup %5637  ;;  %v3054_v52 = vadd.f32 1.0, %v5636_v15 }
 0x890   :  { %v3048_v9 = vadd.f32 1.0, %v5638_v61 }
 0x891   :  { %5639 = vrcp.f32 %v3054_v52 }
 0x892   :  { %5641 = vrcp.f32 %v3048_v9  ;;  %v8380_v9 = vld [vmem:[#allocation17_spill] sm:$0xff] }
 0x89b   :  { %v5640_v1 = vpop.eup %5639 }
 0x89c   :  { %v5642_v29 = vpop.eup %5641  ;;  %v3064_v35 = vmul.f32 %v5640_v1, %v8138_v23 }
 0x89e   :  { %v3036_v36 = vpop.f32.mrb[20].mxu1 }
 0x89f   :  { %v3043_v13 = vadd.f32 %v3036_v36, %v8376_v44  ;;  %v3038_v21 = vpop.f32.mrb[21].mxu1 }
 0x8a0   :  { %v3044_v17 = vadd.f32 %v3038_v21, %v8377_v56 }
 0x8a1   :  { %5643 = vtanh.f32 %v3043_v13  ;;  %v8381_v13 = vld [vmem:[#allocation18_spill] sm:$0xff] }
 0x8a2   :  { %v3773_v31 = vmul.f32 -1.442695, %v3044_v17 }
 0x8a4   :  { %5645 = vpow2.f32 %v3773_v31 }
 0x8ab   :  { %v5644_v16 = vpop.eup %5643 }
 0x8ac   :  { %v3065_v5 = vmul.f32 %v5644_v16, %v5642_v29 }
 0x8ae   :  { %v5646_v62 = vpop.eup %5645  ;;  %v8185_v19 = vadd.f32 %v3065_v5, %v3064_v35 }
 0x8af   :  { %v3061_v40 = vadd.f32 1.0, %v5646_v62 }
 0x8b0   :  { %5647 = vtanh.f32 %v8185_v19 }
 0x8b1   :  { %5649 = vrcp.f32 %v3061_v40 }
 0x8ba   :  { %v5648_v6 = vpop.eup %5647 }
 0x8bb   :  { %v5650_v43 = vpop.eup %5649 }
 0x8bc   :  { %v8188_v10 = vmul.f32 %v5650_v43, %v5648_v6 }
 0x8be   :  { %3134 = vmatmul.mubr.f32.vlgmr.msra.gmra.mrb[22].mxu1 %v8188_v10  ;;  %4447 = vmatmul.mubr.f32.gmra.mrb[172].mxu0 %v8188_v10 }
 0x8bf   :  { %5290 = vmatpush1.bf16.msra.mxu1 %v7349_v39  ;;  %3204 = vmatprep.mubr.f32.mxu1 %v8369_v32 }
 0x8c0   :  { %5292 = vmatprep.subr.bf16.mxu1 %v7362_v45 }
 0x8c3   :  { %5294 = vmatpush1.bf16.msra.mxu1 %v7370_v47 }
 0x8c4   :  { %5296 = vmatprep.subr.bf16.mxu1 %v7383_v54 }
 0x8c7   :  { %5298 = vmatpush1.bf16.msra.mxu1 %v7391_v60 }
 0x8c8   :  { %5300 = vmatprep.subr.bf16.mxu1 %v7404_v2 }
 0x8cb   :  { %5302 = vmatpush1.bf16.msra.mxu1 %v7412_v3 }
 0x8cc   :  { %5304 = vmatprep.subr.bf16.mxu1 %v7425_v12 }
 0x8cf   :  { %5306 = vmatpush1.bf16.msra.mxu1 %v7433_v27 }
 0x8d0   :  { %5308 = vmatprep.subr.bf16.mxu1 %v7446_v24 }
 0x8d3   :  { %5310 = vmatpush1.bf16.msra.mxu1 %v7454_v49 }
 0x8d4   :  { %5312 = vmatprep.subr.bf16.mxu1 %v7467_v37 }
 0x8d7   :  { %5314 = vmatpush1.bf16.msra.mxu1 %v7475_v41 }
 0x8d8   :  { %5316 = vmatprep.subr.bf16.mxu1 %v7488_v51 }
 0x8db   :  { %5318 = vmatpush1.bf16.msra.mxu1 %v7496_v53 }
 0x8dc   :  { %5320 = vmatprep.subr.bf16.mxu1 %v7508_v59 }
 0x8de   :  { %3205 = vmatmul.mubr.f32.vlgmr.msra.gmra.mrb[24].mxu1 %v8188_v10 }
 0x8df   :  { %5322 = vmatpush1.bf16.msra.mxu1 %v7518_v28  ;;  %3303 = vmatprep.mubr.f32.mxu1 %v8369_v32 }
 0x8e0   :  { %5324 = vmatprep.subr.bf16.mxu1 %v7530_v7  ;;  %v8378_v7 = vld [vmem:[#allocation9_spill] sm:$0xff] }
 0x8e3   :  { %5326 = vmatpush1.bf16.msra.mxu1 %v7541_v14 }
 0x8e4   :  { %5328 = vmatprep.subr.bf16.mxu1 %v7552_v20 }
 0x8e7   :  { %5330 = vmatpush1.bf16.msra.mxu1 %v7562_v34 }
 0x8e8   :  { %5332 = vmatprep.subr.bf16.mxu1 %v7573_v38 }
 0x8eb   :  { %5334 = vmatpush1.bf16.msra.mxu1 %v7583_v46  ;;  %v8379_v46 = vld [vmem:[#allocation10_spill] sm:$0xff] }
 0x8ec   :  { %5336 = vmatprep.subr.bf16.mxu1 %v7594_v63 }
 0x8ef   :  { %5338 = vmatpush1.bf16.msra.mxu1 %v7604_v33 }
 0x8f0   :  { %5340 = vmatprep.subr.bf16.mxu1 %v7613_v8 }
 0x8f3   :  { %5342 = vmatpush1.bf16.msra.mxu1 %v7623_v18 }
 0x8f4   :  { %5344 = vmatprep.subr.bf16.mxu1 %v7632_v30 }
 0x8f7   :  { %5346 = vmatpush1.bf16.msra.mxu1 %v7642_v42 }
 0x8f8   :  { %5348 = vmatprep.subr.bf16.mxu1 %v7651_v58 }
 0x8fb   :  { %5350 = vmatpush1.bf16.msra.mxu1 %v7661_v0 }
 0x8fc   :  { %5352 = vmatprep.subr.bf16.mxu1 %v7341_v57 }
 0x991   :  { %v3135_v59 = vpop.f32.mrb[22].mxu1  ;;  %v4448_v28 = vpop.f32.mrb[172].mxu0 }
 0x992   :  { %v3211_v14 = vadd.f32 %v3135_v59, %v8378_v7  ;;  %v3524_v20 = vadd.f32 %v4448_v28, %v8024_v26  ;;  %v3137_v34 = vpop.f32.mrb[23].mxu1  ;;  %v3518_v38 = vpop.f32.mrb[173].mxu0 }
 0x993   :  { %v3212_v63 = vadd.f32 %v3137_v34, %v8379_v46  ;;  %v3519_v33 = vadd.f32 %v8024_v26, %v3518_v38 }
 0x994   :  { %v3542_v8 = vmax.f32 %v3524_v20, 0.0  ;;  %v3774_v58 = vmul.f32 -1.442695, %v3211_v14 }
 0x995   :  { %v3541_v18 = vmax.f32 %v3519_v33, 0.0  ;;  %v3775_v57 = vmul.f32 -1.442695, %v3212_v63 }
 0x996   :  { %v3557_v30 = vmul.f32 %v8033_v55, %v3542_v8 }
 0x997   :  { %v3556_v42 = vmul.f32 %v8033_v55, %v3541_v18  ;;  %5651 = vpow2.f32 %v3775_v57 }
 0x998   :  { %3570 = vadd.xlane.f32.xlu1 %v3557_v30  ;;  %5653 = vpow2.f32 %v3774_v58 }
 0x999   :  { %3568 = vadd.xlane.f32.xlu0 %v3556_v42 }
 0x9a1   :  { %v5652_v0 = vpop.eup %5651 }
 0x9a2   :  { %v5654_v23 = vpop.eup %5653  ;;  %v3224_v15 = vadd.f32 1.0, %v5652_v0 }
 0x9a3   :  { %v3218_v61 = vadd.f32 1.0, %v5654_v23 }
 0x9a4   :  { %5655 = vrcp.f32 %v3224_v15 }
 0x9a5   :  { %5657 = vrcp.f32 %v3218_v61 }
 0x9ae   :  { %v5656_v17 = vpop.eup %5655 }
 0x9af   :  { %v5658_v31 = vpop.eup %5657  ;;  %v3234_v29 = vmul.f32 %v5656_v17, %v8185_v19  ;;  %v8384_v19 = vld [vmem:[#allocation19_spill] sm:$0xff] }
 0x9b1   :  { %v3206_v52 = vpop.f32.mrb[24].mxu1 }
 0x9b2   :  { %v3213_v36 = vadd.f32 %v3206_v52, %v8380_v9  ;;  %v3208_v44 = vpop.f32.mrb[25].mxu1  ;;  %v3638_v52 = vld [vmem:[%s8349_s9] sm:$0xff]  ;;  %v3639_v9 = vld [vmem:[%s8349_s9 + $0x8] sm:$0xff] }
 0x9b3   :  { %v3214_v21 = vadd.f32 %v3208_v44, %v8381_v13  ;;  %v5801_v44 = vmov 0.0|0.0  }
 0x9b4   :  { %5659 = vtanh.f32 %v3213_v36  ;;  %v5416_v36 = vpack.c.bf16 %v3639_v9, %v3638_v52  ;;  %5415 = vmatprep.subr.bf16.mxu0 %v5801_v44 }
 0x9b5   :  { %v3776_v56 = vmul.f32 -1.442695, %v3214_v21  ;;  %v3642_v21 = vld [vmem:[%s8349_s9 + $0x20] sm:$0xff] }
 0x9b6   :  { %5417 = vmatpush3.bf16.msra.mxu0 %v5416_v36 }
 0x9b7   :  { %5661 = vpow2.f32 %v3776_v56  ;;  %5418 = vmatprep.subr.bf16.mxu0 %v5801_v44  ;;  %v3643_v56 = vld [vmem:[%s8349_s9 + $0x28] sm:$0xff] }
 0x9b8   :  { %v5422_v17 = vpack.c.bf16 %v3643_v56, %v3642_v21 }
 0x9be   :  { %v5660_v1 = vpop.eup %5659 }
 0x9bf   :  { %v3235_v16 = vmul.f32 %v5660_v1, %v5658_v31  ;;  %v3644_v31 = vld [vmem:[%s8349_s9 + $0x30] sm:$0xff]  ;;  %v3645_v1 = vld [vmem:[%s8349_s9 + $0x38] sm:$0xff] }
 0x9c1   :  { %v5662_v35 = vpop.eup %5661  ;;  %v3236_v5 = vadd.f32 %v3235_v16, %v3234_v29  ;;  %v3646_v29 = vld [vmem:[%s8349_s9 + $0x40] sm:$0xff]  ;;  %v5425_v16 = vpack.c.bf16 %v3645_v1, %v3644_v31 }
 0x9c2   :  { %v3231_v62 = vadd.f32 1.0, %v5662_v35  ;;  %v3647_v35 = vld [vmem:[%s8349_s9 + $0x48] sm:$0xff] }
 0x9c3   :  { %5663 = vtanh.f32 %v3236_v5 }
 0x9c4   :  { %5665 = vrcp.f32 %v3231_v62  ;;  %v3648_v62 = vld [vmem:[%s8349_s9 + $0x50] sm:$0xff] }
 0x9cd   :  { %v5664_v40 = vpop.eup %5663 }
 0x9ce   :  { %v5666_v6 = vpop.eup %5665 }
 0x9cf   :  { %v8236_v43 = vmul.f32 %v5666_v6, %v5664_v40  ;;  %v3649_v40 = vld [vmem:[%s8349_s9 + $0x58] sm:$0xff] }
 0x9d0   :  { %v5431_v6 = vpack.c.bf16 %v3649_v40, %v3648_v62 }
 0x9d1   :  { %3304 = vmatmul.mubr.f32.vlgmr.msra.gmra.mrb[26].mxu1 %v8236_v43  ;;  %4449 = vmatprep.mubr.f32.mxu0 %v8236_v43 }
 0x9d2   :  { %5354 = vmatpush1.bf16.msra.mxu1 %v7349_v39  ;;  %3374 = vmatprep.mubr.f32.mxu1 %v8369_v32 }
 0x9d3   :  { %5356 = vmatprep.subr.bf16.mxu1 %v7362_v45  ;;  %v8382_v45 = vld [vmem:[#allocation11_spill] sm:$0xff] }
 0x9d6   :  { %5358 = vmatpush1.bf16.msra.mxu1 %v7370_v47 }
 0x9d7   :  { %5360 = vmatprep.subr.bf16.mxu1 %v7383_v54 }
 0x9da   :  { %5362 = vmatpush1.bf16.msra.mxu1 %v7391_v60  ;;  %v8383_v60 = vld [vmem:[#allocation12_spill] sm:$0xff] }
 0x9db   :  { %5364 = vmatprep.subr.bf16.mxu1 %v7404_v2 }
 0x9de   :  { %5366 = vmatpush1.bf16.msra.mxu1 %v7412_v3 }
 0x9df   :  { %5368 = vmatprep.subr.bf16.mxu1 %v7425_v12 }
 0x9e2   :  { %5370 = vmatpush1.bf16.msra.mxu1 %v7433_v27 }
 0x9e3   :  { %5372 = vmatprep.subr.bf16.mxu1 %v7446_v24 }
 0x9e6   :  { %5374 = vmatpush1.bf16.msra.mxu1 %v7454_v49 }
 0x9e7   :  { %5376 = vmatprep.subr.bf16.mxu1 %v7467_v37 }
 0x9ea   :  { %5378 = vmatpush1.bf16.msra.mxu1 %v7475_v41 }
 0x9eb   :  { %5380 = vmatprep.subr.bf16.mxu1 %v7488_v51 }
 0x9ee   :  { %5382 = vmatpush1.bf16.msra.mxu1 %v7496_v53 }
 0x9f1   :  { %3375 = vmatmul.mubr.f32.vlgmr.msra.gmra.mrb[28].mxu1 %v8236_v43 }
 0xaa4   :  { %v3305_v39 = vpop.f32.mrb[26].mxu1 }
 0xaa5   :  { %v3381_v47 = vadd.f32 %v3305_v39, %v8382_v45  ;;  %v3307_v54 = vpop.f32.mrb[27].mxu1  ;;  %v3650_v39 = vld [vmem:[%s8349_s9 + $0x60] sm:$0xff] }
 0xaa6   :  { %v3382_v2 = vadd.f32 %v3307_v54, %v8383_v60  ;;  %v3653_v54 = vld [vmem:[%s8349_s9 + $0x78] sm:$0xff] }
 0xaa7   :  { %v3777_v12 = vmul.f32 -1.442695, %v3381_v47  ;;  %v3652_v47 = vld [vmem:[%s8349_s9 + $0x70] sm:$0xff] }
 0xaa8   :  { %v3778_v3 = vmul.f32 -1.442695, %v3382_v2  ;;  %v5437_v60 = vpack.c.bf16 %v3653_v54, %v3652_v47  ;;  %v3567_v2 = vpop.xlane.xlu1 %3566 }
 0xaaa   :  { %5667 = vpow2.f32 %v3778_v3  ;;  %v3563_v3 = vpop.xlane.xlu0 %3562 }
 0xaab   :  { %5669 = vpow2.f32 %v3777_v12 }
 0xaac   :  { %v3565_v12 = vpop.xlane.xlu1 %3564 }
 0xab4   :  { %v5668_v27 = vpop.eup %5667 }
 0xab5   :  { %v5670_v24 = vpop.eup %5669  ;;  %v3394_v49 = vadd.f32 1.0, %v5668_v27  ;;  %v3561_v27 = vpop.xlane.xlu0 %3560 }
 0xab6   :  { %v3388_v37 = vadd.f32 1.0, %v5670_v24  ;;  %v3571_v24 = vpop.xlane.xlu1 %3570 }
 0xab7   :  { %5671 = vrcp.f32 %v3394_v49 }
 0xab8   :  { %5673 = vrcp.f32 %v3388_v37  ;;  %v3577_v37 = vmax.f32 %v3563_v3, %v3571_v24 }
 0xab9   :  { %v3569_v49 = vpop.xlane.xlu0 %3568 }
 0xac1   :  { %v5672_v7 = vpop.eup %5671 }
 0xac2   :  { %v5674_v14 = vpop.eup %5673  ;;  %v3404_v34 = vmul.f32 %v5672_v7, %v3236_v5  ;;  %v5428_v5 = vpack.c.bf16 %v3647_v35, %v3646_v29 }
 0xac4   :  { %v3376_v41 = vpop.f32.mrb[28].mxu1 }
 0xac5   :  { %v3383_v51 = vadd.f32 %v3376_v41, %v7878_v48  ;;  %v3378_v53 = vpop.f32.mrb[29].mxu1  ;;  %v3576_v41 = vmax.f32 %v3561_v27, %v3569_v49 }
 0xac6   :  { %v3384_v59 = vadd.f32 %v3378_v53, %v8384_v19 }
 0xac7   :  { %5675 = vtanh.f32 %v3383_v51 }
 0xac8   :  { %v3779_v28 = vmul.f32 -1.442695, %v3384_v59 }
 0xaca   :  { %5677 = vpow2.f32 %v3779_v28  ;;  %v3580_v28 = vmax.f32 %v3576_v41, %v3577_v37 }
 0xad1   :  { %v5676_v20 = vpop.eup %5675 }
 0xad2   :  { %v3405_v38 = vmul.f32 %v5676_v20, %v5674_v14 }
 0xad4   :  { %v5678_v46 = vpop.eup %5677  ;;  %v3406_v63 = vadd.f32 %v3405_v38, %v3404_v34 }
 0xad5   :  { %v3401_v33 = vadd.f32 1.0, %v5678_v46 }
 0xad6   :  { %5679 = vtanh.f32 %v3406_v63 }
 0xad7   :  { %5681 = vrcp.f32 %v3401_v33 }
 0xae0   :  { %v5680_v8 = vpop.eup %5679 }
 0xae1   :  { %v5682_v18 = vpop.eup %5681 }
 0xae2   :  { %v8261_v48 = vmul.f32 %v5682_v18, %v5680_v8 }
 0xae4   :  { %4450 = vmatmul.mubr.f32.gmra.mrb[174].mxu0 %v8261_v48 }
 0xae5   :  { %4484 = vmatprep.mubr.msk.f32.mxu0 %vm5802_vm0, %v8369_v32  ;;  %v3651_v32 = vld [vmem:[%s8349_s9 + $0x68] sm:$0xff] }
 0xae6   :  { %v5434_v45 = vpack.c.bf16 %v3651_v32, %v3650_v39 }
 0xbb7   :  { %v4451_v30 = vpop.f32.mrb[174].mxu0 }
 0xbb8   :  { %v3534_v42 = vadd.f32 %v4451_v30, %v8024_v26  ;;  %v3528_v57 = vpop.f32.mrb[175].mxu0 }
 0xbb9   :  { %v3529_v58 = vadd.f32 %v8024_v26, %v3528_v57  ;;  %v3640_v26 = vld [vmem:[%s8349_s9 + $0x10] sm:$0xff] }
 0xbba   :  { %v3544_v0 = vmax.f32 %v3534_v42, 0.0 }
 0xbbb   :  { %v3543_v23 = vmax.f32 %v3529_v58, 0.0 }
 0xbbc   :  { %v3559_v15 = vmul.f32 %v8033_v55, %v3544_v0 }
 0xbbd   :  { %v3558_v61 = vmul.f32 %v8033_v55, %v3543_v23  ;;  %v3641_v55 = vld [vmem:[%s8349_s9 + $0x18] sm:$0xff] }
 0xbbe   :  { %3574 = vadd.xlane.f32.xlu1 %v3559_v15  ;;  %v5419_v13 = vpack.c.bf16 %v3641_v55, %v3640_v26 }
 0xbbf   :  { %3572 = vadd.xlane.f32.xlu0 %v3558_v61 }
 0xbc0   :  { %5420 = vmatpush3.bf16.msra.mxu0 %v5419_v13 }
 0xbc1   :  { %5421 = vmatprep.subr.bf16.mxu0 %v5801_v44 }
 0xbc4   :  { %5423 = vmatpush3.bf16.msra.mxu0 %v5422_v17 }
 0xbc5   :  { %5424 = vmatprep.subr.bf16.mxu0 %v5801_v44 }
 0xbc8   :  { %5426 = vmatpush3.bf16.msra.mxu0 %v5425_v16 }
 0xbc9   :  { %5427 = vmatprep.subr.bf16.mxu0 %v5801_v44 }
 0xbcc   :  { %5429 = vmatpush3.bf16.msra.mxu0 %v5428_v5 }
 0xbcd   :  { %5430 = vmatprep.subr.bf16.mxu0 %v5801_v44 }
 0xbd0   :  { %5432 = vmatpush3.bf16.msra.mxu0 %v5431_v6 }
 0xbd1   :  { %5433 = vmatprep.subr.bf16.mxu0 %v5801_v44 }
 0xbd4   :  { %5435 = vmatpush3.bf16.msra.mxu0 %v5434_v45 }
 0xbd5   :  { %5436 = vmatprep.subr.bf16.mxu0 %v5801_v44 }
 0xbd8   :  { %5438 = vmatpush3.bf16.msra.mxu0 %v5437_v60 }
 0xc4b   :  { %v3575_v51 = vpop.xlane.xlu1 %3574 }
 0xc4c   :  { %v3579_v53 = vmax.f32 %v3567_v2, %v3575_v51  ;;  %v3573_v19 = vpop.xlane.xlu0 %3572 }
 0xc4d   :  { %v3578_v59 = vmax.f32 %v3565_v12, %v3573_v19 }
 0xc4f   :  { %v3581_v7 = vmax.f32 %v3578_v59, %v3579_v53 }
 0xc51   :  { %v3582_v14 = vmax.f32 %v3580_v28, %v3581_v7 }
 0xc53   :  { %v3583_v20 = vsub.f32 %v3561_v27, %v3582_v14  ;;  %v3584_v34 = vsub.f32 %v3563_v3, %v3582_v14  ;;  %v3585_v38 = vsub.f32 %v3565_v12, %v3582_v14  ;;  %v3586_v46 = vsub.f32 %v3567_v2, %v3582_v14 }
 0xc54   :  { %v3587_v8 = vsub.f32 %v3569_v49, %v3582_v14  ;;  %v3588_v30 = vsub.f32 %v3571_v24, %v3582_v14  ;;  %v3589_v57 = vsub.f32 %v3573_v19, %v3582_v14  ;;  %v3590_v0 = vsub.f32 %v3575_v51, %v3582_v14 }
 0xc55   :  { %v3591_v63 = vmul.f32 1.442695, %v3583_v20  ;;  %v3593_v33 = vmul.f32 1.442695, %v3584_v34  ;;  %v3595_v18 = vmul.f32 1.442695, %v3585_v38 }
 0xc56   :  { %v3597_v42 = vmul.f32 1.442695, %v3586_v46  ;;  %v3599_v58 = vmul.f32 1.442695, %v3587_v8  ;;  %v3601_v23 = vmul.f32 1.442695, %v3588_v30 }
 0xc57   :  { %5683 = vpow2.f32 %v3591_v63  ;;  %v3603_v15 = vmul.f32 1.442695, %v3589_v57  ;;  %v3605_v61 = vmul.f32 1.442695, %v3590_v0 }
 0xc58   :  { %5685 = vpow2.f32 %v3593_v33 }
 0xc59   :  { %5687 = vpow2.f32 %v3595_v18 }
 0xc5a   :  { %5689 = vpow2.f32 %v3597_v42 }
 0xc5b   :  { %5691 = vpow2.f32 %v3599_v58 }
 0xc5c   :  { %5693 = vpow2.f32 %v3601_v23 }
 0xc5d   :  { %5695 = vpow2.f32 %v3603_v15 }
 0xc5e   :  { %5697 = vpow2.f32 %v3605_v61 }
 0xc61   :  { %v5684_v52 = vpop.eup %5683 }
 0xc62   :  { %v5686_v9 = vpop.eup %5685 }
 0xc63   :  { %v3607_v36 = vadd.f32 %v5686_v9, %v5684_v52  ;;  %v5688_v44 = vpop.eup %5687 }
 0xc64   :  { %v5690_v55 = vpop.eup %5689 }
 0xc65   :  { %v3608_v26 = vadd.f32 %v5688_v44, %v3607_v36  ;;  %v5692_v21 = vpop.eup %5691 }
 0xc66   :  { %v5694_v17 = vpop.eup %5693 }
 0xc67   :  { %v3609_v13 = vadd.f32 %v5690_v55, %v3608_v26  ;;  %v5696_v1 = vpop.eup %5695 }
 0xc68   :  { %v5698_v16 = vpop.eup %5697 }
 0xc69   :  { %v3610_v56 = vadd.f32 %v5692_v21, %v3609_v13 }
 0xc6b   :  { %v3611_v31 = vadd.f32 %v5694_v17, %v3610_v56 }
 0xc6d   :  { %v3612_v29 = vadd.f32 %v5696_v1, %v3611_v31 }
 0xc6f   :  { %v3613_v35 = vadd.f32 %v5698_v16, %v3612_v29 }
 0xc71   :  { %5699 = vrcp.f32 %v3613_v35 }
 0xc7b   :  { %v5700_v5 = vpop.eup %5699 }
 0xc7c   :  { %v3615_v62 = vmul.f32 %v5700_v5, %v5684_v52  ;;  %v3616_v40 = vmul.f32 %v5700_v5, %v5686_v9  ;;  %v3617_v6 = vmul.f32 %v5700_v5, %v5688_v44  ;;  %v3618_v39 = vmul.f32 %v5700_v5, %v5690_v55 }
 0xc7d   :  { %v3619_v47 = vmul.f32 %v5700_v5, %v5692_v21  ;;  %v3620_v2 = vmul.f32 %v5700_v5, %v5694_v17  ;;  %v3621_v27 = vmul.f32 %v5700_v5, %v5696_v1  ;;  %v3622_v37 = vmul.f32 %v5700_v5, %v5698_v16 }
 0xc7e   :  { %v3623_v32 = vmul.f32 %v3615_v62, %v7887_v11  ;;  %v3624_v45 = vmul.f32 %v3616_v40, %v7982_v22  ;;  %v3625_v54 = vmul.f32 %v3617_v6, %v8043_v4  ;;  %v3626_v3 = vmul.f32 %v3618_v39, %v8090_v25  ;;  %v3782_v25 = vld [vmem:[%s8350_s10] ss:$0 sm:$0xff]  ;;  %s5776_s10 = scalar_lea.vmem %s3749_s21, 64 }
 0xc7f   :  { %v3627_v24 = vmul.f32 %v3619_v47, %v8141_v50  ;;  %v3628_v41 = vmul.f32 %v3620_v2, %v8188_v10  ;;  %v3629_v11 = vmul.f32 %v3621_v27, %v8236_v43  ;;  %v3630_v22 = vmul.f32 %v3622_v37, %v8261_v48  ;;  %p5777_p0 = scmp.ne.s32.totalorder %s3749_s21, %s5776_s10  ;;  %p5782_p2 = scmp.lt.s32.totalorder %s5776_s10, %s5776_s10 }
 0xc80   :  { %v3631_v60 = vadd.f32 %v3624_v45, %v3623_v32 }
 0xc81   :  { %p5783_p3 = por %p5782_p2, %p5781_p1 }
 0xc82   :  { %v3632_v12 = vadd.f32 %v3631_v60, %v3625_v54 }
 0xc83   :  { %p5784_p4 = pnand %p5783_p3, %p5777_p0 }
 0xc84   :  { %v3633_v49 = vadd.f32 %v3632_v12, %v3626_v3 }
 0xc86   :  { %v3634_v51 = vadd.f32 %v3633_v49, %v3627_v24 }
 0xc88   :  { %v3635_v53 = vadd.f32 %v3634_v51, %v3628_v41 }
 0xc8a   :  { %v3636_v19 = vadd.f32 %v3635_v53, %v3629_v11 }
 0xc8c   :  { %v3637_v4 = vadd.f32 %v3636_v19, %v3630_v22 }
 0xc8e   :  { %4485 = vmatmul.mubr.f32.vlgmr.msra.gmra.mrb[176].mxu0 %v3637_v4 }
 0xd61   :  { %v3727_v59 = vpop.f32.mrb[176].mxu0 }
 0xd62   :  { %v3728_v28 = vadd.f32 %v3782_v25, %v3727_v59  ;;  %v4486_v50 = vpop.f32.mrb[177].mxu0 }
 0xd64   :  { %3731 = vmax.xlane.f32.xlu0 %v3728_v28 }
 0xdf1   :  { %v3732_v7 = vpop.xlane.xlu0 %3731 }
 0xdf2   :  { %v3733_v14 = vsub.f32 %v3728_v28, %v3732_v7 }
 0xdf4   :  { %v3734_v10 = vmul.f32 1.442695, %v3733_v14 }
 0xdf6   :  { %5701 = vpow2.f32 %v3734_v10 }
 0xe00   :  { %v5702_v20 = vpop.eup %5701 }
 0xe01   :  { %3736 = vadd.xlane.f32.xlu1 %v5702_v20 }
 0xe8e   :  { %v3737_v43 = vpop.xlane.xlu1 %3736 }
 0xe8f   :  { %5703 = vrcp.f32 %v3737_v43 }
 0xe99   :  { %v5704_v48 = vpop.eup %5703 }
 0xe9a   :  { %v3739_v34 = vmul.f32 %v5704_v48, %v5702_v20 }
 0xe9c   :  { %3741 = vst.msk [vmem:[#allocation2] sm:$0xf] %vm3740_vm1, %v3739_v34 }
 0xe9d   :  { %5787 = shalt.err (!%p5784_p4)
}
 0xe9e   :  { %s5788_s23 = scalar_lea.hbm %s8351_s11, 64 }
 0xe9f   :  { %p5789_p5 = scmp.ne.s32.totalorder %s8351_s11, %s5788_s23  ;;  %p5792_p6 = scmp.lt.u32.totalorder %s5788_s23, %s8351_s11 }
 0xea1   :  { %p5794_p7 = pnand %p5792_p6, %p5789_p5 }
 0xea3   :  { %5797 = shalt.err (!%p5794_p7)
}
 0xea4   :  { %3751 = dma.vmem_to_hbm [thread:$0]  %s3749_s21, 64, %s8351_s11, [#allocation3]  }
 0xea5   :  { %5798 = dma.done.wait [#allocation3], 64  }
 0xea6   :  { %5799 = vsyncadd [#allocation3], 4294967232 }
 0xea7   :  { %3755 = vsyncpa [#allocation3], 1 }

</bundles_post_ra>
